<compile_context>
chip_gen: v6e
topology: v6e:2x2x1
jax: 0.10.0
libtpu: 0.0.40
codegen_flags: <defaults>
</compile_context>

<pallas_src>
import functools

import jax
import jax.numpy as jnp
from jax import lax
from jax.experimental import pallas as pl
from jax.experimental.pallas import tpu as pltpu


def _basic_block_kernel(xm_ref, xa2_ref, xa1_ref, xb1_ref, xb2_ref,
                        w1_ref, b1_ref, w2_ref, b2_ref,
                        o_ref, pad1_ref, pad2_ref, *col, use_im2col):
    # xm_ref : (1, TH, W, C)  main input slab (rows r*TH .. r*TH+TH-1)
    # xa2/xa1: (1, 1,  W, C)  rows r*TH-2 / r*TH-1 (clamped; only used when r > 0)
    # xb1/xb2: (1, 1,  W, C)  rows r*TH+TH / r*TH+TH+1 (clamped; only used when r < nR-1)
    # w*_ref : (9*C, C)       (dy, dx, ci)-flattened HWIO weights, BN scale folded in
    # b*_ref : (1, C)         fused BatchNorm bias (f32)
    # o_ref  : (1, TH, W, C)
    # pad1   : (TH+4, W+2, C) conv1 input slab with zero halo
    # pad2   : (TH+2, W+2, C) conv2 input slab (h) with zero halo
    # col    : (TH+2, W, 9*C) im2col scratch (only when use_im2col)
    TH, W, C = xm_ref.shape[1], xm_ref.shape[2], xm_ref.shape[3]
    cdt = pad1_ref.dtype
    r = pl.program_id(1)
    nR = pl.num_programs(1)
    col_ref = col[0] if use_im2col else None
    taps = [(dy, dx) for dy in range(3) for dx in range(3)]

    def conv3x3(src_ref, n_rows, w_ref):
        if use_im2col:
            # 3-D im2col built from Ref slices (static, free views on the load side),
            # then ONE big-K (K = 9*C) MXU matmul.  The reshape is a leading-dim
            # merge (layout preserving for W % 8 == 0).
            for t, (dy, dx) in enumerate(taps):
                col_ref[0:n_rows, :, t * C:(t + 1) * C] = (
                    src_ref[dy:dy + n_rows, dx:dx + W, :])
            return jnp.dot(col_ref[0:n_rows, :, :].reshape(n_rows * W, 9 * C),
                           w_ref[...], preferred_element_type=jnp.float32)
        # v7x-friendly path: no col scratch, 9 small-K matmuls accumulated in f32.
        acc = None
        for t, (dy, dx) in enumerate(taps):
            tap = src_ref[dy:dy + n_rows, dx:dx + W, :].reshape(n_rows * W, C)
            p = jnp.dot(tap, w_ref[t * C:(t + 1) * C, :],
                        preferred_element_type=jnp.float32)
            acc = p if acc is None else acc + p
        return acc

    # ---- conv1 input: x rows [r*TH-2, r*TH+TH+2) with a zero halo --------------
    pad1_ref[2:TH + 2, 1:W + 1, :] = xm_ref[0]

    @pl.when(r > 0)
    def _():
        pad1_ref[0:1, 1:W + 1, :] = xa2_ref[0]
        pad1_ref[1:2, 1:W + 1, :] = xa1_ref[0]

    @pl.when(r == 0)                      # image top edge: zero padding rows
    def _():
        pad1_ref[0:2, 1:W + 1, :] = jnp.zeros((2, W, C), cdt)

    @pl.when(r < nR - 1)
    def _():
        pad1_ref[TH + 2:TH + 3, 1:W + 1, :] = xb1_ref[0]
        pad1_ref[TH + 3:TH + 4, 1:W + 1, :] = xb2_ref[0]

    @pl.when(r == nR - 1)                 # image bottom edge: zero padding rows
    def _():
        pad1_ref[TH + 2:TH + 4, 1:W + 1, :] = jnp.zeros((2, W, C), cdt)

    pad1_ref[:, 0:1, :] = jnp.zeros((TH + 4, 1, C), cdt)      # left/right zero cols
    pad1_ref[:, W + 1:W + 2, :] = jnp.zeros((TH + 4, 1, C), cdt)

    # conv1 (BN1 scale folded into w1) + bias + relu on TH+2 halo rows of h.
    h = jnp.maximum(conv3x3(pad1_ref, TH + 2, w1_ref) + b1_ref[...], 0.0)

    # ---- conv2 input: h rows [r*TH-1, r*TH+TH+1), zeroed outside the image -----
    pad2_ref[0:TH + 2, 1:W + 1, :] = h.reshape(TH + 2, W, C).astype(cdt)

    @pl.when(r == 0)
    def _():
        pad2_ref[0:1, 1:W + 1, :] = jnp.zeros((1, W, C), cdt)

    @pl.when(r == nR - 1)
    def _():
        pad2_ref[TH + 1:TH + 2, 1:W + 1, :] = jnp.zeros((1, W, C), cdt)

    pad2_ref[:, 0:1, :] = jnp.zeros((TH + 2, 1, C), cdt)
    pad2_ref[:, W + 1:W + 2, :] = jnp.zeros((TH + 2, 1, C), cdt)

    out = conv3x3(pad2_ref, TH, w2_ref) + b2_ref[...]
    out = jnp.maximum(out + xm_ref[0].reshape(TH * W, C).astype(jnp.float32), 0.0)
    o_ref[0] = out.reshape(TH, W, C).astype(o_ref.dtype)


def _fold_bn(params, eps):
    """Fold eval-mode BN into the convs.  Returns HWIO f32 weights and f32 biases."""
    w1, g1, be1, m1, v1, w2, g2, be2, m2, v2 = params
    inv1 = (g1 / jnp.sqrt(v1 + eps)).astype(jnp.float32)
    inv2 = (g2 / jnp.sqrt(v2 + eps)).astype(jnp.float32)
    w1f = jnp.transpose(w1, (2, 3, 1, 0)).astype(jnp.float32) * inv1   # (3,3,Ci,Co)
    w2f = jnp.transpose(w2, (2, 3, 1, 0)).astype(jnp.float32) * inv2
    b1 = (be1 - m1 * inv1).astype(jnp.float32)
    b2 = (be2 - m2 * inv2).astype(jnp.float32)
    return w1f, b1, w2f, b2


def _pick_tile_rows(H, max_rows=8):
    """Largest divisor of H that is <= max_rows and >= 2 (else the full H)."""
    for th in range(min(H, max_rows), 1, -1):
        if H % th == 0:
            return th
    return H


def basic_block(x_nchw, params, eps=1e-5, compute_dtype=jnp.bfloat16,
                out_dtype=None, row_tile=8, use_im2col=True):
    """ResNet BasicBlock forward (stride=1, downsample=None).

    compute_dtype=bfloat16 (default) halves VMEM/DMA bytes and uses the native bf16
    MXU path on v6e/v7x; accumulation, bias, relu and the residual stay f32.
    use_im2col=False selects the no-col, 9-matmul accumulation path (best on v7x).
    """
    w1 = params[0]
    N, C, H, W = x_nchw.shape
    Cout = w1.shape[0]
    assert C == Cout, "identity residual requires in_channels == out_channels"
    assert H >= 3 and W >= 3
    out_dtype = compute_dtype if out_dtype is None else out_dtype

    TH = _pick_tile_rows(H, row_tile)
    nR = H // TH

    # NCHW -> NHWC: channels on the 128-lane axis inside the kernel.
    x = jnp.transpose(x_nchw, (0, 2, 3, 1)).astype(compute_dtype)

    w1f4, b1, w2f4, b2 = _fold_bn(params, eps)
    w1f = w1f4.reshape(9 * C, Cout).astype(compute_dtype)     # (dy,dx,ci) K order
    w2f = w2f4.reshape(9 * Cout, Cout).astype(compute_dtype)
    b1 = b1.reshape(1, Cout).astype(jnp.float32)
    b2 = b2.reshape(1, Cout).astype(jnp.float32)

    # Input streams: main TH-row slab + four 1-row halo rows (clamped at the edges;
    # the kernel substitutes zeros there).
    spec_main = pl.BlockSpec((1, TH, W, C), lambda n, r: (n, r, 0, 0))
    spec_a2 = pl.BlockSpec((1, 1, W, C),
                           lambda n, r: (n, jnp.maximum(r * TH - 2, 0), 0, 0))
    spec_a1 = pl.BlockSpec((1, 1, W, C),
                           lambda n, r: (n, jnp.maximum(r * TH - 1, 0), 0, 0))
    spec_b1 = pl.BlockSpec((1, 1, W, C),
                           lambda n, r: (n, jnp.minimum(r * TH + TH, H - 1), 0, 0))
    spec_b2 = pl.BlockSpec((1, 1, W, C),
                           lambda n, r: (n, jnp.minimum(r * TH + TH + 1, H - 1), 0, 0))

    scratch = [pltpu.VMEM((TH + 4, W + 2, C), compute_dtype),
               pltpu.VMEM((TH + 2, W + 2, C), compute_dtype)]
    if use_im2col:
        scratch.append(pltpu.VMEM((TH + 2, W, 9 * C), compute_dtype))

    idt = jnp.dtype(compute_dtype).itemsize
    odt = jnp.dtype(out_dtype).itemsize
    scratch_bytes = ((TH + 4) * (W + 2) * C + (TH + 2) * (W + 2) * C) * idt
    if use_im2col:
        scratch_bytes += (TH + 2) * W * 9 * C * idt
    io_bytes = 2 * ((TH * W * C + 4 * W * C + 2 * 9 * C * Cout) * idt
                    + 2 * Cout * 4 + TH * W * Cout * odt)
    tmp_bytes = 6 * (TH + 2) * W * Cout * 4                    # f32 temporaries
    vmem_limit = int(min(max(2 * (scratch_bytes + io_bytes + tmp_bytes),
                             32 * 1024 * 1024), 64 * 1024 * 1024))

    flops = 4 * N * H * W * 9 * C * Cout                       # two 3x3 convs
    bytes_accessed = int(x.size * idt + N * H * W * Cout * odt
                         + (w1f.size + w2f.size) * idt + (b1.size + b2.size) * 4)

    kern = functools.partial(_basic_block_kernel, use_im2col=use_im2col)
    out_nhwc = pl.pallas_call(
        kern,
        out_shape=jax.ShapeDtypeStruct((N, H, W, Cout), out_dtype),
        grid_spec=pltpu.PrefetchScalarGridSpec(
            num_scalar_prefetch=0,
            grid=(N, nR),
            in_specs=[spec_main, spec_a2, spec_a1, spec_b1, spec_b2,
                      pl.BlockSpec((9 * C, Cout), lambda n, r: (0, 0)),
                      pl.BlockSpec((1, Cout), lambda n, r: (0, 0)),
                      pl.BlockSpec((9 * Cout, Cout), lambda n, r: (0, 0)),
                      pl.BlockSpec((1, Cout), lambda n, r: (0, 0))],
            out_specs=pl.BlockSpec((1, TH, W, Cout), lambda n, r: (n, r, 0, 0)),
            scratch_shapes=scratch),
        compiler_params=pltpu.CompilerParams(
            dimension_semantics=("parallel", "parallel"),
            vmem_limit_bytes=vmem_limit),
        cost_estimate=pl.CostEstimate(flops=flops, transcendentals=0,
                                      bytes_accessed=bytes_accessed),
    )(x, x, x, x, x, w1f, b1, w2f, b2)

    return jnp.transpose(out_nhwc, (0, 3, 1, 2))               # NHWC -> NCHW


# ----------------------------- references & test ---------------------------------

def _reference_basic_block(x_nchw, params, eps=1e-5):
    """Pure-JAX f32 reference (unfused eval-mode BN)."""
    w1, g1, be1, m1, v1, w2, g2, be2, m2, v2 = params
    dn = ('NCHW', 'OIHW', 'NCHW')

    def bn(y, g, b, m, v):
        g, b, m, v = (t[None, :, None, None] for t in (g, b, m, v))
        return (y - m) / jnp.sqrt(v + eps) * g + b

    conv = functools.partial(lax.conv_general_dilated, window_strides=(1, 1),
                             padding='SAME', dimension_numbers=dn,
                             precision=lax.Precision.HIGHEST)
    h = jnp.maximum(bn(conv(x_nchw, w1), g1, be1, m1, v1), 0.0)
    h = bn(conv(h, w2), g2, be2, m2, v2) + x_nchw
    return jnp.maximum(h, 0.0)


def _reference_basic_block_folded(x_nchw, params, eps=1e-5,
                                  compute_dtype=jnp.float32):
    """Reference matching the kernel's BN folding and cast points (for bf16)."""
    w1f, b1, w2f, b2 = _fold_bn(params, eps)
    x = jnp.transpose(x_nchw, (0, 2, 3, 1)).astype(compute_dtype)
    dn = ('NHWC', 'HWIO', 'NHWC')

    def conv(a, w):
        return lax.conv_general_dilated(a, w.astype(compute_dtype), (1, 1), 'SAME',
                                        dimension_numbers=dn,
                                        preferred_element_type=jnp.float32)

    h = jnp.maximum(conv(x, w1f) + b1, 0.0).astype(compute_dtype)
    o = jnp.maximum(conv(h, w2f) + b2 + x.astype(jnp.float32), 0.0)
    return jnp.transpose(o, (0, 3, 1, 2))


def _rand_params(key, C):
    ks = jax.random.split(key, 10)
    w1 = 0.1 * jax.random.normal(ks[0], (C, C, 3, 3), jnp.float32)   # OIHW
    w2 = 0.1 * jax.random.normal(ks[1], (C, C, 3, 3), jnp.float32)
    g1 = 1.0 + 0.1 * jax.random.normal(ks[2], (C,), jnp.float32)
    be1 = 0.1 * jax.random.normal(ks[3], (C,), jnp.float32)
    m1 = 0.1 * jax.random.normal(ks[4], (C,), jnp.float32)
    v1 = 1.0 + 0.1 * jax.random.uniform(ks[5], (C,), jnp.float32)
    g2 = 1.0 + 0.1 * jax.random.normal(ks[6], (C,), jnp.float32)
    be2 = 0.1 * jax.random.normal(ks[7], (C,), jnp.float32)
    m2 = 0.1 * jax.random.normal(ks[8], (C,), jnp.float32)
    v2 = 1.0 + 0.1 * jax.random.uniform(ks[9], (C,), jnp.float32)
    return (w1, g1, be1, m1, v1, w2, g2, be2, m2, v2)


if __name__ == "__main__":
    key = jax.random.PRNGKey(0)
    # Small shape exercising the halo'd row tiling (H=16 -> 2 row tiles), plus a
    # layer1-like channel count (C=64 -> im2col K=576).
    for (N, C, H, W) in [(2, 8, 16, 16), (2, 64, 8, 8)]:
        kx, kp, key = jax.random.split(key, 3)
        x = jax.random.normal(kx, (N, C, H, W), jnp.float32)
        params = _rand_params(kp, C)
        ref = _reference_basic_block(x, params)

        # f32 path (im2col), tight tolerance vs. the unfused reference.
        out = jax.block_until_ready(
            basic_block(x, params, compute_dtype=jnp.float32, out_dtype=jnp.float32))
        assert out.shape == (N, C, H, W) and out.dtype == jnp.float32
        err = float(jnp.max(jnp.abs(out - ref)))
        assert jnp.allclose(out, ref, atol=2e-3, rtol=2e-3), (
            f"f32/im2col ({N},{C},{H},{W}) max abs err {err}")

        # f32 path, no-col accumulation variant (v7x recommendation).
        out_acc = jax.block_until_ready(
            basic_block(x, params, compute_dtype=jnp.float32, out_dtype=jnp.float32,
                        use_im2col=False))
        err = float(jnp.max(jnp.abs(out_acc - ref)))
        assert jnp.allclose(out_acc, ref, atol=2e-3, rtol=2e-3), (
            f"f32/accumulate ({N},{C},{H},{W}) max abs err {err}")

        # Default bf16 compute path vs. a cast-point-matched bf16 reference.
        out_bf = jax.block_until_ready(basic_block(x, params))
        assert out_bf.dtype == jnp.bfloat16
        ref_bf = _reference_basic_block_folded(x, params,
                                               compute_dtype=jnp.bfloat16)
        err = float(jnp.max(jnp.abs(out_bf.astype(jnp.float32) - ref_bf)))
        assert jnp.allclose(out_bf.astype(jnp.float32), ref_bf,
                            atol=5e-2, rtol=5e-2), (
            f"bf16 ({N},{C},{H},{W}) max abs err {err}")

    print("KERNEL_OK")
</pallas_src>

<mosaic_0001>
module attributes {stable_mosaic.version = 11 : i64} {
  func.func @_basic_block_kernel(%arg0: i32, %arg1: i32, %arg2: memref<1x8x16x8xf32, #tpu.memory_space<vmem>>, %arg3: memref<1x1x16x8xf32, #tpu.memory_space<vmem>>, %arg4: memref<1x1x16x8xf32, #tpu.memory_space<vmem>>, %arg5: memref<1x1x16x8xf32, #tpu.memory_space<vmem>>, %arg6: memref<1x1x16x8xf32, #tpu.memory_space<vmem>>, %arg7: memref<72x8xf32, #tpu.memory_space<vmem>>, %arg8: memref<1x8xf32, #tpu.memory_space<vmem>>, %arg9: memref<72x8xf32, #tpu.memory_space<vmem>>, %arg10: memref<1x8xf32, #tpu.memory_space<vmem>>, %arg11: memref<1x8x16x8xf32, #tpu.memory_space<vmem>>, %arg12: memref<12x18x8xf32, #tpu.memory_space<vmem>>, %arg13: memref<10x18x8xf32, #tpu.memory_space<vmem>>, %arg14: memref<10x16x72xf32, #tpu.memory_space<vmem>>) attributes {dimension_semantics = [#tpu.dimension_semantics<parallel>, #tpu.dimension_semantics<parallel>], iteration_bounds = array<i64: 2, 2>, scalar_prefetch = 0 : i64, scratch_operands = 3 : i64, tpu.core_type = #tpu.core_type<tc>, window_params = [{transform_indices = @transform_0, window_bounds = array<i64: 1, 8, 16, 8>}, {transform_indices = @transform_1, window_bounds = array<i64: 1, 1, 16, 8>}, {transform_indices = @transform_2, window_bounds = array<i64: 1, 1, 16, 8>}, {transform_indices = @transform_3, window_bounds = array<i64: 1, 1, 16, 8>}, {transform_indices = @transform_4, window_bounds = array<i64: 1, 1, 16, 8>}, {pipeline_mode = #tpu.pipeline_mode<synchronous>, transform_indices = @transform_5, window_bounds = array<i64: 72, 8>}, {pipeline_mode = #tpu.pipeline_mode<synchronous>, transform_indices = @transform_6, window_bounds = array<i64: 1, 8>}, {pipeline_mode = #tpu.pipeline_mode<synchronous>, transform_indices = @transform_7, window_bounds = array<i64: 72, 8>}, {pipeline_mode = #tpu.pipeline_mode<synchronous>, transform_indices = @transform_8, window_bounds = array<i64: 1, 8>}, {transform_indices = @transform_9, window_bounds = array<i64: 1, 8, 16, 8>}]} {
    %c0 = arith.constant 0 : index
    %c0_0 = arith.constant 0 : index
    %c0_1 = arith.constant 0 : index
    %c0_2 = arith.constant 0 : index
    %0 = vector.load %arg2[%c0, %c0_0, %c0_1, %c0_2] : memref<1x8x16x8xf32, #tpu.memory_space<vmem>>, vector<1x8x16x8xf32>
    %1 = vector.shape_cast %0 : vector<1x8x16x8xf32> to vector<8x16x8xf32>
    %c2 = arith.constant 2 : index
    %c1 = arith.constant 1 : index
    %c0_3 = arith.constant 0 : index
    %2 = vector.load %arg12[%c2, %c1, %c0_3] : memref<12x18x8xf32, #tpu.memory_space<vmem>>, vector<8x16x8xf32>
    tpu.vector_store %arg12[%c2, %c1, %c0_3], %1 {strides = array<i32>} : memref<12x18x8xf32, #tpu.memory_space<vmem>>, vector<8x16x8xf32>,
    %c0_i32 = arith.constant 0 : i32
    %3 = arith.cmpi sgt, %arg1, %c0_i32 : i32
    %4 = arith.extui %3 : i1 to i32
    %c0_i32_4 = arith.constant 0 : i32
    %5 = arith.cmpi ne, %4, %c0_i32_4 : i32
    scf.if %5 {
      %c0_157 = arith.constant 0 : index
      %c0_158 = arith.constant 0 : index
      %c0_159 = arith.constant 0 : index
      %c0_160 = arith.constant 0 : index
      %93 = vector.load %arg3[%c0_157, %c0_158, %c0_159, %c0_160] : memref<1x1x16x8xf32, #tpu.memory_space<vmem>>, vector<1x1x16x8xf32>
      %94 = vector.shape_cast %93 : vector<1x1x16x8xf32> to vector<1x16x8xf32>
      %c0_161 = arith.constant 0 : index
      %c1_162 = arith.constant 1 : index
      %c0_163 = arith.constant 0 : index
      %95 = vector.load %arg12[%c0_161, %c1_162, %c0_163] : memref<12x18x8xf32, #tpu.memory_space<vmem>>, vector<1x16x8xf32>
      tpu.vector_store %arg12[%c0_161, %c1_162, %c0_163], %94 {strides = array<i32>} : memref<12x18x8xf32, #tpu.memory_space<vmem>>, vector<1x16x8xf32>,
      %c0_164 = arith.constant 0 : index
      %c0_165 = arith.constant 0 : index
      %c0_166 = arith.constant 0 : index
      %c0_167 = arith.constant 0 : index
      %96 = vector.load %arg4[%c0_164, %c0_165, %c0_166, %c0_167] : memref<1x1x16x8xf32, #tpu.memory_space<vmem>>, vector<1x1x16x8xf32>
      %97 = vector.shape_cast %96 : vector<1x1x16x8xf32> to vector<1x16x8xf32>
      %c1_168 = arith.constant 1 : index
      %c1_169 = arith.constant 1 : index
      %c0_170 = arith.constant 0 : index
      %98 = vector.load %arg12[%c1_168, %c1_169, %c0_170] : memref<12x18x8xf32, #tpu.memory_space<vmem>>, vector<1x16x8xf32>
      tpu.vector_store %arg12[%c1_168, %c1_169, %c0_170], %97 {strides = array<i32>} : memref<12x18x8xf32, #tpu.memory_space<vmem>>, vector<1x16x8xf32>,
    } else {
    }
    %c0_i32_5 = arith.constant 0 : i32
    %6 = arith.cmpi eq, %arg1, %c0_i32_5 : i32
    %7 = arith.extui %6 : i1 to i32
    %c0_i32_6 = arith.constant 0 : i32
    %8 = arith.cmpi ne, %7, %c0_i32_6 : i32
    scf.if %8 {
      %cst_157 = arith.constant 0.000000e+00 : f32
      %93 = vector.broadcast %cst_157 : f32 to vector<2x16x8xf32>
      %c0_158 = arith.constant 0 : index
      %c1_159 = arith.constant 1 : index
      %c0_160 = arith.constant 0 : index
      %94 = vector.load %arg12[%c0_158, %c1_159, %c0_160] : memref<12x18x8xf32, #tpu.memory_space<vmem>>, vector<2x16x8xf32>
      tpu.vector_store %arg12[%c0_158, %c1_159, %c0_160], %93 {strides = array<i32>} : memref<12x18x8xf32, #tpu.memory_space<vmem>>, vector<2x16x8xf32>,
    } else {
    }
    %c1_i32 = arith.constant 1 : i32
    %9 = arith.cmpi slt, %arg1, %c1_i32 : i32
    %10 = arith.extui %9 : i1 to i32
    %c0_i32_7 = arith.constant 0 : i32
    %11 = arith.cmpi ne, %10, %c0_i32_7 : i32
    scf.if %11 {
      %c0_157 = arith.constant 0 : index
      %c0_158 = arith.constant 0 : index
      %c0_159 = arith.constant 0 : index
      %c0_160 = arith.constant 0 : index
      %93 = vector.load %arg5[%c0_157, %c0_158, %c0_159, %c0_160] : memref<1x1x16x8xf32, #tpu.memory_space<vmem>>, vector<1x1x16x8xf32>
      %94 = vector.shape_cast %93 : vector<1x1x16x8xf32> to vector<1x16x8xf32>
      %c10 = arith.constant 10 : index
      %c1_161 = arith.constant 1 : index
      %c0_162 = arith.constant 0 : index
      %95 = vector.load %arg12[%c10, %c1_161, %c0_162] : memref<12x18x8xf32, #tpu.memory_space<vmem>>, vector<1x16x8xf32>
      tpu.vector_store %arg12[%c10, %c1_161, %c0_162], %94 {strides = array<i32>} : memref<12x18x8xf32, #tpu.memory_space<vmem>>, vector<1x16x8xf32>,
      %c0_163 = arith.constant 0 : index
      %c0_164 = arith.constant 0 : index
      %c0_165 = arith.constant 0 : index
      %c0_166 = arith.constant 0 : index
      %96 = vector.load %arg6[%c0_163, %c0_164, %c0_165, %c0_166] : memref<1x1x16x8xf32, #tpu.memory_space<vmem>>, vector<1x1x16x8xf32>
      %97 = vector.shape_cast %96 : vector<1x1x16x8xf32> to vector<1x16x8xf32>
      %c11 = arith.constant 11 : index
      %c1_167 = arith.constant 1 : index
      %c0_168 = arith.constant 0 : index
      %98 = vector.load %arg12[%c11, %c1_167, %c0_168] : memref<12x18x8xf32, #tpu.memory_space<vmem>>, vector<1x16x8xf32>
      tpu.vector_store %arg12[%c11, %c1_167, %c0_168], %97 {strides = array<i32>} : memref<12x18x8xf32, #tpu.memory_space<vmem>>, vector<1x16x8xf32>,
    } else {
    }
    %c1_i32_8 = arith.constant 1 : i32
    %12 = arith.cmpi eq, %arg1, %c1_i32_8 : i32
    %13 = arith.extui %12 : i1 to i32
    %c0_i32_9 = arith.constant 0 : i32
    %14 = arith.cmpi ne, %13, %c0_i32_9 : i32
    scf.if %14 {
      %cst_157 = arith.constant 0.000000e+00 : f32
      %93 = vector.broadcast %cst_157 : f32 to vector<2x16x8xf32>
      %c10 = arith.constant 10 : index
      %c1_158 = arith.constant 1 : index
      %c0_159 = arith.constant 0 : index
      %94 = vector.load %arg12[%c10, %c1_158, %c0_159] : memref<12x18x8xf32, #tpu.memory_space<vmem>>, vector<2x16x8xf32>
      tpu.vector_store %arg12[%c10, %c1_158, %c0_159], %93 {strides = array<i32>} : memref<12x18x8xf32, #tpu.memory_space<vmem>>, vector<2x16x8xf32>,
    } else {
    }
    %cst = arith.constant 0.000000e+00 : f32
    %15 = vector.broadcast %cst : f32 to vector<12x1x8xf32>
    %c0_10 = arith.constant 0 : index
    %c0_11 = arith.constant 0 : index
    %c0_12 = arith.constant 0 : index
    %16 = vector.load %arg12[%c0_10, %c0_11, %c0_12] : memref<12x18x8xf32, #tpu.memory_space<vmem>>, vector<12x1x8xf32>
    tpu.vector_store %arg12[%c0_10, %c0_11, %c0_12], %15 {strides = array<i32>} : memref<12x18x8xf32, #tpu.memory_space<vmem>>, vector<12x1x8xf32>,
    %cst_13 = arith.constant 0.000000e+00 : f32
    %17 = vector.broadcast %cst_13 : f32 to vector<12x1x8xf32>
    %c0_14 = arith.constant 0 : index
    %c17 = arith.constant 17 : index
    %c0_15 = arith.constant 0 : index
    %18 = vector.load %arg12[%c0_14, %c17, %c0_15] : memref<12x18x8xf32, #tpu.memory_space<vmem>>, vector<12x1x8xf32>
    tpu.vector_store %arg12[%c0_14, %c17, %c0_15], %17 {strides = array<i32>} : memref<12x18x8xf32, #tpu.memory_space<vmem>>, vector<12x1x8xf32>,
    %c0_16 = arith.constant 0 : index
    %c0_17 = arith.constant 0 : index
    %c0_18 = arith.constant 0 : index
    %19 = vector.load %arg12[%c0_16, %c0_17, %c0_18] : memref<12x18x8xf32, #tpu.memory_space<vmem>>, vector<10x16x8xf32>
    %c0_19 = arith.constant 0 : index
    %c0_20 = arith.constant 0 : index
    %c0_21 = arith.constant 0 : index
    %20 = vector.load %arg14[%c0_19, %c0_20, %c0_21] : memref<10x16x72xf32, #tpu.memory_space<vmem>>, vector<10x16x8xf32>
    tpu.vector_store %arg14[%c0_19, %c0_20, %c0_21], %19 {strides = array<i32>} : memref<10x16x72xf32, #tpu.memory_space<vmem>>, vector<10x16x8xf32>,
    %c0_22 = arith.constant 0 : index
    %c1_23 = arith.constant 1 : index
    %c0_24 = arith.constant 0 : index
    %21 = vector.load %arg12[%c0_22, %c1_23, %c0_24] : memref<12x18x8xf32, #tpu.memory_space<vmem>>, vector<10x16x8xf32>
    %c0_25 = arith.constant 0 : index
    %c0_26 = arith.constant 0 : index
    %c8 = arith.constant 8 : index
    %22 = vector.load %arg14[%c0_25, %c0_26, %c8] : memref<10x16x72xf32, #tpu.memory_space<vmem>>, vector<10x16x8xf32>
    tpu.vector_store %arg14[%c0_25, %c0_26, %c8], %21 {strides = array<i32>} : memref<10x16x72xf32, #tpu.memory_space<vmem>>, vector<10x16x8xf32>,
    %c0_27 = arith.constant 0 : index
    %c2_28 = arith.constant 2 : index
    %c0_29 = arith.constant 0 : index
    %23 = vector.load %arg12[%c0_27, %c2_28, %c0_29] : memref<12x18x8xf32, #tpu.memory_space<vmem>>, vector<10x16x8xf32>
    %c0_30 = arith.constant 0 : index
    %c0_31 = arith.constant 0 : index
    %c16 = arith.constant 16 : index
    %24 = vector.load %arg14[%c0_30, %c0_31, %c16] : memref<10x16x72xf32, #tpu.memory_space<vmem>>, vector<10x16x8xf32>
    tpu.vector_store %arg14[%c0_30, %c0_31, %c16], %23 {strides = array<i32>} : memref<10x16x72xf32, #tpu.memory_space<vmem>>, vector<10x16x8xf32>,
    %c1_32 = arith.constant 1 : index
    %c0_33 = arith.constant 0 : index
    %c0_34 = arith.constant 0 : index
    %25 = vector.load %arg12[%c1_32, %c0_33, %c0_34] : memref<12x18x8xf32, #tpu.memory_space<vmem>>, vector<10x16x8xf32>
    %c0_35 = arith.constant 0 : index
    %c0_36 = arith.constant 0 : index
    %c24 = arith.constant 24 : index
    %26 = vector.load %arg14[%c0_35, %c0_36, %c24] : memref<10x16x72xf32, #tpu.memory_space<vmem>>, vector<10x16x8xf32>
    tpu.vector_store %arg14[%c0_35, %c0_36, %c24], %25 {strides = array<i32>} : memref<10x16x72xf32, #tpu.memory_space<vmem>>, vector<10x16x8xf32>,
    %c1_37 = arith.constant 1 : index
    %c1_38 = arith.constant 1 : index
    %c0_39 = arith.constant 0 : index
    %27 = vector.load %arg12[%c1_37, %c1_38, %c0_39] : memref<12x18x8xf32, #tpu.memory_space<vmem>>, vector<10x16x8xf32>
    %c0_40 = arith.constant 0 : index
    %c0_41 = arith.constant 0 : index
    %c32 = arith.constant 32 : index
    %28 = vector.load %arg14[%c0_40, %c0_41, %c32] : memref<10x16x72xf32, #tpu.memory_space<vmem>>, vector<10x16x8xf32>
    tpu.vector_store %arg14[%c0_40, %c0_41, %c32], %27 {strides = array<i32>} : memref<10x16x72xf32, #tpu.memory_space<vmem>>, vector<10x16x8xf32>,
    %c1_42 = arith.constant 1 : index
    %c2_43 = arith.constant 2 : index
    %c0_44 = arith.constant 0 : index
    %29 = vector.load %arg12[%c1_42, %c2_43, %c0_44] : memref<12x18x8xf32, #tpu.memory_space<vmem>>, vector<10x16x8xf32>
    %c0_45 = arith.constant 0 : index
    %c0_46 = arith.constant 0 : index
    %c40 = arith.constant 40 : index
    %30 = vector.load %arg14[%c0_45, %c0_46, %c40] : memref<10x16x72xf32, #tpu.memory_space<vmem>>, vector<10x16x8xf32>
    tpu.vector_store %arg14[%c0_45, %c0_46, %c40], %29 {strides = array<i32>} : memref<10x16x72xf32, #tpu.memory_space<vmem>>, vector<10x16x8xf32>,
    %c2_47 = arith.constant 2 : index
    %c0_48 = arith.constant 0 : index
    %c0_49 = arith.constant 0 : index
    %31 = vector.load %arg12[%c2_47, %c0_48, %c0_49] : memref<12x18x8xf32, #tpu.memory_space<vmem>>, vector<10x16x8xf32>
    %c0_50 = arith.constant 0 : index
    %c0_51 = arith.constant 0 : index
    %c48 = arith.constant 48 : index
    %32 = vector.load %arg14[%c0_50, %c0_51, %c48] : memref<10x16x72xf32, #tpu.memory_space<vmem>>, vector<10x16x8xf32>
    tpu.vector_store %arg14[%c0_50, %c0_51, %c48], %31 {strides = array<i32>} : memref<10x16x72xf32, #tpu.memory_space<vmem>>, vector<10x16x8xf32>,
    %c2_52 = arith.constant 2 : index
    %c1_53 = arith.constant 1 : index
    %c0_54 = arith.constant 0 : index
    %33 = vector.load %arg12[%c2_52, %c1_53, %c0_54] : memref<12x18x8xf32, #tpu.memory_space<vmem>>, vector<10x16x8xf32>
    %c0_55 = arith.constant 0 : index
    %c0_56 = arith.constant 0 : index
    %c56 = arith.constant 56 : index
    %34 = vector.load %arg14[%c0_55, %c0_56, %c56] : memref<10x16x72xf32, #tpu.memory_space<vmem>>, vector<10x16x8xf32>
    tpu.vector_store %arg14[%c0_55, %c0_56, %c56], %33 {strides = array<i32>} : memref<10x16x72xf32, #tpu.memory_space<vmem>>, vector<10x16x8xf32>,
    %c2_57 = arith.constant 2 : index
    %c2_58 = arith.constant 2 : index
    %c0_59 = arith.constant 0 : index
    %35 = vector.load %arg12[%c2_57, %c2_58, %c0_59] : memref<12x18x8xf32, #tpu.memory_space<vmem>>, vector<10x16x8xf32>
    %c0_60 = arith.constant 0 : index
    %c0_61 = arith.constant 0 : index
    %c64 = arith.constant 64 : index
    %36 = vector.load %arg14[%c0_60, %c0_61, %c64] : memref<10x16x72xf32, #tpu.memory_space<vmem>>, vector<10x16x8xf32>
    tpu.vector_store %arg14[%c0_60, %c0_61, %c64], %35 {strides = array<i32>} : memref<10x16x72xf32, #tpu.memory_space<vmem>>, vector<10x16x8xf32>,
    %c0_62 = arith.constant 0 : index
    %c0_63 = arith.constant 0 : index
    %c0_64 = arith.constant 0 : index
    %37 = vector.load %arg14[%c0_62, %c0_63, %c0_64] : memref<10x16x72xf32, #tpu.memory_space<vmem>>, vector<10x16x72xf32>
    %38 = vector.shape_cast %37 : vector<10x16x72xf32> to vector<160x72xf32>
    %c0_65 = arith.constant 0 : index
    %c0_66 = arith.constant 0 : index
    %39 = vector.load %arg7[%c0_65, %c0_66] : memref<72x8xf32, #tpu.memory_space<vmem>>, vector<72x8xf32>
    %cst_67 = arith.constant dense<0.000000e+00> : vector<160x8xf32>
    %40 = tpu.matmul %38, %39, %cst_67 {dimension_numbers = #tpu.dot_dimension_numbers<[1], [0], [0], [1], [0, 0, 1, 1], [], []>} : vector<160x72xf32>, vector<72x8xf32>, vector<160x8xf32> -> vector<160x8xf32>
    %c0_68 = arith.constant 0 : index
    %c0_69 = arith.constant 0 : index
    %41 = vector.load %arg8[%c0_68, %c0_69] : memref<1x8xf32, #tpu.memory_space<vmem>>, vector<1x8xf32>
    %42 = vector.broadcast %41 : vector<1x8xf32> to vector<160x8xf32>
    %43 = arith.addf %40, %42 : vector<160x8xf32>
    %cst_70 = arith.constant 0.000000e+00 : f32
    %44 = vector.broadcast %cst_70 : f32 to vector<160x8xf32>
    %45 = arith.maximumf %43, %44 : vector<160x8xf32>
    %46 = vector.shape_cast %45 : vector<160x8xf32> to vector<10x16x8xf32>
    %c0_71 = arith.constant 0 : index
    %c1_72 = arith.constant 1 : index
    %c0_73 = arith.constant 0 : index
    %47 = vector.load %arg13[%c0_71, %c1_72, %c0_73] : memref<10x18x8xf32, #tpu.memory_space<vmem>>, vector<10x16x8xf32>
    tpu.vector_store %arg13[%c0_71, %c1_72, %c0_73], %46 {strides = array<i32>} : memref<10x18x8xf32, #tpu.memory_space<vmem>>, vector<10x16x8xf32>,
    %c0_i32_74 = arith.constant 0 : i32
    %48 = arith.cmpi eq, %arg1, %c0_i32_74 : i32
    %49 = arith.extui %48 : i1 to i32
    %c0_i32_75 = arith.constant 0 : i32
    %50 = arith.cmpi ne, %49, %c0_i32_75 : i32
    scf.if %50 {
      %cst_157 = arith.constant 0.000000e+00 : f32
      %93 = vector.broadcast %cst_157 : f32 to vector<1x16x8xf32>
      %c0_158 = arith.constant 0 : index
      %c1_159 = arith.constant 1 : index
      %c0_160 = arith.constant 0 : index
      %94 = vector.load %arg13[%c0_158, %c1_159, %c0_160] : memref<10x18x8xf32, #tpu.memory_space<vmem>>, vector<1x16x8xf32>
      tpu.vector_store %arg13[%c0_158, %c1_159, %c0_160], %93 {strides = array<i32>} : memref<10x18x8xf32, #tpu.memory_space<vmem>>, vector<1x16x8xf32>,
    } else {
    }
    %c1_i32_76 = arith.constant 1 : i32
    %51 = arith.cmpi eq, %arg1, %c1_i32_76 : i32
    %52 = arith.extui %51 : i1 to i32
    %c0_i32_77 = arith.constant 0 : i32
    %53 = arith.cmpi ne, %52, %c0_i32_77 : i32
    scf.if %53 {
      %cst_157 = arith.constant 0.000000e+00 : f32
      %93 = vector.broadcast %cst_157 : f32 to vector<1x16x8xf32>
      %c9 = arith.constant 9 : index
      %c1_158 = arith.constant 1 : index
      %c0_159 = arith.constant 0 : index
      %94 = vector.load %arg13[%c9, %c1_158, %c0_159] : memref<10x18x8xf32, #tpu.memory_space<vmem>>, vector<1x16x8xf32>
      tpu.vector_store %arg13[%c9, %c1_158, %c0_159], %93 {strides = array<i32>} : memref<10x18x8xf32, #tpu.memory_space<vmem>>, vector<1x16x8xf32>,
    } else {
    }
    %cst_78 = arith.constant 0.000000e+00 : f32
    %54 = vector.broadcast %cst_78 : f32 to vector<10x1x8xf32>
    %c0_79 = arith.constant 0 : index
    %c0_80 = arith.constant 0 : index
    %c0_81 = arith.constant 0 : index
    %55 = vector.load %arg13[%c0_79, %c0_80, %c0_81] : memref<10x18x8xf32, #tpu.memory_space<vmem>>, vector<10x1x8xf32>
    tpu.vector_store %arg13[%c0_79, %c0_80, %c0_81], %54 {strides = array<i32>} : memref<10x18x8xf32, #tpu.memory_space<vmem>>, vector<10x1x8xf32>,
    %cst_82 = arith.constant 0.000000e+00 : f32
    %56 = vector.broadcast %cst_82 : f32 to vector<10x1x8xf32>
    %c0_83 = arith.constant 0 : index
    %c17_84 = arith.constant 17 : index
    %c0_85 = arith.constant 0 : index
    %57 = vector.load %arg13[%c0_83, %c17_84, %c0_85] : memref<10x18x8xf32, #tpu.memory_space<vmem>>, vector<10x1x8xf32>
    tpu.vector_store %arg13[%c0_83, %c17_84, %c0_85], %56 {strides = array<i32>} : memref<10x18x8xf32, #tpu.memory_space<vmem>>, vector<10x1x8xf32>,
    %c0_86 = arith.constant 0 : index
    %c0_87 = arith.constant 0 : index
    %c0_88 = arith.constant 0 : index
    %58 = vector.load %arg13[%c0_86, %c0_87, %c0_88] : memref<10x18x8xf32, #tpu.memory_space<vmem>>, vector<8x16x8xf32>
    %c0_89 = arith.constant 0 : index
    %c0_90 = arith.constant 0 : index
    %c0_91 = arith.constant 0 : index
    %59 = vector.load %arg14[%c0_89, %c0_90, %c0_91] : memref<10x16x72xf32, #tpu.memory_space<vmem>>, vector<8x16x8xf32>
    tpu.vector_store %arg14[%c0_89, %c0_90, %c0_91], %58 {strides = array<i32>} : memref<10x16x72xf32, #tpu.memory_space<vmem>>, vector<8x16x8xf32>,
    %c0_92 = arith.constant 0 : index
    %c1_93 = arith.constant 1 : index
    %c0_94 = arith.constant 0 : index
    %60 = vector.load %arg13[%c0_92, %c1_93, %c0_94] : memref<10x18x8xf32, #tpu.memory_space<vmem>>, vector<8x16x8xf32>
    %c0_95 = arith.constant 0 : index
    %c0_96 = arith.constant 0 : index
    %c8_97 = arith.constant 8 : index
    %61 = vector.load %arg14[%c0_95, %c0_96, %c8_97] : memref<10x16x72xf32, #tpu.memory_space<vmem>>, vector<8x16x8xf32>
    tpu.vector_store %arg14[%c0_95, %c0_96, %c8_97], %60 {strides = array<i32>} : memref<10x16x72xf32, #tpu.memory_space<vmem>>, vector<8x16x8xf32>,
    %c0_98 = arith.constant 0 : index
    %c2_99 = arith.constant 2 : index
    %c0_100 = arith.constant 0 : index
    %62 = vector.load %arg13[%c0_98, %c2_99, %c0_100] : memref<10x18x8xf32, #tpu.memory_space<vmem>>, vector<8x16x8xf32>
    %c0_101 = arith.constant 0 : index
    %c0_102 = arith.constant 0 : index
    %c16_103 = arith.constant 16 : index
    %63 = vector.load %arg14[%c0_101, %c0_102, %c16_103] : memref<10x16x72xf32, #tpu.memory_space<vmem>>, vector<8x16x8xf32>
    tpu.vector_store %arg14[%c0_101, %c0_102, %c16_103], %62 {strides = array<i32>} : memref<10x16x72xf32, #tpu.memory_space<vmem>>, vector<8x16x8xf32>,
    %c1_104 = arith.constant 1 : index
    %c0_105 = arith.constant 0 : index
    %c0_106 = arith.constant 0 : index
    %64 = vector.load %arg13[%c1_104, %c0_105, %c0_106] : memref<10x18x8xf32, #tpu.memory_space<vmem>>, vector<8x16x8xf32>
    %c0_107 = arith.constant 0 : index
    %c0_108 = arith.constant 0 : index
    %c24_109 = arith.constant 24 : index
    %65 = vector.load %arg14[%c0_107, %c0_108, %c24_109] : memref<10x16x72xf32, #tpu.memory_space<vmem>>, vector<8x16x8xf32>
    tpu.vector_store %arg14[%c0_107, %c0_108, %c24_109], %64 {strides = array<i32>} : memref<10x16x72xf32, #tpu.memory_space<vmem>>, vector<8x16x8xf32>,
    %c1_110 = arith.constant 1 : index
    %c1_111 = arith.constant 1 : index
    %c0_112 = arith.constant 0 : index
    %66 = vector.load %arg13[%c1_110, %c1_111, %c0_112] : memref<10x18x8xf32, #tpu.memory_space<vmem>>, vector<8x16x8xf32>
    %c0_113 = arith.constant 0 : index
    %c0_114 = arith.constant 0 : index
    %c32_115 = arith.constant 32 : index
    %67 = vector.load %arg14[%c0_113, %c0_114, %c32_115] : memref<10x16x72xf32, #tpu.memory_space<vmem>>, vector<8x16x8xf32>
    tpu.vector_store %arg14[%c0_113, %c0_114, %c32_115], %66 {strides = array<i32>} : memref<10x16x72xf32, #tpu.memory_space<vmem>>, vector<8x16x8xf32>,
    %c1_116 = arith.constant 1 : index
    %c2_117 = arith.constant 2 : index
    %c0_118 = arith.constant 0 : index
    %68 = vector.load %arg13[%c1_116, %c2_117, %c0_118] : memref<10x18x8xf32, #tpu.memory_space<vmem>>, vector<8x16x8xf32>
    %c0_119 = arith.constant 0 : index
    %c0_120 = arith.constant 0 : index
    %c40_121 = arith.constant 40 : index
    %69 = vector.load %arg14[%c0_119, %c0_120, %c40_121] : memref<10x16x72xf32, #tpu.memory_space<vmem>>, vector<8x16x8xf32>
    tpu.vector_store %arg14[%c0_119, %c0_120, %c40_121], %68 {strides = array<i32>} : memref<10x16x72xf32, #tpu.memory_space<vmem>>, vector<8x16x8xf32>,
    %c2_122 = arith.constant 2 : index
    %c0_123 = arith.constant 0 : index
    %c0_124 = arith.constant 0 : index
    %70 = vector.load %arg13[%c2_122, %c0_123, %c0_124] : memref<10x18x8xf32, #tpu.memory_space<vmem>>, vector<8x16x8xf32>
    %c0_125 = arith.constant 0 : index
    %c0_126 = arith.constant 0 : index
    %c48_127 = arith.constant 48 : index
    %71 = vector.load %arg14[%c0_125, %c0_126, %c48_127] : memref<10x16x72xf32, #tpu.memory_space<vmem>>, vector<8x16x8xf32>
    tpu.vector_store %arg14[%c0_125, %c0_126, %c48_127], %70 {strides = array<i32>} : memref<10x16x72xf32, #tpu.memory_space<vmem>>, vector<8x16x8xf32>,
    %c2_128 = arith.constant 2 : index
    %c1_129 = arith.constant 1 : index
    %c0_130 = arith.constant 0 : index
    %72 = vector.load %arg13[%c2_128, %c1_129, %c0_130] : memref<10x18x8xf32, #tpu.memory_space<vmem>>, vector<8x16x8xf32>
    %c0_131 = arith.constant 0 : index
    %c0_132 = arith.constant 0 : index
    %c56_133 = arith.constant 56 : index
    %73 = vector.load %arg14[%c0_131, %c0_132, %c56_133] : memref<10x16x72xf32, #tpu.memory_space<vmem>>, vector<8x16x8xf32>
    tpu.vector_store %arg14[%c0_131, %c0_132, %c56_133], %72 {strides = array<i32>} : memref<10x16x72xf32, #tpu.memory_space<vmem>>, vector<8x16x8xf32>,
    %c2_134 = arith.constant 2 : index
    %c2_135 = arith.constant 2 : index
    %c0_136 = arith.constant 0 : index
    %74 = vector.load %arg13[%c2_134, %c2_135, %c0_136] : memref<10x18x8xf32, #tpu.memory_space<vmem>>, vector<8x16x8xf32>
    %c0_137 = arith.constant 0 : index
    %c0_138 = arith.constant 0 : index
    %c64_139 = arith.constant 64 : index
    %75 = vector.load %arg14[%c0_137, %c0_138, %c64_139] : memref<10x16x72xf32, #tpu.memory_space<vmem>>, vector<8x16x8xf32>
    tpu.vector_store %arg14[%c0_137, %c0_138, %c64_139], %74 {strides = array<i32>} : memref<10x16x72xf32, #tpu.memory_space<vmem>>, vector<8x16x8xf32>,
    %c0_140 = arith.constant 0 : index
    %c0_141 = arith.constant 0 : index
    %c0_142 = arith.constant 0 : index
    %76 = vector.load %arg14[%c0_140, %c0_141, %c0_142] : memref<10x16x72xf32, #tpu.memory_space<vmem>>, vector<8x16x72xf32>
    %77 = vector.shape_cast %76 : vector<8x16x72xf32> to vector<128x72xf32>
    %c0_143 = arith.constant 0 : index
    %c0_144 = arith.constant 0 : index
    %78 = vector.load %arg9[%c0_143, %c0_144] : memref<72x8xf32, #tpu.memory_space<vmem>>, vector<72x8xf32>
    %cst_145 = arith.constant dense<0.000000e+00> : vector<128x8xf32>
    %79 = tpu.matmul %77, %78, %cst_145 {dimension_numbers = #tpu.dot_dimension_numbers<[1], [0], [0], [1], [0, 0, 1, 1], [], []>} : vector<128x72xf32>, vector<72x8xf32>, vector<128x8xf32> -> vector<128x8xf32>
    %c0_146 = arith.constant 0 : index
    %c0_147 = arith.constant 0 : index
    %80 = vector.load %arg10[%c0_146, %c0_147] : memref<1x8xf32, #tpu.memory_space<vmem>>, vector<1x8xf32>
    %81 = vector.broadcast %80 : vector<1x8xf32> to vector<128x8xf32>
    %82 = arith.addf %79, %81 : vector<128x8xf32>
    %c0_148 = arith.constant 0 : index
    %c0_149 = arith.constant 0 : index
    %c0_150 = arith.constant 0 : index
    %c0_151 = arith.constant 0 : index
    %83 = vector.load %arg2[%c0_148, %c0_149, %c0_150, %c0_151] : memref<1x8x16x8xf32, #tpu.memory_space<vmem>>, vector<1x8x16x8xf32>
    %84 = vector.shape_cast %83 : vector<1x8x16x8xf32> to vector<8x16x8xf32>
    %85 = vector.shape_cast %84 : vector<8x16x8xf32> to vector<128x8xf32>
    %86 = arith.addf %82, %85 : vector<128x8xf32>
    %cst_152 = arith.constant 0.000000e+00 : f32
    %87 = vector.broadcast %cst_152 : f32 to vector<128x8xf32>
    %88 = arith.maximumf %86, %87 : vector<128x8xf32>
    %89 = vector.shape_cast %88 : vector<128x8xf32> to vector<8x16x8xf32>
    %c0_153 = arith.constant 0 : index
    %c0_154 = arith.constant 0 : index
    %c0_155 = arith.constant 0 : index
    %c0_156 = arith.constant 0 : index
    %90 = vector.load %arg11[%c0_153, %c0_154, %c0_155, %c0_156] : memref<1x8x16x8xf32, #tpu.memory_space<vmem>>, vector<1x8x16x8xf32>
    %91 = vector.shape_cast %90 : vector<1x8x16x8xf32> to vector<8x16x8xf32>
    %92 = vector.shape_cast %89 : vector<8x16x8xf32> to vector<1x8x16x8xf32>
    tpu.vector_store %arg11[%c0_153, %c0_154, %c0_155, %c0_156], %92 {strides = array<i32>} : memref<1x8x16x8xf32, #tpu.memory_space<vmem>>, vector<1x8x16x8xf32>,
    return
  }
  func.func @transform_0(%arg0: i32, %arg1: i32) -> (i32, i32, i32, i32) {
    %c0_i32 = arith.constant 0 : i32
    %c0_i32_0 = arith.constant 0 : i32
    %c0_i32_1 = arith.constant 0 : i32
    return %arg0, %arg1, %c0_i32, %c0_i32_0 : i32, i32, i32, i32
  }
  func.func @transform_1(%arg0: i32, %arg1: i32) -> (i32, i32, i32, i32) {
    %c8_i32 = arith.constant 8 : i32
    %0 = arith.muli %arg1, %c8_i32 : i32
    %c2_i32 = arith.constant 2 : i32
    %1 = arith.subi %0, %c2_i32 : i32
    %c0_i32 = arith.constant 0 : i32
    %2 = arith.maxsi %1, %c0_i32 : i32
    %c0_i32_0 = arith.constant 0 : i32
    %c0_i32_1 = arith.constant 0 : i32
    %c0_i32_2 = arith.constant 0 : i32
    return %arg0, %2, %c0_i32_0, %c0_i32_1 : i32, i32, i32, i32
  }
  func.func @transform_2(%arg0: i32, %arg1: i32) -> (i32, i32, i32, i32) {
    %c8_i32 = arith.constant 8 : i32
    %0 = arith.muli %arg1, %c8_i32 : i32
    %c1_i32 = arith.constant 1 : i32
    %1 = arith.subi %0, %c1_i32 : i32
    %c0_i32 = arith.constant 0 : i32
    %2 = arith.maxsi %1, %c0_i32 : i32
    %c0_i32_0 = arith.constant 0 : i32
    %c0_i32_1 = arith.constant 0 : i32
    %c0_i32_2 = arith.constant 0 : i32
    return %arg0, %2, %c0_i32_0, %c0_i32_1 : i32, i32, i32, i32
  }
  func.func @transform_3(%arg0: i32, %arg1: i32) -> (i32, i32, i32, i32) {
    %c8_i32 = arith.constant 8 : i32
    %0 = arith.muli %arg1, %c8_i32 : i32
    %c8_i32_0 = arith.constant 8 : i32
    %1 = arith.addi %0, %c8_i32_0 : i32
    %c15_i32 = arith.constant 15 : i32
    %2 = arith.minsi %1, %c15_i32 : i32
    %c0_i32 = arith.constant 0 : i32
    %c0_i32_1 = arith.constant 0 : i32
    %c0_i32_2 = arith.constant 0 : i32
    return %arg0, %2, %c0_i32, %c0_i32_1 : i32, i32, i32, i32
  }
  func.func @transform_4(%arg0: i32, %arg1: i32) -> (i32, i32, i32, i32) {
    %c8_i32 = arith.constant 8 : i32
    %0 = arith.muli %arg1, %c8_i32 : i32
    %c8_i32_0 = arith.constant 8 : i32
    %1 = arith.addi %0, %c8_i32_0 : i32
    %c1_i32 = arith.constant 1 : i32
    %2 = arith.addi %1, %c1_i32 : i32
    %c15_i32 = arith.constant 15 : i32
    %3 = arith.minsi %2, %c15_i32 : i32
    %c0_i32 = arith.constant 0 : i32
    %c0_i32_1 = arith.constant 0 : i32
    %c0_i32_2 = arith.constant 0 : i32
    return %arg0, %3, %c0_i32, %c0_i32_1 : i32, i32, i32, i32
  }
  func.func @transform_5(%arg0: i32, %arg1: i32) -> (i32, i32) {
    %c0_i32 = arith.constant 0 : i32
    %c0_i32_0 = arith.constant 0 : i32
    %c0_i32_1 = arith.constant 0 : i32
    return %c0_i32, %c0_i32_0 : i32, i32
  }
  func.func @transform_6(%arg0: i32, %arg1: i32) -> (i32, i32) {
    %c0_i32 = arith.constant 0 : i32
    %c0_i32_0 = arith.constant 0 : i32
    %c0_i32_1 = arith.constant 0 : i32
    return %c0_i32, %c0_i32_0 : i32, i32
  }
  func.func @transform_7(%arg0: i32, %arg1: i32) -> (i32, i32) {
    %c0_i32 = arith.constant 0 : i32
    %c0_i32_0 = arith.constant 0 : i32
    %c0_i32_1 = arith.constant 0 : i32
    return %c0_i32, %c0_i32_0 : i32, i32
  }
  func.func @transform_8(%arg0: i32, %arg1: i32) -> (i32, i32) {
    %c0_i32 = arith.constant 0 : i32
    %c0_i32_0 = arith.constant 0 : i32
    %c0_i32_1 = arith.constant 0 : i32
    return %c0_i32, %c0_i32_0 : i32, i32
  }
  func.func @transform_9(%arg0: i32, %arg1: i32) -> (i32, i32, i32, i32) {
    %c0_i32 = arith.constant 0 : i32
    %c0_i32_0 = arith.constant 0 : i32
    %c0_i32_1 = arith.constant 0 : i32
    return %arg0, %arg1, %c0_i32, %c0_i32_0 : i32, i32, i32, i32
  }
}

</mosaic_0001>

<bundles_post_ra>
// kernel: tpu_custom_call.1
= control target key start
LH: loop header
LB: loop body
LE: loop exit
PB: predicated region body
PF: predicated region fallthrough
CT: control target
= control target key end

     0   :  { %s3753_s30 = smov 0   ;;  %s3755_s10 = smov 0   ;;  %s4958_s0 = inlined_call_operand.vmem [shape: f32[2,16,16,8], index: 0, kind: input, shape index: {}]   ;;  %s4959_s1 = inlined_call_operand.vmem [shape: f32[2,16,16,8], index: 1, kind: input, shape index: {}]   ;;  %s4960_s2 = inlined_call_operand.vmem [shape: f32[2,16,16,8], index: 2, kind: input, shape index: {}]   ;;  %s4961_s3 = inlined_call_operand.vmem [shape: f32[2,16,16,8], index: 3, kind: input, shape index: {}]   ;;  %s4962_s4 = inlined_call_operand.vmem [shape: f32[2,16,16,8], index: 4, kind: input, shape index: {}]   ;;  %s4963_s5 = inlined_call_operand.vmem [shape: f32[72,8], index: 5, kind: input, shape index: {}]   ;;  %s4964_s6 = inlined_call_operand.vmem [shape: f32[1,8], index: 6, kind: input, shape index: {}]   ;;  %s4965_s7 = inlined_call_operand.vmem [shape: f32[72,8], index: 7, kind: input, shape index: {}]   ;;  %s4966_s8 = inlined_call_operand.vmem [shape: f32[1,8], index: 8, kind: input, shape index: {}]   ;;  %s4967_s9 = inlined_call_operand.vmem [shape: f32[2,16,16,8], index: 9, kind: output, shape index: {}]  }
   0x1   :  { %4971 = sst [smem:[#allocation9_spill]] %s4958_s0  ;;  %s3757_s11 = smov 0  }
   0x2   :  { %4972 = sst [smem:[#allocation10_spill]] %s4959_s1  ;;  %s3759_s12 = smov 0  }
   0x3   :  { %s3761_s13 = smov 0  }
   0x4 LB: > { %4973 = sst [smem:[#allocation5_spill]] %s3680_s11  ;;  %s28_s14 = sadd.s32 1, %s3680_s11  ;;  %s3688_s13 = sphi %s3761_s13, %s19_s13   ;;  %s3684_s12 = sphi %s3759_s12, %s4983_s12   ;;  %s3680_s11 = sphi %s3757_s11, %s4982_s11   ;;  %s3676_s10 = sphi %s3755_s10, %s4981_s10   ;;  %s3672_s30 = sphi %s3753_s30, %s4980_s30  }
   0x5   : > { %4974 = sst [smem:[#allocation6_spill]] %s3684_s12  ;;  %s31_s15 = sadd.s32 1, %s3684_s12 }
   0x6   : > { %p29_p0 = scmp.ge.s32.totalorder %s28_s14, 2  ;;  %p3360_p1 = scmp.ge.s32.totalorder %s3688_s13, 1 }
   0x7   : > { %p437_p2 = scmp.lt.s32.totalorder %s3688_s13, 5 }
   0x8   : > { %s4985_s14 = smov (%p29_p0, %s28_s14), 0  ;;  %s4987_s15 = smov (!%p29_p0, %s31_s15), %s3684_s12 }
   0x9   : > { %4975 = sst [smem:[#allocation7_spill]] %s4985_s14  ;;  %p438_p3 = pnand %p3360_p1, %p437_p2 }
   0xa   : > { %p33_p4 = scmp.ge.s32.totalorder %s4987_s15, 2  ;;  %s3786_s16 = sshll.u32 (!%p438_p3), %s3672_s30, 3 }
   0xb   : > { %441 = sbr.rel (%p438_p3) target bundleno = 1307 (0x51b), region = 56  ;;  %p536_p5 = scmp.lt.s32.totalorder (!%p438_p3), %s3676_s10, 1 }
   0xc   : > { %s4989_s15 = smov (%p33_p4, %s4987_s15), 0  ;;  %p538_p6 = scmp.lt.s32.totalorder (!%p438_p3), %s3786_s16, 15 }
   0xd   : > { %4976 = sst [smem:[#allocation8_spill]] %s4989_s15  ;;  %s3366_s17 = sadd.s32 (!%p438_p3), 4294967294, %s3786_s16 }
   0xe   : > { %p548_p7 = scmp.gt.s32.totalorder (!%p438_p3), %s3366_s17, 0  ;;  %p3367_p8 = scmp.lt.s32.totalorder (!%p438_p3), %s3366_s17, 15 }
   0xf   : > { %s3376_s22 = sadd.s32 (!%p438_p3), 4294967295, %s3786_s16  ;;  %s4977_s0 = sld [smem:[#allocation9_spill]] (!%p438_p3) }
  0x10   : > { %s4991_s10 = smov (!%p536_p5, %s3676_s10), 1  ;;  %p565_p9 = scmp.gt.s32.totalorder %s3376_s22, 0  ;;  %vm642_vm0 = vcmask 64512  }
  0x11   : > { %s539_s18 = scalar_select %p538_p6, %s3786_s16, 15 }
  0x12   : > { %s3791_s19 = sshll.u32 %s4991_s10, 5  ;;  %p3377_p10 = scmp.lt.s32.totalorder %s3376_s22, 15 }
  0x13   : > { %s3362_s20 = sshll.u32 %s539_s18, 1  ;;  %s581_s10 = sadd.s32 8, %s3786_s16 }
  0x14   : > { %s3794_s21 = sadd.s32 %s3791_s19, %s3362_s20  ;;  %s4978_s1 = sld [smem:[#allocation10_spill]] }
  0x15   : > { %s4968_s23 = sshll.u32 %s3794_s21, 3  ;;  %p582_p11 = scmp.lt.s32.totalorder %s581_s10, 15 }
  0x16   : > { %s3803_s26 = scalar_lea.vmem %s4977_s0, %s4968_s23  ;;  %s598_s15 = sadd.s32 9, %s3786_s16 }
  0x17   : > { %s549_s27 = scalar_select %p548_p7, %s3366_s17, 0  ;;  %v625_v0 = vld [vmem:[%s3803_s26] sm:$0xff]  ;;  %v626_v1 = vld [vmem:[%s3803_s26 + $0x8] sm:$0xff]  ;;  %v627_v2 = vld [vmem:[%s3803_s26 + $0x10] sm:$0xff] }
  0x18   : > { %s566_s28 = scalar_select %p565_p9, %s3376_s22, 0  ;;  %643 = vst.msk [vmem:[#allocation2 + $0x31] sm:$0xff] %vm642_vm0, %v625_v0  ;;  %644 = vst.msk [vmem:[#allocation2 + $0x39] sm:$0xff] %vm642_vm0, %v626_v1  ;;  %v628_v3 = vld [vmem:[%s3803_s26 + $0x18] sm:$0xff]  ;;  %v629_v4 = vld [vmem:[%s3803_s26 + $0x20] sm:$0xff] }
  0x19   : > { %645 = vst.msk [vmem:[#allocation2 + $0x49] sm:$0xff] %vm642_vm0, %v627_v2  ;;  %v630_v5 = vld [vmem:[%s3803_s26 + $0x28] sm:$0xff]  ;;  %s4993_s27 = smov (!%p3367_p8, %s549_s27), 15  ;;  %646 = vst.msk [vmem:[#allocation2 + $0x51] sm:$0xff] %vm642_vm0, %v628_v3  ;;  %v631_v6 = vld [vmem:[%s3803_s26 + $0x30] sm:$0xff]  ;;  %s4979_s14 = sshll.u32 %s3794_s21, 3 }
  0x1a   : > { %647 = vst.msk [vmem:[#allocation2 + $0x61] sm:$0xff] %vm642_vm0, %v629_v4  ;;  %648 = vst.msk [vmem:[#allocation2 + $0x69] sm:$0xff] %vm642_vm0, %v630_v5  ;;  %v632_v7 = vld [vmem:[%s3803_s26 + $0x38] sm:$0xff]  ;;  %v633_v8 = vld [vmem:[%s3803_s26 + $0x40] sm:$0xff]  ;;  %s4995_s28 = smov (!%p3377_p10, %s566_s28), 15  ;;  %s3372_s29 = sshll.u32 %s4993_s27, 1 }
  0x1b   : > { %649 = vst.msk [vmem:[#allocation2 + $0x79] sm:$0xff] %vm642_vm0, %v631_v6  ;;  %650 = vst.msk [vmem:[#allocation2 + $0x81] sm:$0xff] %vm642_vm0, %v632_v7  ;;  %v634_v9 = vld [vmem:[%s3803_s26 + $0x48] sm:$0xff]  ;;  %v635_v10 = vld [vmem:[%s3803_s26 + $0x50] sm:$0xff]  ;;  %s556_s17 = sadd.s32 %s3372_s29, %s3791_s19  ;;  %s3382_s18 = sshll.u32 %s4995_s28, 1 }
  0x1c   : > { %651 = vst.msk [vmem:[#allocation2 + $0x91] sm:$0xff] %vm642_vm0, %v633_v8  ;;  %v636_v11 = vld [vmem:[%s3803_s26 + $0x58] sm:$0xff]  ;;  %652 = vst.msk [vmem:[#allocation2 + $0x99] sm:$0xff] %vm642_vm0, %v634_v9  ;;  %v637_v12 = vld [vmem:[%s3803_s26 + $0x60] sm:$0xff]  ;;  %s3374_s20 = sshll.u32 %s556_s17, 3  ;;  %s573_s22 = sadd.s32 %s3382_s18, %s3791_s19 }
  0x1d   : > { %653 = vst.msk [vmem:[#allocation2 + $0xa9] sm:$0xff] %vm642_vm0, %v635_v10  ;;  %654 = vst.msk [vmem:[#allocation2 + $0xb1] sm:$0xff] %vm642_vm0, %v636_v11  ;;  %v638_v13 = vld [vmem:[%s3803_s26 + $0x68] sm:$0xff]  ;;  %v639_v14 = vld [vmem:[%s3803_s26 + $0x70] sm:$0xff]  ;;  %s558_s27 = scalar_lea.vmem %s4978_s1, %s3374_s20  ;;  %s3384_s23 = sshll.u32 %s573_s22, 3 }
  0x1e   : > { %655 = vst.msk [vmem:[#allocation2 + $0xc1] sm:$0xff] %vm642_vm0, %v637_v12  ;;  %656 = vst.msk [vmem:[#allocation2 + $0xc9] sm:$0xff] %vm642_vm0, %v638_v13  ;;  %v640_v15 = vld [vmem:[%s3803_s26 + $0x78] sm:$0xff]  ;;  %s575_s0 = scalar_lea.vmem %s4960_s2, %s3384_s23  ;;  %s3854_s17 = scalar_lea.vmem %s4967_s9, %s4979_s14 }
  0x1f   : > { %657 = vst.msk [vmem:[#allocation2 + $0xd9] sm:$0xff] %vm642_vm0, %v639_v14  ;;  %658 = vst.msk [vmem:[#allocation2 + $0xe1] sm:$0xff] %vm642_vm0, %v640_v15  ;;  %s4997_s10 = smov (!%p582_p11, %s581_s10), 15  ;;  %p599_p12 = scmp.lt.s32.totalorder %s598_s15, 15 }
  0x20   : > { %s4999_s10 = smov (!%p582_p11, %s4997_s10), 15  ;;  %p3403_p13 = scmp.le.s32.totalorder %s3672_s30, 0 }
  0x21   : > { %s5001_s15 = smov (!%p599_p12, %s598_s15), 15  ;;  %s3389_s18 = sshll.u32 %s4999_s10, 1 }
  0x22   : > { %s590_s20 = sadd.s32 %s3389_s18, %s3791_s19  ;;  %s5003_s15 = smov (!%p599_p12, %s5001_s15), 15 }
  0x23   : > { %s3391_s24 = sshll.u32 %s590_s20, 3  ;;  %s3396_s23 = sshll.u32 %s5003_s15, 1 }
  0x24   : > { %s592_s29 = scalar_lea.vmem %s4961_s3, %s3391_s24  ;;  %s607_s16 = sadd.s32 %s3396_s23, %s3791_s19 }
  0x25   : > { %s3398_s21 = sshll.u32 %s607_s16, 3  ;;  %662 = sbr.rel (%p3403_p13) target bundleno = 45 (0x2d), region = 60 }
  0x26   : > { %s609_s11 = scalar_lea.vmem %s4962_s4, %s3398_s21 }
  0x2a   : > { %v663_v16 = vld [vmem:[%s558_s27] sm:$0xff]  ;;  %v664_v17 = vld [vmem:[%s558_s27 + $0x8] sm:$0xff] }
  0x2b   : > { %v667_v18 = vld [vmem:[%s575_s0] sm:$0xff]  ;;  %665 = vst.msk [vmem:[#allocation2 + $0x1] sm:$0xff] %vm642_vm0, %v663_v16  ;;  %666 = vst.msk [vmem:[#allocation2 + $0x9] sm:$0xff] %vm642_vm0, %v664_v17  ;;  %v668_v19 = vld [vmem:[%s575_s0 + $0x8] sm:$0xff] }
  0x2c   : > { %670 = vst.msk [vmem:[#allocation2 + $0x19] sm:$0xff] %vm642_vm0, %v667_v18  ;;  %671 = vst.msk [vmem:[#allocation2 + $0x21] sm:$0xff] %vm642_vm0, %v668_v19 }
  0x2d PF: > { %p3404_p0 = scmp.ne.s32.totalorder %s3672_s30, 0 }
  0x2f   : > { %675 = sbr.rel (%p3404_p0) target bundleno = 55 (0x37), region = 64 }
  0x34   : > { %v3690_v20 = vmov 0.0  }
  0x35   : > { %676 = vst.msk [vmem:[#allocation2 + $0x1] sm:$0xff] %vm642_vm0, %v3690_v20  ;;  %677 = vst.msk [vmem:[#allocation2 + $0x9] sm:$0xff] %vm642_vm0, %v3690_v20 }
  0x36   : > { %678 = vst.msk [vmem:[#allocation2 + $0x19] sm:$0xff] %vm642_vm0, %v3690_v20  ;;  %679 = vst.msk [vmem:[#allocation2 + $0x21] sm:$0xff] %vm642_vm0, %v3690_v20 }
  0x37 PF: > { %p3405_p1 = scmp.ge.s32.totalorder %s3672_s30, 1 }
  0x39   : > { %683 = sbr.rel (%p3405_p1) target bundleno = 65 (0x41), region = 68 }
  0x3e   : > { %v684_v21 = vld [vmem:[%s592_s29] sm:$0xff]  ;;  %v685_v22 = vld [vmem:[%s592_s29 + $0x8] sm:$0xff] }
  0x3f   : > { %v689_v23 = vld [vmem:[%s609_s11] sm:$0xff]  ;;  %687 = vst.msk [vmem:[#allocation2 + $0xf1] sm:$0xff] %vm642_vm0, %v684_v21  ;;  %688 = vst.msk [vmem:[#allocation2 + $0xf9] sm:$0xff] %vm642_vm0, %v685_v22  ;;  %v690_v24 = vld [vmem:[%s609_s11 + $0x8] sm:$0xff] }
  0x40   : > { %692 = vst.msk [vmem:[#allocation2 + $0x109] sm:$0xff] %vm642_vm0, %v689_v23  ;;  %693 = vst.msk [vmem:[#allocation2 + $0x111] sm:$0xff] %vm642_vm0, %v690_v24 }
  0x41 PF: > { %p3406_p2 = scmp.ne.s32.totalorder %s3672_s30, 1 }
  0x43   : > { %697 = sbr.rel (%p3406_p2) target bundleno = 75 (0x4b), region = 72 }
  0x48   : > { %v3691_v25 = vmov 0.0  }
  0x49   : > { %699 = vst.msk [vmem:[#allocation2 + $0xf1] sm:$0xff] %vm642_vm0, %v3691_v25  ;;  %700 = vst.msk [vmem:[#allocation2 + $0xf9] sm:$0xff] %vm642_vm0, %v3691_v25 }
  0x4a   : > { %701 = vst.msk [vmem:[#allocation2 + $0x109] sm:$0xff] %vm642_vm0, %v3691_v25  ;;  %702 = vst.msk [vmem:[#allocation2 + $0x111] sm:$0xff] %vm642_vm0, %v3691_v25 }
  0x4b PF: > { %v3888_v26 = vld [vmem:[#allocation2 + $0x19] sm:$0xff]  ;;  %v768_v27 = vld [vmem:[#allocation2 + $0x1] sm:$0xff]  ;;  %vm703_vm1 = vcmask 57344   ;;  %s3692_s0 = smov 8   ;;  %v769_v29 = vld [vmem:[#allocation2 + $0x9] sm:$0xff]  ;;  %v3693_v30 = vmov 0.0  }
  0x4c   : > { %812 = vrot.lane.b32.xlu1 %v3888_v26, %s3692_s0  ;;  %808 = vrot.lane.b32.xlu0 %v768_v27, %s3692_s0  ;;  %v3893_v28 = vld [vmem:[#allocation2 + $0x21] sm:$0xff]  ;;  %716 = vst.msk [vmem:[#allocation2 + $0x11] sm:$0x1] %vm703_vm1, %v3693_v30  ;;  %704 = vst.msk [vmem:[#allocation2] sm:$0x1] %vm703_vm1, %v3693_v30  ;;  %v3943_v32 = vld [vmem:[#allocation2 + $0x38] sm:$0xff] }
  0x4d   : > { %705 = vst.msk [vmem:[#allocation2 + $0x18] sm:$0x1] %vm703_vm1, %v3693_v30  ;;  %706 = vst.msk [vmem:[#allocation2 + $0x30] sm:$0x1] %vm703_vm1, %v3693_v30  ;;  %v1012_v31 = vld [vmem:[#allocation2 + $0x20] sm:$0xff]  ;;  %v3946_v33 = vld [vmem:[#allocation2 + $0x50] sm:$0xff] }
  0x4e   : > { %707 = vst.msk [vmem:[#allocation2 + $0x48] sm:$0x1] %vm703_vm1, %v3693_v30  ;;  %708 = vst.msk [vmem:[#allocation2 + $0x60] sm:$0x1] %vm703_vm1, %v3693_v30  ;;  %v3953_v34 = vld [vmem:[#allocation2 + $0x68] sm:$0xff]  ;;  %v3957_v35 = vld [vmem:[#allocation2 + $0x39] sm:$0xff] }
  0x4f   : > { %709 = vst.msk [vmem:[#allocation2 + $0x78] sm:$0x1] %vm703_vm1, %v3693_v30  ;;  %710 = vst.msk [vmem:[#allocation2 + $0x90] sm:$0x1] %vm703_vm1, %v3693_v30  ;;  %v772_v36 = vld [vmem:[#allocation2 + $0x31] sm:$0xff]  ;;  %v729_v37 = vld [vmem:[#allocation2 + $0x8] sm:$0xff] }
  0x50   : > { %711 = vst.msk [vmem:[#allocation2 + $0xa8] sm:$0x1] %vm703_vm1, %v3693_v30  ;;  %712 = vst.msk [vmem:[#allocation2 + $0xc0] sm:$0x1] %vm703_vm1, %v3693_v30  ;;  %814 = vrot.lane.b32.xlu1 %v3893_v28, %s3692_s0  ;;  %810 = vrot.lane.b32.xlu0 %v769_v29, %s3692_s0  ;;  %v3962_v38 = vld [vmem:[#allocation2 + $0x80] sm:$0xff]  ;;  %s3694_s1 = smov 16  }
  0x51   : > { %713 = vst.msk [vmem:[#allocation2 + $0xd8] sm:$0x1] %vm703_vm1, %v3693_v30  ;;  %714 = vst.msk [vmem:[#allocation2 + $0xf0] sm:$0x1] %vm703_vm1, %v3693_v30  ;;  %v889_v41 = vld [vmem:[#allocation2 + $0x2] sm:$0xff]  ;;  %s3695_s12 = smov 24  }
  0x52   : > { %715 = vst.msk [vmem:[#allocation2 + $0x108] sm:$0x1] %vm703_vm1, %v3693_v30  ;;  %717 = vst.msk [vmem:[#allocation2 + $0x29] sm:$0x1] %vm703_vm1, %v3693_v30  ;;  %s3696_s14 = smov 32   ;;  %v891_v47 = vld [vmem:[#allocation2 + $0x1a] sm:$0xff] }
  0x53   : > { %718 = vst.msk [vmem:[#allocation2 + $0x41] sm:$0x1] %vm703_vm1, %v3693_v30  ;;  %719 = vst.msk [vmem:[#allocation2 + $0x59] sm:$0x1] %vm703_vm1, %v3693_v30  ;;  %v890_v42 = vld [vmem:[#allocation2 + $0xa] sm:$0xff]  ;;  %v728_v45 = vld [vmem:[#allocation2] sm:$0xff] }
  0x54   : > { %720 = vst.msk [vmem:[#allocation2 + $0x71] sm:$0x1] %vm703_vm1, %v3693_v30  ;;  %721 = vst.msk [vmem:[#allocation2 + $0x89] sm:$0x1] %vm703_vm1, %v3693_v30  ;;  %818 = vrot.lane.b32.xlu1 %v3957_v35, %s3692_s0  ;;  %816 = vrot.lane.b32.xlu0 %v772_v36, %s3692_s0  ;;  %v1011_v39 = vld [vmem:[#allocation2 + $0x18] sm:$0xff]  ;;  %v1374_v40 = vld [vmem:[#allocation2 + $0x30] sm:$0xff] }
  0x55   : > { %722 = vst.msk [vmem:[#allocation2 + $0xa1] sm:$0x1] %vm703_vm1, %v3693_v30  ;;  %723 = vst.msk [vmem:[#allocation2 + $0xb9] sm:$0x1] %vm703_vm1, %v3693_v30  ;;  %v3969_v43 = vld [vmem:[#allocation2 + $0x48] sm:$0xff]  ;;  %v3973_v44 = vld [vmem:[#allocation2 + $0x60] sm:$0xff] }
  0x56   : > { %724 = vst.msk [vmem:[#allocation2 + $0xd1] sm:$0x1] %vm703_vm1, %v3693_v30  ;;  %725 = vst.msk [vmem:[#allocation2 + $0xe9] sm:$0x1] %vm703_vm1, %v3693_v30  ;;  %v3977_v46 = vld [vmem:[#allocation2 + $0x78] sm:$0xff]  ;;  %v3992_v48 = vld [vmem:[#allocation2 + $0x90] sm:$0xff] }
  0x57   : > { %726 = vst.msk [vmem:[#allocation2 + $0x101] sm:$0x1] %vm703_vm1, %v3693_v30  ;;  %727 = vst.msk [vmem:[#allocation2 + $0x119] sm:$0x1] %vm703_vm1, %v3693_v30  ;;  %s3697_s15 = smov 40   ;;  %s3698_s19 = smov 48  }
  0x58   : > { %751 = vst.msk [vmem:[#allocation4 + $0x18] sm:$0xff] %vm642_vm0, %v1012_v31  ;;  %753 = vst.msk [vmem:[#allocation4 + $0x28] sm:$0xff] %vm642_vm0, %v3943_v32  ;;  %929 = vrot.lane.b32.xlu0 %v889_v41, %s3694_s1  ;;  %931 = vrot.lane.b32.xlu1 %v890_v42, %s3694_s1  ;;  %v1765_v50 = vld [vmem:[%s4963_s5 + $0x40] sm:$0xff]  ;;  %v1764_v51 = vld [vmem:[%s4963_s5 + $0x38] sm:$0xff]  ;;  %s3699_s23 = smov 56   ;;  %s3700_s18 = smov 64  }
  0x59   : > { %755 = vst.msk [vmem:[#allocation4 + $0x38] sm:$0xff] %vm642_vm0, %v3946_v33  ;;  %757 = vst.msk [vmem:[#allocation4 + $0x48] sm:$0xff] %vm642_vm0, %v3953_v34  ;;  %v1254_v49 = vld [vmem:[#allocation2 + $0x22] sm:$0xff]  ;;  %3507 = vmatprep.subr.mxu0 %v1765_v50  ;;  %v4006_v52 = vld [vmem:[#allocation2 + $0x98] sm:$0xff]  ;;  %vm868_vm2 = vcmask 130112   ;;  %vm989_vm3 = vcmask 195712  }
  0x5a   : > { %749 = vst.msk [vmem:[#allocation4 + $0x8] sm:$0xff] %vm642_vm0, %v729_v37  ;;  %759 = vst.msk [vmem:[#allocation4 + $0x58] sm:$0xff] %vm642_vm0, %v3962_v38  ;;  %3508 = vmatpush3.msra.mxu0 %v1765_v50  ;;  %v1763_v53 = vld [vmem:[%s4963_s5 + $0x30] sm:$0xff]  ;;  %v1762_v54 = vld [vmem:[%s4963_s5 + $0x28] sm:$0xff]  ;;  %vm1111_vm4 = vcmask 261312   ;;  %vm1232_vm5 = vcmask 326912  }
  0x5b   : > { %750 = vst.msk [vmem:[#allocation4 + $0x10] sm:$0xff] %vm642_vm0, %v1011_v39  ;;  %752 = vst.msk [vmem:[#allocation4 + $0x20] sm:$0xff] %vm642_vm0, %v1374_v40  ;;  %3509 = vmatprep.subr.mxu0 %v1764_v51  ;;  %v1761_v55 = vld [vmem:[%s4963_s5 + $0x20] sm:$0xff]  ;;  %v1760_v56 = vld [vmem:[%s4963_s5 + $0x18] sm:$0xff]  ;;  %vm1353_vm6 = vcmask 392512   ;;  %vm1474_vm7 = vcmask 458112  }
  0x5c   : > { %754 = vst.msk [vmem:[#allocation4 + $0x30] sm:$0xff] %vm642_vm0, %v3969_v43  ;;  %756 = vst.msk [vmem:[#allocation4 + $0x40] sm:$0xff] %vm642_vm0, %v3973_v44  ;;  %1053 = vrot.lane.b32.xlu1 %v1012_v31, %s3695_s12  ;;  %1051 = vrot.lane.b32.xlu0 %v1011_v39, %s3695_s12  ;;  %v1616_v57 = vld [vmem:[#allocation2 + $0x32] sm:$0xff]  ;;  %v1758_v59 = vld [vmem:[%s4963_s5 + $0x8] sm:$0xff]  ;;  %vm1595_vm8 = vcmask 523712   ;;  %vm1716_vm9 = vcmask 589312  }
  0x5d   : > { %748 = vst.msk [vmem:[#allocation4] sm:$0xff] %vm642_vm0, %v728_v45  ;;  %758 = vst.msk [vmem:[#allocation4 + $0x50] sm:$0xff] %vm642_vm0, %v3977_v46  ;;  %3510 = vmatpush3.msra.mxu0 %v1764_v51  ;;  %v1759_v58 = vld [vmem:[%s4963_s5 + $0x10] sm:$0xff]  ;;  %v1757_v60 = vld [vmem:[%s4963_s5] sm:$0xff]  ;;  %vm1773_vm10 = vcmask 588800  }
  0x5e   : > { %760 = vst.msk [vmem:[#allocation4 + $0x60] sm:$0xff] %vm642_vm0, %v3992_v48  ;;  %761 = vst.msk [vmem:[#allocation4 + $0x68] sm:$0xff] %vm642_vm0, %v4006_v52  ;;  %3511 = vmatprep.subr.mxu0 %v1763_v53  ;;  %v1617_v61 = vld [vmem:[#allocation2 + $0x3a] sm:$0xff]  ;;  %v4047_v62 = vld [vmem:[#allocation2 + $0xa8] sm:$0xff] }
  0x5f   : > { %3512 = vmatpush3.msra.mxu0 %v1763_v53  ;;  %762 = vst.msk [vmem:[#allocation4 + $0x70] sm:$0xff] %vm642_vm0, %v4047_v62  ;;  %v1497_v63 = vld [vmem:[#allocation2 + $0x49] sm:$0xff]  ;;  %v1498_v2 = vld [vmem:[#allocation2 + $0x51] sm:$0xff]  ;;  %v4075_v4 = vld [vmem:[#allocation2 + $0xc0] sm:$0xff] }
  0x60   : > { %1174 = vrot.lane.b32.xlu1 %v3893_v28, %s3696_s14  ;;  %1172 = vrot.lane.b32.xlu0 %v3888_v26, %s3696_s14  ;;  %v4057_v0 = vld [vmem:[#allocation2 + $0xb0] sm:$0xff]  ;;  %764 = vst.msk [vmem:[#allocation4 + $0x80] sm:$0xff] %vm642_vm0, %v4075_v4  ;;  %v1499_v5 = vld [vmem:[#allocation2 + $0x61] sm:$0xff]  ;;  %v4107_v14 = vld [vmem:[#allocation2 + $0xd8] sm:$0xff] }
  0x61   : > { %3513 = vmatprep.subr.mxu0 %v1762_v54  ;;  %763 = vst.msk [vmem:[#allocation4 + $0x78] sm:$0xff] %vm642_vm0, %v4057_v0  ;;  %v1618_v1 = vld [vmem:[#allocation2 + $0x4a] sm:$0xff]  ;;  %v1619_v3 = vld [vmem:[#allocation2 + $0x52] sm:$0xff]  ;;  %v1620_v7 = vld [vmem:[#allocation2 + $0x62] sm:$0xff] }
  0x62   : > { %3514 = vmatpush3.msra.mxu0 %v1762_v54  ;;  %v4085_v6 = vld [vmem:[#allocation2 + $0xc8] sm:$0xff]  ;;  %766 = vst.msk [vmem:[#allocation4 + $0x90] sm:$0xff] %vm642_vm0, %v4107_v14  ;;  %v1501_v17 = vld [vmem:[#allocation2 + $0x79] sm:$0xff]  ;;  %v1503_v39 = vld [vmem:[#allocation2 + $0x91] sm:$0xff] }
  0x63   : > { %3515 = vmatprep.subr.mxu0 %v1761_v55  ;;  %765 = vst.msk [vmem:[#allocation4 + $0x88] sm:$0xff] %vm642_vm0, %v4085_v6  ;;  %v1500_v8 = vld [vmem:[#allocation2 + $0x69] sm:$0xff]  ;;  %v4121_v20 = vld [vmem:[#allocation2 + $0xe0] sm:$0xff] }
  0x64   : > { %933 = vrot.lane.b32.xlu1 %v891_v47, %s3694_s1  ;;  %1293 = vrot.lane.b32.xlu0 %v891_v47, %s3697_s15  ;;  %v1621_v9 = vld [vmem:[#allocation2 + $0x6a] sm:$0xff]  ;;  %767 = vst.msk [vmem:[#allocation4 + $0x98] sm:$0xff] %vm642_vm0, %v4121_v20  ;;  %v1622_v23 = vld [vmem:[#allocation2 + $0x7a] sm:$0xff]  ;;  %v1623_v29 = vld [vmem:[#allocation2 + $0x82] sm:$0xff] }
  0x65   : > { %3516 = vmatpush3.msra.mxu0 %v1761_v55  ;;  %v1502_v24 = vld [vmem:[#allocation2 + $0x81] sm:$0xff]  ;;  %v1504_v45 = vld [vmem:[#allocation2 + $0x99] sm:$0xff] }
  0x66   : > { %3517 = vmatprep.subr.mxu0 %v1760_v56  ;;  %v1625_v51 = vld [vmem:[#allocation2 + $0x9a] sm:$0xff] }
  0x67   : > { %3518 = vmatpush3.msra.mxu0 %v1760_v56 }
  0x68   : > { %1414 = vrot.lane.b32.xlu1 %v1374_v40, %s3698_s19  ;;  %1295 = vrot.lane.b32.xlu0 %v1254_v49, %s3697_s15 }
  0x69   : > { %3519 = vmatprep.subr.mxu0 %v1759_v58 }
  0x6a   : > { %3520 = vmatpush3.msra.mxu0 %v1759_v58 }
  0x6b   : > { %3521 = vmatprep.subr.mxu0 %v1758_v59 }
  0x6c   : > { %1055 = vrot.lane.b32.xlu1 %v1374_v40, %s3695_s12  ;;  %935 = vrot.lane.b32.xlu0 %v1254_v49, %s3694_s1 }
  0x6d   : > { %3522 = vmatpush3.msra.mxu0 %v1758_v59 }
  0x6e   : > { %3523 = vmatprep.subr.mxu0 %v1757_v60 }
  0x6f   : > { %3524 = vmatpush3.msra.mxu0 %v1757_v60 }
  0x70   : > { %1535 = vrot.lane.b32.xlu1 %v772_v36, %s3699_s23  ;;  %1416 = vrot.lane.b32.xlu0 %v3943_v32, %s3698_s19 }
  0x74   : > { %1176 = vrot.lane.b32.xlu1 %v772_v36, %s3696_s14  ;;  %1057 = vrot.lane.b32.xlu0 %v3943_v32, %s3695_s12 }
  0x78   : > { %1656 = vrot.lane.b32.xlu1 %v1616_v57, %s3700_s18  ;;  %1537 = vrot.lane.b32.xlu0 %v3957_v35, %s3699_s23 }
  0x7c   : > { %1297 = vrot.lane.b32.xlu1 %v1616_v57, %s3697_s15  ;;  %1178 = vrot.lane.b32.xlu0 %v3957_v35, %s3696_s14 }
  0x80   : > { %937 = vrot.lane.b32.xlu1 %v1616_v57, %s3694_s1  ;;  %1658 = vrot.lane.b32.xlu0 %v1617_v61, %s3700_s18 }
  0x84   : > { %1418 = vrot.lane.b32.xlu1 %v3969_v43, %s3698_s19  ;;  %1299 = vrot.lane.b32.xlu0 %v1617_v61, %s3697_s15 }
  0x88   : > { %1059 = vrot.lane.b32.xlu1 %v3969_v43, %s3695_s12  ;;  %939 = vrot.lane.b32.xlu0 %v1617_v61, %s3694_s1  ;;  %v1505_v61 = vld [vmem:[#allocation2 + $0xa9] sm:$0xff] }
  0x8c   : > { %1539 = vrot.lane.b32.xlu1 %v1497_v63, %s3699_s23  ;;  %1420 = vrot.lane.b32.xlu0 %v3946_v33, %s3698_s19 }
  0x90   : > { %1180 = vrot.lane.b32.xlu1 %v1497_v63, %s3696_s14  ;;  %1061 = vrot.lane.b32.xlu0 %v3946_v33, %s3695_s12 }
  0x94   : > { %1660 = vrot.lane.b32.xlu1 %v1618_v1, %s3700_s18  ;;  %1541 = vrot.lane.b32.xlu0 %v1498_v2, %s3699_s23 }
  0x98   : > { %1182 = vrot.lane.b32.xlu1 %v1498_v2, %s3696_s14  ;;  %820 = vrot.lane.b32.xlu0 %v1497_v63, %s3692_s0 }
  0x9c   : > { %1662 = vrot.lane.b32.xlu1 %v1619_v3, %s3700_s18  ;;  %1301 = vrot.lane.b32.xlu0 %v1618_v1, %s3697_s15 }
  0xa0   : > { %941 = vrot.lane.b32.xlu1 %v1618_v1, %s3694_s1  ;;  %822 = vrot.lane.b32.xlu0 %v1498_v2, %s3692_s0 }
  0xa4   : > { %1422 = vrot.lane.b32.xlu1 %v3973_v44, %s3698_s19  ;;  %1303 = vrot.lane.b32.xlu0 %v1619_v3, %s3697_s15 }
  0xa8   : > { %1063 = vrot.lane.b32.xlu1 %v3973_v44, %s3695_s12  ;;  %943 = vrot.lane.b32.xlu0 %v1619_v3, %s3694_s1  ;;  %v1624_v44 = vld [vmem:[#allocation2 + $0x92] sm:$0xff] }
  0xac   : > { %1543 = vrot.lane.b32.xlu1 %v1499_v5, %s3699_s23  ;;  %1424 = vrot.lane.b32.xlu0 %v3953_v34, %s3698_s19 }
  0xb0   : > { %1184 = vrot.lane.b32.xlu1 %v1499_v5, %s3696_s14  ;;  %1065 = vrot.lane.b32.xlu0 %v3953_v34, %s3695_s12 }
  0xb4   : > { %1664 = vrot.lane.b32.xlu1 %v1620_v7, %s3700_s18  ;;  %1545 = vrot.lane.b32.xlu0 %v1500_v8, %s3699_s23 }
  0xb8   : > { %1186 = vrot.lane.b32.xlu1 %v1500_v8, %s3696_s14  ;;  %824 = vrot.lane.b32.xlu0 %v1499_v5, %s3692_s0 }
  0xbc   : > { %1666 = vrot.lane.b32.xlu1 %v1621_v9, %s3700_s18  ;;  %1305 = vrot.lane.b32.xlu0 %v1620_v7, %s3697_s15 }
  0xbe   : > { %v813_v10 = vpop.permute.xlu1 %812  ;;  %v809_v11 = vpop.permute.xlu0 %808 }
  0xbf   : > { %871 = vst.msk [vmem:[#allocation4 + $0x10] sm:$0xff] %vm868_vm2, %v813_v10  ;;  %869 = vst.msk [vmem:[#allocation4] sm:$0xff] %vm868_vm2, %v809_v11 }
  0xc0   : > { %945 = vrot.lane.b32.xlu1 %v1620_v7, %s3694_s1  ;;  %826 = vrot.lane.b32.xlu0 %v1500_v8, %s3692_s0  ;;  %v1506_v7 = vld [vmem:[#allocation2 + $0xb1] sm:$0xff] }
  0xc2   : > { %v815_v12 = vpop.permute.xlu1 %814  ;;  %v811_v13 = vpop.permute.xlu0 %810 }
  0xc3   : > { %872 = vst.msk [vmem:[#allocation4 + $0x18] sm:$0xff] %vm868_vm2, %v815_v12  ;;  %870 = vst.msk [vmem:[#allocation4 + $0x8] sm:$0xff] %vm868_vm2, %v811_v13 }
  0xc4   : > { %1426 = vrot.lane.b32.xlu1 %v3977_v46, %s3698_s19  ;;  %1307 = vrot.lane.b32.xlu0 %v1621_v9, %s3697_s15 }
  0xc6   : > { %v819_v15 = vpop.permute.xlu1 %818  ;;  %v817_v16 = vpop.permute.xlu0 %816 }
  0xc7   : > { %874 = vst.msk [vmem:[#allocation4 + $0x28] sm:$0xff] %vm868_vm2, %v819_v15  ;;  %873 = vst.msk [vmem:[#allocation4 + $0x20] sm:$0xff] %vm868_vm2, %v817_v16 }
  0xc8   : > { %1067 = vrot.lane.b32.xlu1 %v3977_v46, %s3695_s12  ;;  %947 = vrot.lane.b32.xlu0 %v1621_v9, %s3694_s1 }
  0xca   : > { %v930_v18 = vpop.permute.xlu0 %929  ;;  %v932_v19 = vpop.permute.xlu1 %931 }
  0xcb   : > { %990 = vst.msk [vmem:[#allocation4] sm:$0xff] %vm989_vm3, %v930_v18  ;;  %991 = vst.msk [vmem:[#allocation4 + $0x8] sm:$0xff] %vm989_vm3, %v932_v19 }
  0xcc   : > { %1547 = vrot.lane.b32.xlu1 %v1501_v17, %s3699_s23  ;;  %1428 = vrot.lane.b32.xlu0 %v3962_v38, %s3698_s19 }
  0xce   : > { %v1054_v21 = vpop.permute.xlu1 %1053  ;;  %v1052_v22 = vpop.permute.xlu0 %1051 }
  0xcf   : > { %1113 = vst.msk [vmem:[#allocation4 + $0x8] sm:$0xff] %vm1111_vm4, %v1054_v21  ;;  %1112 = vst.msk [vmem:[#allocation4] sm:$0xff] %vm1111_vm4, %v1052_v22 }
  0xd0   : > { %1188 = vrot.lane.b32.xlu1 %v1501_v17, %s3696_s14  ;;  %1069 = vrot.lane.b32.xlu0 %v3962_v38, %s3695_s12 }
  0xd2   : > { %v1175_v25 = vpop.permute.xlu1 %1174  ;;  %v1173_v26 = vpop.permute.xlu0 %1172 }
  0xd3   : > { %1234 = vst.msk [vmem:[#allocation4 + $0x8] sm:$0xff] %vm1232_vm5, %v1175_v25  ;;  %1233 = vst.msk [vmem:[#allocation4] sm:$0xff] %vm1232_vm5, %v1173_v26 }
  0xd4   : > { %1668 = vrot.lane.b32.xlu1 %v1622_v23, %s3700_s18  ;;  %1549 = vrot.lane.b32.xlu0 %v1502_v24, %s3699_s23 }
  0xd6   : > { %v934_v27 = vpop.permute.xlu1 %933  ;;  %v1294_v28 = vpop.permute.xlu0 %1293 }
  0xd7   : > { %992 = vst.msk [vmem:[#allocation4 + $0x10] sm:$0xff] %vm989_vm3, %v934_v27 }
  0xd8   : > { %1354 = vst.msk [vmem:[#allocation4] sm:$0xff] %vm1353_vm6, %v1294_v28  ;;  %1190 = vrot.lane.b32.xlu1 %v1502_v24, %s3696_s14  ;;  %828 = vrot.lane.b32.xlu0 %v1501_v17, %s3692_s0 }
  0xda   : > { %v1415_v31 = vpop.permute.xlu1 %1414  ;;  %v1296_v32 = vpop.permute.xlu0 %1295 }
  0xdb   : > { %1475 = vst.msk [vmem:[#allocation4] sm:$0xff] %vm1474_vm7, %v1415_v31 }
  0xdc   : > { %1355 = vst.msk [vmem:[#allocation4 + $0x8] sm:$0xff] %vm1353_vm6, %v1296_v32  ;;  %1670 = vrot.lane.b32.xlu1 %v1623_v29, %s3700_s18  ;;  %1309 = vrot.lane.b32.xlu0 %v1622_v23, %s3697_s15 }
  0xde   : > { %v1056_v33 = vpop.permute.xlu1 %1055  ;;  %v936_v34 = vpop.permute.xlu0 %935 }
  0xdf   : > { %1114 = vst.msk [vmem:[#allocation4 + $0x10] sm:$0xff] %vm1111_vm4, %v1056_v33 }
  0xe0   : > { %993 = vst.msk [vmem:[#allocation4 + $0x18] sm:$0xff] %vm989_vm3, %v936_v34  ;;  %949 = vrot.lane.b32.xlu1 %v1622_v23, %s3694_s1  ;;  %830 = vrot.lane.b32.xlu0 %v1502_v24, %s3692_s0  ;;  %v1507_v23 = vld [vmem:[#allocation2 + $0xc1] sm:$0xff] }
  0xe2   : > { %v1536_v35 = vpop.permute.xlu1 %1535  ;;  %v1417_v36 = vpop.permute.xlu0 %1416 }
  0xe3   : > { %1596 = vst.msk [vmem:[#allocation4] sm:$0xff] %vm1595_vm8, %v1536_v35 }
  0xe4   : > { %1476 = vst.msk [vmem:[#allocation4 + $0x8] sm:$0xff] %vm1474_vm7, %v1417_v36  ;;  %1430 = vrot.lane.b32.xlu1 %v3992_v48, %s3698_s19  ;;  %1311 = vrot.lane.b32.xlu0 %v1623_v29, %s3697_s15 }
  0xe6   : > { %v1177_v37 = vpop.permute.xlu1 %1176  ;;  %v1058_v38 = vpop.permute.xlu0 %1057 }
  0xe7   : > { %1235 = vst.msk [vmem:[#allocation4 + $0x10] sm:$0xff] %vm1232_vm5, %v1177_v37 }
  0xe8   : > { %1115 = vst.msk [vmem:[#allocation4 + $0x18] sm:$0xff] %vm1111_vm4, %v1058_v38  ;;  %1071 = vrot.lane.b32.xlu1 %v3992_v48, %s3695_s12  ;;  %951 = vrot.lane.b32.xlu0 %v1623_v29, %s3694_s1  ;;  %v1508_v29 = vld [vmem:[#allocation2 + $0xc9] sm:$0xff] }
  0xea   : > { %v1657_v40 = vpop.permute.xlu1 %1656  ;;  %v1538_v41 = vpop.permute.xlu0 %1537 }
  0xeb   : > { %1717 = vst.msk [vmem:[#allocation4] sm:$0xff] %vm1716_vm9, %v1657_v40 }
  0xec   : > { %1597 = vst.msk [vmem:[#allocation4 + $0x8] sm:$0xff] %vm1595_vm8, %v1538_v41  ;;  %1551 = vrot.lane.b32.xlu1 %v1503_v39, %s3699_s23  ;;  %1432 = vrot.lane.b32.xlu0 %v4006_v52, %s3698_s19 }
  0xee   : > { %v1298_v42 = vpop.permute.xlu1 %1297  ;;  %v1179_v43 = vpop.permute.xlu0 %1178 }
  0xef   : > { %1356 = vst.msk [vmem:[#allocation4 + $0x10] sm:$0xff] %vm1353_vm6, %v1298_v42 }
  0xf0   : > { %1236 = vst.msk [vmem:[#allocation4 + $0x18] sm:$0xff] %vm1232_vm5, %v1179_v43  ;;  %1192 = vrot.lane.b32.xlu1 %v1503_v39, %s3696_s14  ;;  %1073 = vrot.lane.b32.xlu0 %v4006_v52, %s3695_s12 }
  0xf2   : > { %v938_v46 = vpop.permute.xlu1 %937  ;;  %v1659_v47 = vpop.permute.xlu0 %1658  ;;  %v1737_v48 = vld [vmem:[#allocation4] sm:$0xff] }
  0xf3   : > { %994 = vst.msk [vmem:[#allocation4 + $0x20] sm:$0xff] %vm989_vm3, %v938_v46  ;;  %3525 = vmatprep.mubr.msk.f32.mxu0 %vm1773_vm10, %v1737_v48 }
  0xf4   : > { %1718 = vst.msk [vmem:[#allocation4 + $0x8] sm:$0xff] %vm1716_vm9, %v1659_v47  ;;  %1672 = vrot.lane.b32.xlu1 %v1624_v44, %s3700_s18  ;;  %1553 = vrot.lane.b32.xlu0 %v1504_v45, %s3699_s23 }
  0xf6   : > { %v1419_v49 = vpop.permute.xlu1 %1418  ;;  %v1300_v50 = vpop.permute.xlu0 %1299 }
  0xf7   : > { %1477 = vst.msk [vmem:[#allocation4 + $0x10] sm:$0xff] %vm1474_vm7, %v1419_v49 }
  0xf8   : > { %1357 = vst.msk [vmem:[#allocation4 + $0x18] sm:$0xff] %vm1353_vm6, %v1300_v50  ;;  %1194 = vrot.lane.b32.xlu1 %v1504_v45, %s3696_s14  ;;  %832 = vrot.lane.b32.xlu0 %v1503_v39, %s3692_s0  ;;  %v1510_v50 = vld [vmem:[#allocation2 + $0xe1] sm:$0xff] }
  0xfa   : > { %v1060_v52 = vpop.permute.xlu1 %1059  ;;  %v940_v53 = vpop.permute.xlu0 %939 }
  0xfb   : > { %v1738_v54 = vld [vmem:[#allocation4 + $0x8] sm:$0xff]  ;;  %1116 = vst.msk [vmem:[#allocation4 + $0x20] sm:$0xff] %vm1111_vm4, %v1060_v52 }
  0xfc   : > { %995 = vst.msk [vmem:[#allocation4 + $0x28] sm:$0xff] %vm989_vm3, %v940_v53  ;;  %3526 = vmatmul.mubr.msk.f32.vlgmr.msra.gmra.mxu0 %vm1773_vm10, %v1738_v54  ;;  %1674 = vrot.lane.b32.xlu1 %v1625_v51, %s3700_s18 }
  0xfd   : > { %1313 = vrot.lane.b32.xlu0 %v1624_v44, %s3697_s15 }
  0xfe   : > { %v1540_v55 = vpop.permute.xlu1 %1539  ;;  %v1421_v56 = vpop.permute.xlu0 %1420 }
  0xff   : > { %1598 = vst.msk [vmem:[#allocation4 + $0x10] sm:$0xff] %vm1595_vm8, %v1540_v55 }
 0x100   : > { %1478 = vst.msk [vmem:[#allocation4 + $0x18] sm:$0xff] %vm1474_vm7, %v1421_v56  ;;  %953 = vrot.lane.b32.xlu1 %v1624_v44, %s3694_s1  ;;  %v1509_v44 = vld [vmem:[#allocation2 + $0xd9] sm:$0xff] }
 0x101   : > { %834 = vrot.lane.b32.xlu0 %v1504_v45, %s3692_s0 }
 0x102   : > { %v1181_v57 = vpop.permute.xlu1 %1180  ;;  %v1062_v58 = vpop.permute.xlu0 %1061 }
 0x103   : > { %1237 = vst.msk [vmem:[#allocation4 + $0x20] sm:$0xff] %vm1232_vm5, %v1181_v57 }
 0x104   : > { %1117 = vst.msk [vmem:[#allocation4 + $0x28] sm:$0xff] %vm1111_vm4, %v1062_v58  ;;  %1434 = vrot.lane.b32.xlu1 %v4047_v62, %s3698_s19 }
 0x105   : > { %1315 = vrot.lane.b32.xlu0 %v1625_v51, %s3697_s15 }
 0x106   : > { %v1661_v59 = vpop.permute.xlu1 %1660  ;;  %v1542_v60 = vpop.permute.xlu0 %1541 }
 0x107   : > { %1719 = vst.msk [vmem:[#allocation4 + $0x10] sm:$0xff] %vm1716_vm9, %v1661_v59 }
 0x108   : > { %1599 = vst.msk [vmem:[#allocation4 + $0x18] sm:$0xff] %vm1595_vm8, %v1542_v60  ;;  %1075 = vrot.lane.b32.xlu1 %v4047_v62, %s3695_s12  ;;  %v1626_v62 = vld [vmem:[#allocation2 + $0xaa] sm:$0xff] }
 0x109   : > { %955 = vrot.lane.b32.xlu0 %v1625_v51, %s3694_s1  ;;  %v1390_v60 = vld [vmem:[#allocation2 + $0xf0] sm:$0xff] }
 0x10a   : > { %v1183_v63 = vpop.permute.xlu1 %1182  ;;  %v821_v1 = vpop.permute.xlu0 %820 }
 0x10b   : > { %1238 = vst.msk [vmem:[#allocation4 + $0x28] sm:$0xff] %vm1232_vm5, %v1183_v63 }
 0x10c   : > { %875 = vst.msk [vmem:[#allocation4 + $0x30] sm:$0xff] %vm868_vm2, %v821_v1  ;;  %1555 = vrot.lane.b32.xlu1 %v1505_v61, %s3699_s23 }
 0x10d   : > { %1436 = vrot.lane.b32.xlu0 %v4057_v0, %s3698_s19 }
 0x10e   : > { %v1663_v2 = vpop.permute.xlu1 %1662  ;;  %v1302_v3 = vpop.permute.xlu0 %1301  ;;  %v1739_v5 = vld [vmem:[#allocation4 + $0x10] sm:$0xff] }
 0x10f   : > { %1720 = vst.msk [vmem:[#allocation4 + $0x18] sm:$0xff] %vm1716_vm9, %v1663_v2  ;;  %3528 = vmatprep.mubr.msk.f32.mxu0 %vm1773_vm10, %v1739_v5  ;;  %v1511_v5 = vld [vmem:[#allocation2 + $0xf1] sm:$0xff] }
 0x110   : > { %1358 = vst.msk [vmem:[#allocation4 + $0x20] sm:$0xff] %vm1353_vm6, %v1302_v3  ;;  %1196 = vrot.lane.b32.xlu1 %v1505_v61, %s3696_s14  ;;  %v1391_v3 = vld [vmem:[#allocation2 + $0xf8] sm:$0xff] }
 0x111   : > { %1077 = vrot.lane.b32.xlu0 %v4057_v0, %s3695_s12  ;;  %v1627_v0 = vld [vmem:[#allocation2 + $0xb2] sm:$0xff] }
 0x112   : > { %v942_v8 = vpop.permute.xlu1 %941  ;;  %v823_v9 = vpop.permute.xlu0 %822 }
 0x113   : > { %996 = vst.msk [vmem:[#allocation4 + $0x30] sm:$0xff] %vm989_vm3, %v942_v8 }
 0x114   : > { %876 = vst.msk [vmem:[#allocation4 + $0x38] sm:$0xff] %vm868_vm2, %v823_v9  ;;  %1676 = vrot.lane.b32.xlu1 %v1626_v62, %s3700_s18 }
 0x115   : > { %1557 = vrot.lane.b32.xlu0 %v1506_v7, %s3699_s23 }
 0x116   : > { %v1423_v10 = vpop.permute.xlu1 %1422  ;;  %v1304_v11 = vpop.permute.xlu0 %1303  ;;  %v1740_v12 = vld [vmem:[#allocation4 + $0x18] sm:$0xff] }
 0x117   : > { %1479 = vst.msk [vmem:[#allocation4 + $0x20] sm:$0xff] %vm1474_vm7, %v1423_v10  ;;  %3529 = vmatmul.mubr.msk.f32.gmra.mxu0 %vm1773_vm10, %v1740_v12  ;;  %v1632_v12 = vld [vmem:[#allocation2 + $0xf2] sm:$0xff] }
 0x118   : > { %1359 = vst.msk [vmem:[#allocation4 + $0x28] sm:$0xff] %vm1353_vm6, %v1304_v11  ;;  %1198 = vrot.lane.b32.xlu1 %v1506_v7, %s3696_s14  ;;  %v1512_v11 = vld [vmem:[#allocation2 + $0xf9] sm:$0xff] }
 0x119   : > { %836 = vrot.lane.b32.xlu0 %v1505_v61, %s3692_s0 }
 0x11a   : > { %v1064_v13 = vpop.permute.xlu1 %1063  ;;  %v944_v15 = vpop.permute.xlu0 %943 }
 0x11b   : > { %1118 = vst.msk [vmem:[#allocation4 + $0x30] sm:$0xff] %vm1111_vm4, %v1064_v13 }
 0x11c   : > { %997 = vst.msk [vmem:[#allocation4 + $0x38] sm:$0xff] %vm989_vm3, %v944_v15  ;;  %1678 = vrot.lane.b32.xlu1 %v1627_v0, %s3700_s18 }
 0x11d   : > { %1317 = vrot.lane.b32.xlu0 %v1626_v62, %s3697_s15 }
 0x11e   : > { %v1544_v16 = vpop.permute.xlu1 %1543  ;;  %v1425_v17 = vpop.permute.xlu0 %1424 }
 0x11f   : > { %1600 = vst.msk [vmem:[#allocation4 + $0x20] sm:$0xff] %vm1595_vm8, %v1544_v16 }
 0x120   : > { %1480 = vst.msk [vmem:[#allocation4 + $0x28] sm:$0xff] %vm1474_vm7, %v1425_v17  ;;  %957 = vrot.lane.b32.xlu1 %v1626_v62, %s3694_s1 }
 0x121   : > { %838 = vrot.lane.b32.xlu0 %v1506_v7, %s3692_s0 }
 0x122   : > { %v1185_v18 = vpop.permute.xlu1 %1184  ;;  %v1066_v19 = vpop.permute.xlu0 %1065 }
 0x123   : > { %1239 = vst.msk [vmem:[#allocation4 + $0x30] sm:$0xff] %vm1232_vm5, %v1185_v18  ;;  %v1633_v18 = vld [vmem:[#allocation2 + $0xfa] sm:$0xff] }
 0x124   : > { %1119 = vst.msk [vmem:[#allocation4 + $0x38] sm:$0xff] %vm1111_vm4, %v1066_v19  ;;  %1438 = vrot.lane.b32.xlu1 %v4075_v4, %s3698_s19 }
 0x125   : > { %1319 = vrot.lane.b32.xlu0 %v1627_v0, %s3697_s15 }
 0x126   : > { %v1665_v21 = vpop.permute.xlu1 %1664  ;;  %v1546_v22 = vpop.permute.xlu0 %1545 }
 0x127   : > { %1721 = vst.msk [vmem:[#allocation4 + $0x20] sm:$0xff] %vm1716_vm9, %v1665_v21 }
 0x128   : > { %1601 = vst.msk [vmem:[#allocation4 + $0x28] sm:$0xff] %vm1595_vm8, %v1546_v22  ;;  %1079 = vrot.lane.b32.xlu1 %v4075_v4, %s3695_s12  ;;  %v1628_v4 = vld [vmem:[#allocation2 + $0xc2] sm:$0xff] }
 0x129   : > { %959 = vrot.lane.b32.xlu0 %v1627_v0, %s3694_s1  ;;  %v1392_v22 = vld [vmem:[#allocation2 + $0x108] sm:$0xff] }
 0x12a   : > { %v1187_v24 = vpop.permute.xlu1 %1186  ;;  %v825_v25 = vpop.permute.xlu0 %824 }
 0x12b   : > { %1240 = vst.msk [vmem:[#allocation4 + $0x38] sm:$0xff] %vm1232_vm5, %v1187_v24 }
 0x12c   : > { %877 = vst.msk [vmem:[#allocation4 + $0x40] sm:$0xff] %vm868_vm2, %v825_v25  ;;  %1559 = vrot.lane.b32.xlu1 %v1507_v23, %s3699_s23 }
 0x12d   : > { %1440 = vrot.lane.b32.xlu0 %v4085_v6, %s3698_s19 }
 0x12e   : > { %v1667_v26 = vpop.permute.xlu1 %1666  ;;  %v1306_v27 = vpop.permute.xlu0 %1305  ;;  %v1741_v28 = vld [vmem:[#allocation4 + $0x20] sm:$0xff] }
 0x12f   : > { %1722 = vst.msk [vmem:[#allocation4 + $0x28] sm:$0xff] %vm1716_vm9, %v1667_v26  ;;  %3531 = vmatprep.mubr.msk.f32.mxu0 %vm1773_vm10, %v1741_v28  ;;  %v1513_v26 = vld [vmem:[#allocation2 + $0x109] sm:$0xff] }
 0x130   : > { %1360 = vst.msk [vmem:[#allocation4 + $0x30] sm:$0xff] %vm1353_vm6, %v1306_v27  ;;  %1200 = vrot.lane.b32.xlu1 %v1507_v23, %s3696_s14  ;;  %v1514_v27 = vld [vmem:[#allocation2 + $0x111] sm:$0xff] }
 0x131   : > { %1081 = vrot.lane.b32.xlu0 %v4085_v6, %s3695_s12  ;;  %v1629_v6 = vld [vmem:[#allocation2 + $0xca] sm:$0xff] }
 0x132   : > { %v946_v31 = vpop.permute.xlu1 %945  ;;  %v827_v32 = vpop.permute.xlu0 %826 }
 0x133   : > { %998 = vst.msk [vmem:[#allocation4 + $0x40] sm:$0xff] %vm989_vm3, %v946_v31  ;;  %v1635_v31 = vld [vmem:[#allocation2 + $0x112] sm:$0xff] }
 0x134   : > { %878 = vst.msk [vmem:[#allocation4 + $0x48] sm:$0xff] %vm868_vm2, %v827_v32  ;;  %1680 = vrot.lane.b32.xlu1 %v1628_v4, %s3700_s18 }
 0x135   : > { %1561 = vrot.lane.b32.xlu0 %v1508_v29, %s3699_s23 }
 0x136   : > { %v1427_v33 = vpop.permute.xlu1 %1426  ;;  %v1308_v34 = vpop.permute.xlu0 %1307  ;;  %v1742_v35 = vld [vmem:[#allocation4 + $0x28] sm:$0xff] }
 0x137   : > { %1481 = vst.msk [vmem:[#allocation4 + $0x30] sm:$0xff] %vm1474_vm7, %v1427_v33  ;;  %3532 = vmatmul.mubr.msk.f32.gmra.mxu0 %vm1773_vm10, %v1742_v35 }
 0x138   : > { %1361 = vst.msk [vmem:[#allocation4 + $0x38] sm:$0xff] %vm1353_vm6, %v1308_v34  ;;  %1202 = vrot.lane.b32.xlu1 %v1508_v29, %s3696_s14 }
 0x139   : > { %840 = vrot.lane.b32.xlu0 %v1507_v23, %s3692_s0  ;;  %v1393_v23 = vld [vmem:[#allocation2 + $0x110] sm:$0xff] }
 0x13a   : > { %v1068_v36 = vpop.permute.xlu1 %1067  ;;  %v948_v37 = vpop.permute.xlu0 %947 }
 0x13b   : > { %1120 = vst.msk [vmem:[#allocation4 + $0x40] sm:$0xff] %vm1111_vm4, %v1068_v36 }
 0x13c   : > { %999 = vst.msk [vmem:[#allocation4 + $0x48] sm:$0xff] %vm989_vm3, %v948_v37  ;;  %1682 = vrot.lane.b32.xlu1 %v1629_v6, %s3700_s18 }
 0x13d   : > { %1321 = vrot.lane.b32.xlu0 %v1628_v4, %s3697_s15 }
 0x13e   : > { %v1548_v38 = vpop.permute.xlu1 %1547  ;;  %v1429_v39 = vpop.permute.xlu0 %1428 }
 0x13f   : > { %1602 = vst.msk [vmem:[#allocation4 + $0x30] sm:$0xff] %vm1595_vm8, %v1548_v38 }
 0x140   : > { %1482 = vst.msk [vmem:[#allocation4 + $0x38] sm:$0xff] %vm1474_vm7, %v1429_v39  ;;  %961 = vrot.lane.b32.xlu1 %v1628_v4, %s3694_s1 }
 0x141   : > { %842 = vrot.lane.b32.xlu0 %v1508_v29, %s3692_s0  ;;  %v1634_v29 = vld [vmem:[#allocation2 + $0x10a] sm:$0xff] }
 0x142   : > { %v1189_v40 = vpop.permute.xlu1 %1188  ;;  %v1070_v41 = vpop.permute.xlu0 %1069 }
 0x143   : > { %1241 = vst.msk [vmem:[#allocation4 + $0x40] sm:$0xff] %vm1232_vm5, %v1189_v40 }
 0x144   : > { %1121 = vst.msk [vmem:[#allocation4 + $0x48] sm:$0xff] %vm1111_vm4, %v1070_v41  ;;  %1442 = vrot.lane.b32.xlu1 %v4107_v14, %s3698_s19 }
 0x145   : > { %1323 = vrot.lane.b32.xlu0 %v1629_v6, %s3697_s15 }
 0x146   : > { %v1669_v42 = vpop.permute.xlu1 %1668  ;;  %v1550_v43 = vpop.permute.xlu0 %1549 }
 0x147   : > { %1723 = vst.msk [vmem:[#allocation4 + $0x30] sm:$0xff] %vm1716_vm9, %v1669_v42 }
 0x148   : > { %1603 = vst.msk [vmem:[#allocation4 + $0x38] sm:$0xff] %vm1595_vm8, %v1550_v43  ;;  %1083 = vrot.lane.b32.xlu1 %v4107_v14, %s3695_s12  ;;  %v1630_v14 = vld [vmem:[#allocation2 + $0xda] sm:$0xff] }
 0x149   : > { %963 = vrot.lane.b32.xlu0 %v1629_v6, %s3694_s1 }
 0x14a   : > { %v1191_v45 = vpop.permute.xlu1 %1190  ;;  %v829_v46 = vpop.permute.xlu0 %828 }
 0x14b   : > { %1242 = vst.msk [vmem:[#allocation4 + $0x48] sm:$0xff] %vm1232_vm5, %v1191_v45 }
 0x14c   : > { %879 = vst.msk [vmem:[#allocation4 + $0x50] sm:$0xff] %vm868_vm2, %v829_v46  ;;  %1563 = vrot.lane.b32.xlu1 %v1509_v44, %s3699_s23 }
 0x14d   : > { %1444 = vrot.lane.b32.xlu0 %v4121_v20, %s3698_s19 }
 0x14e   : > { %v1671_v47 = vpop.permute.xlu1 %1670  ;;  %v1310_v48 = vpop.permute.xlu0 %1309  ;;  %v1743_v49 = vld [vmem:[#allocation4 + $0x30] sm:$0xff] }
 0x14f   : > { %1724 = vst.msk [vmem:[#allocation4 + $0x38] sm:$0xff] %vm1716_vm9, %v1671_v47  ;;  %3534 = vmatprep.mubr.msk.f32.mxu0 %vm1773_vm10, %v1743_v49 }
 0x150   : > { %1362 = vst.msk [vmem:[#allocation4 + $0x40] sm:$0xff] %vm1353_vm6, %v1310_v48  ;;  %1204 = vrot.lane.b32.xlu1 %v1509_v44, %s3696_s14 }
 0x151   : > { %1085 = vrot.lane.b32.xlu0 %v4121_v20, %s3695_s12  ;;  %v1631_v20 = vld [vmem:[#allocation2 + $0xe2] sm:$0xff] }
 0x152   : > { %v950_v51 = vpop.permute.xlu1 %949  ;;  %v831_v52 = vpop.permute.xlu0 %830 }
 0x153   : > { %1000 = vst.msk [vmem:[#allocation4 + $0x50] sm:$0xff] %vm989_vm3, %v950_v51 }
 0x154   : > { %880 = vst.msk [vmem:[#allocation4 + $0x58] sm:$0xff] %vm868_vm2, %v831_v52  ;;  %1684 = vrot.lane.b32.xlu1 %v1630_v14, %s3700_s18 }
 0x155   : > { %1565 = vrot.lane.b32.xlu0 %v1510_v50, %s3699_s23 }
 0x156   : > { %v1431_v53 = vpop.permute.xlu1 %1430  ;;  %v1312_v54 = vpop.permute.xlu0 %1311  ;;  %v1744_v55 = vld [vmem:[#allocation4 + $0x38] sm:$0xff] }
 0x157   : > { %1483 = vst.msk [vmem:[#allocation4 + $0x40] sm:$0xff] %vm1474_vm7, %v1431_v53  ;;  %3535 = vmatmul.mubr.msk.f32.gmra.mxu0 %vm1773_vm10, %v1744_v55 }
 0x158   : > { %1363 = vst.msk [vmem:[#allocation4 + $0x48] sm:$0xff] %vm1353_vm6, %v1312_v54  ;;  %1206 = vrot.lane.b32.xlu1 %v1510_v50, %s3696_s14 }
 0x159   : > { %844 = vrot.lane.b32.xlu0 %v1509_v44, %s3692_s0 }
 0x15a   : > { %v1072_v56 = vpop.permute.xlu1 %1071  ;;  %v952_v57 = vpop.permute.xlu0 %951 }
 0x15b   : > { %1122 = vst.msk [vmem:[#allocation4 + $0x50] sm:$0xff] %vm1111_vm4, %v1072_v56 }
 0x15c   : > { %1001 = vst.msk [vmem:[#allocation4 + $0x58] sm:$0xff] %vm989_vm3, %v952_v57  ;;  %1686 = vrot.lane.b32.xlu1 %v1631_v20, %s3700_s18 }
 0x15d   : > { %1325 = vrot.lane.b32.xlu0 %v1630_v14, %s3697_s15 }
 0x15e   : > { %v1552_v58 = vpop.permute.xlu1 %1551  ;;  %v1433_v59 = vpop.permute.xlu0 %1432 }
 0x15f   : > { %1604 = vst.msk [vmem:[#allocation4 + $0x40] sm:$0xff] %vm1595_vm8, %v1552_v58 }
 0x160   : > { %1484 = vst.msk [vmem:[#allocation4 + $0x48] sm:$0xff] %vm1474_vm7, %v1433_v59  ;;  %965 = vrot.lane.b32.xlu1 %v1630_v14, %s3694_s1  ;;  %v4374_v59 = vld [vmem:[%s4964_s6] ss:$0 sm:$0xff] }
 0x161   : > { %846 = vrot.lane.b32.xlu0 %v1510_v50, %s3692_s0 }
 0x162   : > { %v1193_v61 = vpop.permute.xlu1 %1192  ;;  %v1074_v63 = vpop.permute.xlu0 %1073 }
 0x163   : > { %1243 = vst.msk [vmem:[#allocation4 + $0x50] sm:$0xff] %vm1232_vm5, %v1193_v61 }
 0x164   : > { %1123 = vst.msk [vmem:[#allocation4 + $0x58] sm:$0xff] %vm1111_vm4, %v1074_v63  ;;  %1446 = vrot.lane.b32.xlu1 %v1390_v60, %s3698_s19 }
 0x165   : > { %1327 = vrot.lane.b32.xlu0 %v1631_v20, %s3697_s15 }
 0x166   : > { %v1673_v1 = vpop.permute.xlu1 %1672  ;;  %v1554_v2 = vpop.permute.xlu0 %1553 }
 0x167   : > { %1725 = vst.msk [vmem:[#allocation4 + $0x40] sm:$0xff] %vm1716_vm9, %v1673_v1 }
 0x168   : > { %1605 = vst.msk [vmem:[#allocation4 + $0x48] sm:$0xff] %vm1595_vm8, %v1554_v2  ;;  %1087 = vrot.lane.b32.xlu1 %v1390_v60, %s3695_s12 }
 0x169   : > { %967 = vrot.lane.b32.xlu0 %v1631_v20, %s3694_s1 }
 0x16a   : > { %v1195_v62 = vpop.permute.xlu1 %1194  ;;  %v833_v7 = vpop.permute.xlu0 %832 }
 0x16b   : > { %1244 = vst.msk [vmem:[#allocation4 + $0x58] sm:$0xff] %vm1232_vm5, %v1195_v62 }
 0x16c   : > { %881 = vst.msk [vmem:[#allocation4 + $0x60] sm:$0xff] %vm868_vm2, %v833_v7  ;;  %1567 = vrot.lane.b32.xlu1 %v1511_v5, %s3699_s23 }
 0x16d   : > { %1448 = vrot.lane.b32.xlu0 %v1391_v3, %s3698_s19 }
 0x16e   : > { %v1675_v8 = vpop.permute.xlu1 %1674  ;;  %v1745_v10 = vld [vmem:[#allocation4 + $0x40] sm:$0xff] }
 0x16f   : > { %v1314_v9 = vpop.permute.xlu0 %1313  ;;  %1726 = vst.msk [vmem:[#allocation4 + $0x48] sm:$0xff] %vm1716_vm9, %v1675_v8  ;;  %3537 = vmatprep.mubr.msk.f32.mxu0 %vm1773_vm10, %v1745_v10 }
 0x170   : > { %1364 = vst.msk [vmem:[#allocation4 + $0x50] sm:$0xff] %vm1353_vm6, %v1314_v9  ;;  %1208 = vrot.lane.b32.xlu1 %v1511_v5, %s3696_s14 }
 0x171   : > { %1089 = vrot.lane.b32.xlu0 %v1391_v3, %s3695_s12 }
 0x172   : > { %v954_v0 = vpop.permute.xlu1 %953 }
 0x173   : > { %v835_v13 = vpop.permute.xlu0 %834  ;;  %1002 = vst.msk [vmem:[#allocation4 + $0x60] sm:$0xff] %vm989_vm3, %v954_v0 }
 0x174   : > { %882 = vst.msk [vmem:[#allocation4 + $0x68] sm:$0xff] %vm868_vm2, %v835_v13  ;;  %1688 = vrot.lane.b32.xlu1 %v1632_v12, %s3700_s18 }
 0x175   : > { %1569 = vrot.lane.b32.xlu0 %v1512_v11, %s3699_s23 }
 0x176   : > { %v1435_v15 = vpop.permute.xlu1 %1434  ;;  %v1746_v17 = vld [vmem:[#allocation4 + $0x48] sm:$0xff] }
 0x177   : > { %v1316_v16 = vpop.permute.xlu0 %1315  ;;  %1485 = vst.msk [vmem:[#allocation4 + $0x50] sm:$0xff] %vm1474_vm7, %v1435_v15  ;;  %3538 = vmatmul.mubr.msk.f32.gmra.mxu0 %vm1773_vm10, %v1746_v17 }
 0x178   : > { %1365 = vst.msk [vmem:[#allocation4 + $0x58] sm:$0xff] %vm1353_vm6, %v1316_v16  ;;  %1329 = vrot.lane.b32.xlu1 %v1632_v12, %s3697_s15 }
 0x179   : > { %1210 = vrot.lane.b32.xlu0 %v1512_v11, %s3696_s14 }
 0x17a   : > { %v1076_v19 = vpop.permute.xlu1 %1075 }
 0x17b   : > { %v956_v21 = vpop.permute.xlu0 %955  ;;  %1124 = vst.msk [vmem:[#allocation4 + $0x60] sm:$0xff] %vm1111_vm4, %v1076_v19 }
 0x17c   : > { %1003 = vst.msk [vmem:[#allocation4 + $0x68] sm:$0xff] %vm989_vm3, %v956_v21  ;;  %1331 = vrot.lane.b32.xlu1 %v1633_v18, %s3697_s15 }
 0x17d   : > { %1690 = vrot.lane.b32.xlu0 %v1633_v18, %s3700_s18 }
 0x17e   : > { %v1556_v24 = vpop.permute.xlu1 %1555 }
 0x17f   : > { %v1437_v25 = vpop.permute.xlu0 %1436  ;;  %1606 = vst.msk [vmem:[#allocation4 + $0x50] sm:$0xff] %vm1595_vm8, %v1556_v24 }
 0x180   : > { %1486 = vst.msk [vmem:[#allocation4 + $0x58] sm:$0xff] %vm1474_vm7, %v1437_v25  ;;  %1452 = vrot.lane.b32.xlu1 %v1393_v23, %s3698_s19 }
 0x181   : > { %1450 = vrot.lane.b32.xlu0 %v1392_v22, %s3698_s19 }
 0x182   : > { %v1197_v28 = vpop.permute.xlu1 %1196 }
 0x183   : > { %v1078_v4 = vpop.permute.xlu0 %1077  ;;  %1245 = vst.msk [vmem:[#allocation4 + $0x60] sm:$0xff] %vm1232_vm5, %v1197_v28 }
 0x184   : > { %1125 = vst.msk [vmem:[#allocation4 + $0x68] sm:$0xff] %vm1111_vm4, %v1078_v4  ;;  %1573 = vrot.lane.b32.xlu1 %v1514_v27, %s3699_s23 }
 0x185   : > { %1571 = vrot.lane.b32.xlu0 %v1513_v26, %s3699_s23 }
 0x186   : > { %v1677_v32 = vpop.permute.xlu1 %1676 }
 0x187   : > { %v1558_v33 = vpop.permute.xlu0 %1557  ;;  %1727 = vst.msk [vmem:[#allocation4 + $0x50] sm:$0xff] %vm1716_vm9, %v1677_v32 }
 0x188   : > { %1607 = vst.msk [vmem:[#allocation4 + $0x58] sm:$0xff] %vm1595_vm8, %v1558_v33  ;;  %1694 = vrot.lane.b32.xlu1 %v1635_v31, %s3700_s18 }
 0x189   : > { %1692 = vrot.lane.b32.xlu0 %v1634_v29, %s3700_s18 }
 0x18a   : > { %v1199_v34 = vpop.permute.xlu1 %1198 }
 0x18b   : > { %v837_v35 = vpop.permute.xlu0 %836  ;;  %1246 = vst.msk [vmem:[#allocation4 + $0x68] sm:$0xff] %vm1232_vm5, %v1199_v34 }
 0x18c   : > { %883 = vst.msk [vmem:[#allocation4 + $0x70] sm:$0xff] %vm868_vm2, %v837_v35 }
 0x18e   : > { %v1679_v6 = vpop.permute.xlu1 %1678  ;;  %v1747_v37 = vld [vmem:[#allocation4 + $0x50] sm:$0xff] }
 0x18f   : > { %v1318_v36 = vpop.permute.xlu0 %1317  ;;  %1728 = vst.msk [vmem:[#allocation4 + $0x58] sm:$0xff] %vm1716_vm9, %v1679_v6  ;;  %3540 = vmatprep.mubr.msk.f32.mxu0 %vm1773_vm10, %v1747_v37 }
 0x190   : > { %1366 = vst.msk [vmem:[#allocation4 + $0x60] sm:$0xff] %vm1353_vm6, %v1318_v36 }
 0x192   : > { %v958_v38 = vpop.permute.xlu1 %957 }
 0x193   : > { %v839_v39 = vpop.permute.xlu0 %838  ;;  %1004 = vst.msk [vmem:[#allocation4 + $0x70] sm:$0xff] %vm989_vm3, %v958_v38 }
 0x194   : > { %884 = vst.msk [vmem:[#allocation4 + $0x78] sm:$0xff] %vm868_vm2, %v839_v39 }
 0x196   : > { %v1439_v40 = vpop.permute.xlu1 %1438  ;;  %v1748_v42 = vld [vmem:[#allocation4 + $0x58] sm:$0xff] }
 0x197   : > { %v1320_v41 = vpop.permute.xlu0 %1319  ;;  %1487 = vst.msk [vmem:[#allocation4 + $0x60] sm:$0xff] %vm1474_vm7, %v1439_v40  ;;  %3541 = vmatmul.mubr.msk.f32.gmra.mxu0 %vm1773_vm10, %v1748_v42 }
 0x198   : > { %1367 = vst.msk [vmem:[#allocation4 + $0x68] sm:$0xff] %vm1353_vm6, %v1320_v41 }
 0x19a   : > { %v1080_v43 = vpop.permute.xlu1 %1079 }
 0x19b   : > { %v960_v44 = vpop.permute.xlu0 %959  ;;  %1126 = vst.msk [vmem:[#allocation4 + $0x70] sm:$0xff] %vm1111_vm4, %v1080_v43 }
 0x19c   : > { %1005 = vst.msk [vmem:[#allocation4 + $0x78] sm:$0xff] %vm989_vm3, %v960_v44 }
 0x19e   : > { %v1560_v45 = vpop.permute.xlu1 %1559 }
 0x19f   : > { %v1441_v46 = vpop.permute.xlu0 %1440  ;;  %1608 = vst.msk [vmem:[#allocation4 + $0x60] sm:$0xff] %vm1595_vm8, %v1560_v45 }
 0x1a0   : > { %1488 = vst.msk [vmem:[#allocation4 + $0x68] sm:$0xff] %vm1474_vm7, %v1441_v46 }
 0x1a2   : > { %v1201_v47 = vpop.permute.xlu1 %1200 }
 0x1a3   : > { %v1082_v48 = vpop.permute.xlu0 %1081  ;;  %1247 = vst.msk [vmem:[#allocation4 + $0x70] sm:$0xff] %vm1232_vm5, %v1201_v47 }
 0x1a4   : > { %1127 = vst.msk [vmem:[#allocation4 + $0x78] sm:$0xff] %vm1111_vm4, %v1082_v48 }
 0x1a6   : > { %v1681_v49 = vpop.permute.xlu1 %1680 }
 0x1a7   : > { %v1562_v14 = vpop.permute.xlu0 %1561  ;;  %1729 = vst.msk [vmem:[#allocation4 + $0x60] sm:$0xff] %vm1716_vm9, %v1681_v49 }
 0x1a8   : > { %1609 = vst.msk [vmem:[#allocation4 + $0x68] sm:$0xff] %vm1595_vm8, %v1562_v14 }
 0x1aa   : > { %v1203_v50 = vpop.permute.xlu1 %1202 }
 0x1ab   : > { %v841_v51 = vpop.permute.xlu0 %840  ;;  %1248 = vst.msk [vmem:[#allocation4 + $0x78] sm:$0xff] %vm1232_vm5, %v1203_v50 }
 0x1ac   : > { %885 = vst.msk [vmem:[#allocation4 + $0x80] sm:$0xff] %vm868_vm2, %v841_v51 }
 0x1ae   : > { %v1683_v52 = vpop.permute.xlu1 %1682  ;;  %v1749_v54 = vld [vmem:[#allocation4 + $0x60] sm:$0xff] }
 0x1af   : > { %v1322_v53 = vpop.permute.xlu0 %1321  ;;  %1730 = vst.msk [vmem:[#allocation4 + $0x68] sm:$0xff] %vm1716_vm9, %v1683_v52  ;;  %3543 = vmatprep.mubr.msk.f32.mxu0 %vm1773_vm10, %v1749_v54 }
 0x1b0   : > { %1368 = vst.msk [vmem:[#allocation4 + $0x70] sm:$0xff] %vm1353_vm6, %v1322_v53 }
 0x1b2   : > { %v962_v55 = vpop.permute.xlu1 %961 }
 0x1b3   : > { %v843_v20 = vpop.permute.xlu0 %842  ;;  %1006 = vst.msk [vmem:[#allocation4 + $0x80] sm:$0xff] %vm989_vm3, %v962_v55 }
 0x1b4   : > { %886 = vst.msk [vmem:[#allocation4 + $0x88] sm:$0xff] %vm868_vm2, %v843_v20 }
 0x1b6   : > { %v1443_v56 = vpop.permute.xlu1 %1442  ;;  %v1750_v58 = vld [vmem:[#allocation4 + $0x68] sm:$0xff] }
 0x1b7   : > { %v1324_v57 = vpop.permute.xlu0 %1323  ;;  %1489 = vst.msk [vmem:[#allocation4 + $0x70] sm:$0xff] %vm1474_vm7, %v1443_v56  ;;  %3544 = vmatmul.mubr.msk.f32.gmra.mxu0 %vm1773_vm10, %v1750_v58 }
 0x1b8   : > { %1369 = vst.msk [vmem:[#allocation4 + $0x78] sm:$0xff] %vm1353_vm6, %v1324_v57 }
 0x1ba   : > { %v1084_v60 = vpop.permute.xlu1 %1083 }
 0x1bb   : > { %v964_v61 = vpop.permute.xlu0 %963  ;;  %1128 = vst.msk [vmem:[#allocation4 + $0x80] sm:$0xff] %vm1111_vm4, %v1084_v60 }
 0x1bc   : > { %1007 = vst.msk [vmem:[#allocation4 + $0x88] sm:$0xff] %vm989_vm3, %v964_v61  ;;  %v3527_v63 = vpop.f32.mrf.mxu0 }
 0x1bd   : > { %v1906_v1 = vadd.f32 %v3527_v63, %v4374_v59 }
 0x1be   : > { %v1900_v2 = vpop.f32.mrf.mxu0  ;;  %v1564_v62 = vpop.permute.xlu1 %1563 }
 0x1bf   : > { %v2000_v3 = vmax.f32 %v1906_v1, 0.0  ;;  %v1901_v5 = vadd.f32 %v4374_v59, %v1900_v2  ;;  %v1445_v7 = vpop.permute.xlu0 %1444  ;;  %1610 = vst.msk [vmem:[#allocation4 + $0x70] sm:$0xff] %vm1595_vm8, %v1564_v62 }
 0x1c0   : > { %1490 = vst.msk [vmem:[#allocation4 + $0x78] sm:$0xff] %vm1474_vm7, %v1445_v7 }
 0x1c1   : > { %2020 = vst.msk [vmem:[#allocation3 + $0x9] sm:$0xff] %vm642_vm0, %v2000_v3  ;;  %v1999_v8 = vmax.f32 %v1901_v5, 0.0 }
 0x1c2   : > { %v1205_v9 = vpop.permute.xlu1 %1204 }
 0x1c3   : > { %2019 = vst.msk [vmem:[#allocation3 + $0x1] sm:$0xff] %vm642_vm0, %v1999_v8  ;;  %v1086_v10 = vpop.permute.xlu0 %1085 }
 0x1c4   : > { %1249 = vst.msk [vmem:[#allocation4 + $0x80] sm:$0xff] %vm1232_vm5, %v1205_v9 }
 0x1c5   : > { %1129 = vst.msk [vmem:[#allocation4 + $0x88] sm:$0xff] %vm1111_vm4, %v1086_v10 }
 0x1c6   : > { %v1685_v11 = vpop.permute.xlu1 %1684 }
 0x1c7   : > { %v1566_v12 = vpop.permute.xlu0 %1565  ;;  %1731 = vst.msk [vmem:[#allocation4 + $0x70] sm:$0xff] %vm1716_vm9, %v1685_v11 }
 0x1c8   : > { %1611 = vst.msk [vmem:[#allocation4 + $0x78] sm:$0xff] %vm1595_vm8, %v1566_v12 }
 0x1ca   : > { %v1207_v0 = vpop.permute.xlu1 %1206 }
 0x1cb   : > { %v845_v13 = vpop.permute.xlu0 %844  ;;  %1250 = vst.msk [vmem:[#allocation4 + $0x88] sm:$0xff] %vm1232_vm5, %v1207_v0 }
 0x1cc   : > { %887 = vst.msk [vmem:[#allocation4 + $0x90] sm:$0xff] %vm868_vm2, %v845_v13 }
 0x1ce   : > { %v1687_v15 = vpop.permute.xlu1 %1686  ;;  %v1751_v17 = vld [vmem:[#allocation4 + $0x70] sm:$0xff] }
 0x1cf   : > { %v1326_v16 = vpop.permute.xlu0 %1325  ;;  %1732 = vst.msk [vmem:[#allocation4 + $0x78] sm:$0xff] %vm1716_vm9, %v1687_v15  ;;  %3546 = vmatprep.mubr.msk.f32.mxu0 %vm1773_vm10, %v1751_v17 }
 0x1d0   : > { %1370 = vst.msk [vmem:[#allocation4 + $0x80] sm:$0xff] %vm1353_vm6, %v1326_v16 }
 0x1d2   : > { %v966_v19 = vpop.permute.xlu1 %965 }
 0x1d3   : > { %v847_v18 = vpop.permute.xlu0 %846  ;;  %1008 = vst.msk [vmem:[#allocation4 + $0x90] sm:$0xff] %vm989_vm3, %v966_v19 }
 0x1d4   : > { %888 = vst.msk [vmem:[#allocation4 + $0x98] sm:$0xff] %vm868_vm2, %v847_v18 }
 0x1d6   : > { %v1447_v22 = vpop.permute.xlu1 %1446  ;;  %v1752_v23 = vld [vmem:[#allocation4 + $0x78] sm:$0xff] }
 0x1d7   : > { %v1328_v21 = vpop.permute.xlu0 %1327  ;;  %1491 = vst.msk [vmem:[#allocation4 + $0x80] sm:$0xff] %vm1474_vm7, %v1447_v22  ;;  %v3530_v24 = vpop.f32.mrf.mxu0  ;;  %3547 = vmatmul.mubr.msk.f32.gmra.mxu0 %vm1773_vm10, %v1752_v23 }
 0x1d8   : > { %1371 = vst.msk [vmem:[#allocation4 + $0x88] sm:$0xff] %vm1353_vm6, %v1328_v21  ;;  %v1916_v25 = vadd.f32 %v3530_v24, %v4374_v59 }
 0x1d9   : > { %v1910_v26 = vpop.f32.mrf.mxu0 }
 0x1da   : > { %v2002_v27 = vmax.f32 %v1916_v25, 0.0  ;;  %v1911_v28 = vadd.f32 %v4374_v59, %v1910_v26  ;;  %v1088_v29 = vpop.permute.xlu1 %1087 }
 0x1db   : > { %v968_v4 = vpop.permute.xlu0 %967  ;;  %1130 = vst.msk [vmem:[#allocation4 + $0x90] sm:$0xff] %vm1111_vm4, %v1088_v29 }
 0x1dc   : > { %1009 = vst.msk [vmem:[#allocation4 + $0x98] sm:$0xff] %vm989_vm3, %v968_v4  ;;  %v2001_v31 = vmax.f32 %v1911_v28, 0.0 }
 0x1dd   : > { %2022 = vst.msk [vmem:[#allocation3 + $0x21] sm:$0xff] %vm642_vm0, %v2002_v27 }
 0x1de   : > { %2021 = vst.msk [vmem:[#allocation3 + $0x19] sm:$0xff] %vm642_vm0, %v2001_v31  ;;  %v1568_v33 = vpop.permute.xlu1 %1567 }
 0x1df   : > { %v1449_v32 = vpop.permute.xlu0 %1448  ;;  %1612 = vst.msk [vmem:[#allocation4 + $0x80] sm:$0xff] %vm1595_vm8, %v1568_v33 }
 0x1e0   : > { %1492 = vst.msk [vmem:[#allocation4 + $0x88] sm:$0xff] %vm1474_vm7, %v1449_v32 }
 0x1e2   : > { %v1209_v35 = vpop.permute.xlu1 %1208 }
 0x1e3   : > { %v1090_v34 = vpop.permute.xlu0 %1089  ;;  %1251 = vst.msk [vmem:[#allocation4 + $0x90] sm:$0xff] %vm1232_vm5, %v1209_v35 }
 0x1e4   : > { %1131 = vst.msk [vmem:[#allocation4 + $0x98] sm:$0xff] %vm1111_vm4, %v1090_v34 }
 0x1e6   : > { %v1689_v36 = vpop.permute.xlu1 %1688 }
 0x1e7   : > { %v1570_v6 = vpop.permute.xlu0 %1569  ;;  %1733 = vst.msk [vmem:[#allocation4 + $0x80] sm:$0xff] %vm1716_vm9, %v1689_v36 }
 0x1e8   : > { %1613 = vst.msk [vmem:[#allocation4 + $0x88] sm:$0xff] %vm1595_vm8, %v1570_v6 }
 0x1ea   : > { %v1330_v38 = vpop.permute.xlu1 %1329 }
 0x1eb   : > { %v1211_v37 = vpop.permute.xlu0 %1210  ;;  %1372 = vst.msk [vmem:[#allocation4 + $0x90] sm:$0xff] %vm1353_vm6, %v1330_v38 }
 0x1ec   : > { %1252 = vst.msk [vmem:[#allocation4 + $0x98] sm:$0xff] %vm1232_vm5, %v1211_v37 }
 0x1ee   : > { %v1332_v40 = vpop.permute.xlu1 %1331  ;;  %v1753_v41 = vld [vmem:[#allocation4 + $0x80] sm:$0xff] }
 0x1ef   : > { %v1691_v39 = vpop.permute.xlu0 %1690  ;;  %1373 = vst.msk [vmem:[#allocation4 + $0x98] sm:$0xff] %vm1353_vm6, %v1332_v40  ;;  %3549 = vmatprep.mubr.msk.f32.mxu0 %vm1773_vm10, %v1753_v41 }
 0x1f0   : > { %1734 = vst.msk [vmem:[#allocation4 + $0x88] sm:$0xff] %vm1716_vm9, %v1691_v39 }
 0x1f2   : > { %v1453_v43 = vpop.permute.xlu1 %1452 }
 0x1f3   : > { %v1451_v42 = vpop.permute.xlu0 %1450  ;;  %1494 = vst.msk [vmem:[#allocation4 + $0x98] sm:$0xff] %vm1474_vm7, %v1453_v43 }
 0x1f4   : > { %1493 = vst.msk [vmem:[#allocation4 + $0x90] sm:$0xff] %vm1474_vm7, %v1451_v42 }
 0x1f6   : > { %v1574_v45 = vpop.permute.xlu1 %1573 }
 0x1f7   : > { %v1572_v44 = vpop.permute.xlu0 %1571  ;;  %v1754_v46 = vld [vmem:[#allocation4 + $0x88] sm:$0xff]  ;;  %1615 = vst.msk [vmem:[#allocation4 + $0x98] sm:$0xff] %vm1595_vm8, %v1574_v45  ;;  %v3533_v47 = vpop.f32.mrf.mxu0 }
 0x1f8   : > { %1614 = vst.msk [vmem:[#allocation4 + $0x90] sm:$0xff] %vm1595_vm8, %v1572_v44  ;;  %3550 = vmatmul.mubr.msk.f32.gmra.mxu0 %vm1773_vm10, %v1754_v46  ;;  %v1926_v48 = vadd.f32 %v3533_v47, %v4374_v59 }
 0x1f9   : > { %v1920_v49 = vpop.f32.mrf.mxu0 }
 0x1fa   : > { %v2004_v14 = vmax.f32 %v1926_v48, 0.0  ;;  %v1921_v50 = vadd.f32 %v4374_v59, %v1920_v49  ;;  %v1695_v52 = vpop.permute.xlu1 %1694 }
 0x1fb   : > { %v1693_v51 = vpop.permute.xlu0 %1692  ;;  %1736 = vst.msk [vmem:[#allocation4 + $0x98] sm:$0xff] %vm1716_vm9, %v1695_v52 }
 0x1fc   : > { %1735 = vst.msk [vmem:[#allocation4 + $0x90] sm:$0xff] %vm1716_vm9, %v1693_v51  ;;  %v2003_v53 = vmax.f32 %v1921_v50, 0.0 }
 0x1fd   : > { %2024 = vst.msk [vmem:[#allocation3 + $0x39] sm:$0xff] %vm642_vm0, %v2004_v14 }
 0x1fe   : > { %2023 = vst.msk [vmem:[#allocation3 + $0x31] sm:$0xff] %vm642_vm0, %v2003_v53 }
 0x202   : > { %v1756_v55 = vld [vmem:[#allocation4 + $0x98] sm:$0xff] }
 0x203   : > { %v1755_v54 = vld [vmem:[#allocation4 + $0x90] sm:$0xff] }
 0x204   : > { %3552 = vmatprep.mubr.msk.f32.mxu0 %vm1773_vm10, %v1755_v54 }
 0x205   : > { %3553 = vmatmul.mubr.msk.f32.gmra.mxu0 %vm1773_vm10, %v1756_v55 }
 0x217   : > { %v3536_v20 = vpop.f32.mrf.mxu0 }
 0x218   : > { %v1936_v56 = vadd.f32 %v3536_v20, %v4374_v59 }
 0x219   : > { %v1930_v57 = vpop.f32.mrf.mxu0 }
 0x21a   : > { %v2006_v58 = vmax.f32 %v1936_v56, 0.0  ;;  %v1931_v60 = vadd.f32 %v4374_v59, %v1930_v57 }
 0x21c   : > { %2026 = vst.msk [vmem:[#allocation3 + $0x51] sm:$0xff] %vm642_vm0, %v2006_v58  ;;  %v2005_v61 = vmax.f32 %v1931_v60, 0.0 }
 0x21e   : > { %2025 = vst.msk [vmem:[#allocation3 + $0x49] sm:$0xff] %vm642_vm0, %v2005_v61 }
 0x237   : > { %v3539_v63 = vpop.f32.mrf.mxu0 }
 0x238   : > { %v1946_v1 = vadd.f32 %v3539_v63, %v4374_v59 }
 0x239   : > { %v1940_v2 = vpop.f32.mrf.mxu0 }
 0x23a   : > { %v2008_v3 = vmax.f32 %v1946_v1, 0.0  ;;  %v1941_v5 = vadd.f32 %v4374_v59, %v1940_v2 }
 0x23c   : > { %2028 = vst.msk [vmem:[#allocation3 + $0x69] sm:$0xff] %vm642_vm0, %v2008_v3  ;;  %v2007_v62 = vmax.f32 %v1941_v5, 0.0 }
 0x23e   : > { %2027 = vst.msk [vmem:[#allocation3 + $0x61] sm:$0xff] %vm642_vm0, %v2007_v62 }
 0x257   : > { %v3542_v7 = vpop.f32.mrf.mxu0 }
 0x258   : > { %v1956_v8 = vadd.f32 %v3542_v7, %v4374_v59 }
 0x259   : > { %v1950_v9 = vpop.f32.mrf.mxu0 }
 0x25a   : > { %v2010_v10 = vmax.f32 %v1956_v8, 0.0  ;;  %v1951_v11 = vadd.f32 %v4374_v59, %v1950_v9 }
 0x25c   : > { %2030 = vst.msk [vmem:[#allocation3 + $0x81] sm:$0xff] %vm642_vm0, %v2010_v10  ;;  %v2009_v12 = vmax.f32 %v1951_v11, 0.0 }
 0x25e   : > { %2029 = vst.msk [vmem:[#allocation3 + $0x79] sm:$0xff] %vm642_vm0, %v2009_v12 }
 0x277   : > { %v3545_v0 = vpop.f32.mrf.mxu0 }
 0x278   : > { %v1966_v13 = vadd.f32 %v3545_v0, %v4374_v59 }
 0x279   : > { %v1960_v15 = vpop.f32.mrf.mxu0 }
 0x27a   : > { %v2012_v16 = vmax.f32 %v1966_v13, 0.0  ;;  %v1961_v17 = vadd.f32 %v4374_v59, %v1960_v15 }
 0x27c   : > { %2032 = vst.msk [vmem:[#allocation3 + $0x99] sm:$0xff] %vm642_vm0, %v2012_v16  ;;  %v2011_v18 = vmax.f32 %v1961_v17, 0.0 }
 0x27e   : > { %2031 = vst.msk [vmem:[#allocation3 + $0x91] sm:$0xff] %vm642_vm0, %v2011_v18 }
 0x297   : > { %v3548_v19 = vpop.f32.mrf.mxu0 }
 0x298   : > { %v1976_v21 = vadd.f32 %v3548_v19, %v4374_v59 }
 0x299   : > { %v1970_v22 = vpop.f32.mrf.mxu0 }
 0x29a   : > { %v2014_v23 = vmax.f32 %v1976_v21, 0.0  ;;  %v1971_v24 = vadd.f32 %v4374_v59, %v1970_v22 }
 0x29c   : > { %2034 = vst.msk [vmem:[#allocation3 + $0xb1] sm:$0xff] %vm642_vm0, %v2014_v23  ;;  %v2013_v25 = vmax.f32 %v1971_v24, 0.0 }
 0x29e   : > { %2033 = vst.msk [vmem:[#allocation3 + $0xa9] sm:$0xff] %vm642_vm0, %v2013_v25 }
 0x2b8   : > { %v3551_v26 = vpop.f32.mrf.mxu0 }
 0x2b9   : > { %v1986_v27 = vadd.f32 %v3551_v26, %v4374_v59 }
 0x2ba   : > { %v1980_v28 = vpop.f32.mrf.mxu0 }
 0x2bb   : > { %v2016_v4 = vmax.f32 %v1986_v27, 0.0  ;;  %v1981_v29 = vadd.f32 %v4374_v59, %v1980_v28 }
 0x2bd   : > { %2036 = vst.msk [vmem:[#allocation3 + $0xc9] sm:$0xff] %vm642_vm0, %v2016_v4  ;;  %v2015_v31 = vmax.f32 %v1981_v29, 0.0 }
 0x2bf   : > { %2035 = vst.msk [vmem:[#allocation3 + $0xc1] sm:$0xff] %vm642_vm0, %v2015_v31 }
 0x2c5   : > { %v3554_v32 = vpop.f32.mrf.mxu0 }
 0x2c6   : > { %v1996_v33 = vadd.f32 %v3554_v32, %v4374_v59 }
 0x2c7   : > { %v1990_v34 = vpop.f32.mrf.mxu0 }
 0x2c8   : > { %v2018_v35 = vmax.f32 %v1996_v33, 0.0  ;;  %v1991_v6 = vadd.f32 %v4374_v59, %v1990_v34  ;;  %2041 = sbr.rel (%p3404_p0) target bundleno = 719 (0x2cf), region = 76 }
 0x2ca   : > { %2038 = vst.msk [vmem:[#allocation3 + $0xe1] sm:$0xff] %vm642_vm0, %v2018_v35  ;;  %v2017_v36 = vmax.f32 %v1991_v6, 0.0 }
 0x2cc   : > { %2037 = vst.msk [vmem:[#allocation3 + $0xd9] sm:$0xff] %vm642_vm0, %v2017_v36 }
 0x2cd   : > { %v3701_v37 = vmov 0.0  }
 0x2ce   : > { %2042 = vst.msk [vmem:[#allocation3 + $0x1] sm:$0xff] %vm642_vm0, %v3701_v37  ;;  %2043 = vst.msk [vmem:[#allocation3 + $0x9] sm:$0xff] %vm642_vm0, %v3701_v37 }
 0x2cf PF: > { %2046 = sbr.rel (%p3406_p2) target bundleno = 726 (0x2d6), region = 80 }
 0x2d4   : > { %v3702_v38 = vmov 0.0  }
 0x2d5   : > { %2048 = vst.msk [vmem:[#allocation3 + $0xd9] sm:$0xff] %vm642_vm0, %v3702_v38  ;;  %2049 = vst.msk [vmem:[#allocation3 + $0xe1] sm:$0xff] %vm642_vm0, %v3702_v38 }
 0x2d6 PF: > { %v2296_v40 = vld [vmem:[#allocation3 + $0x20] sm:$0xff]  ;;  %2060 = vst.msk [vmem:[#allocation3 + $0x11] sm:$0x1] %vm703_vm1, %v3693_v30  ;;  %2051 = vst.msk [vmem:[#allocation3 + $0x18] sm:$0x1] %vm703_vm1, %v3693_v30  ;;  %v4507_v42 = vld [vmem:[#allocation3 + $0x38] sm:$0xff] }
 0x2d7   : > { %v2198_v59 = vld [vmem:[#allocation3 + $0x2] sm:$0xff]  ;;  %2052 = vst.msk [vmem:[#allocation3 + $0x30] sm:$0x1] %vm703_vm1, %v3693_v30  ;;  %2061 = vst.msk [vmem:[#allocation3 + $0x29] sm:$0x1] %vm703_vm1, %v3693_v30  ;;  %v4511_v43 = vld [vmem:[#allocation3 + $0x50] sm:$0xff] }
 0x2d8   : > { %v2102_v39 = vld [vmem:[#allocation3 + $0x1] sm:$0xff]  ;;  %2062 = vst.msk [vmem:[#allocation3 + $0x41] sm:$0x1] %vm703_vm1, %v3693_v30  ;;  %2053 = vst.msk [vmem:[#allocation3 + $0x48] sm:$0x1] %vm703_vm1, %v3693_v30  ;;  %2230 = vrot.lane.b32.xlu1 %v2198_v59, %s3694_s1  ;;  %v2103_v41 = vld [vmem:[#allocation3 + $0x9] sm:$0xff] }
 0x2d9   : > { %2063 = vst.msk [vmem:[#allocation3 + $0x59] sm:$0x1] %vm703_vm1, %v3693_v30  ;;  %2054 = vst.msk [vmem:[#allocation3 + $0x60] sm:$0x1] %vm703_vm1, %v3693_v30  ;;  %2134 = vrot.lane.b32.xlu0 %v2102_v39, %s3692_s0  ;;  %v4515_v44 = vld [vmem:[#allocation3 + $0x68] sm:$0xff]  ;;  %v2104_v49 = vld [vmem:[#allocation3 + $0x19] sm:$0xff] }
 0x2da   : > { %2064 = vst.msk [vmem:[#allocation3 + $0x71] sm:$0x1] %vm703_vm1, %v3693_v30  ;;  %2050 = vst.msk [vmem:[#allocation3] sm:$0x1] %vm703_vm1, %v3693_v30  ;;  %v4534_v52 = vld [vmem:[#allocation3 + $0x80] sm:$0xff]  ;;  %v2895_v57 = vld [vmem:[%s4965_s7 + $0x38] sm:$0xff] }
 0x2db   : > { %2055 = vst.msk [vmem:[#allocation3 + $0x78] sm:$0x1] %vm703_vm1, %v3693_v30  ;;  %2065 = vst.msk [vmem:[#allocation3 + $0x89] sm:$0x1] %vm703_vm1, %v3693_v30  ;;  %v2487_v53 = vld [vmem:[#allocation3 + $0x1a] sm:$0xff]  ;;  %v2894_v58 = vld [vmem:[%s4965_s7 + $0x30] sm:$0xff] }
 0x2dc   : > { %2056 = vst.msk [vmem:[#allocation3 + $0x90] sm:$0x1] %vm703_vm1, %v3693_v30  ;;  %2066 = vst.msk [vmem:[#allocation3 + $0xa1] sm:$0x1] %vm703_vm1, %v3693_v30  ;;  %2329 = vrot.lane.b32.xlu1 %v2296_v40, %s3695_s12  ;;  %v2392_v54 = vld [vmem:[#allocation3 + $0x21] sm:$0xff]  ;;  %v2680_v60 = vld [vmem:[#allocation3 + $0x31] sm:$0xff] }
 0x2dd   : > { %2057 = vst.msk [vmem:[#allocation3 + $0xa8] sm:$0x1] %vm703_vm1, %v3693_v30  ;;  %2067 = vst.msk [vmem:[#allocation3 + $0xb9] sm:$0x1] %vm703_vm1, %v3693_v30  ;;  %2136 = vrot.lane.b32.xlu0 %v2103_v41, %s3692_s0  ;;  %v2199_v45 = vld [vmem:[#allocation3 + $0xa] sm:$0xff]  ;;  %v2295_v46 = vld [vmem:[#allocation3 + $0x18] sm:$0xff] }
 0x2de   : > { %2058 = vst.msk [vmem:[#allocation3 + $0xc0] sm:$0x1] %vm703_vm1, %v3693_v30  ;;  %2068 = vst.msk [vmem:[#allocation3 + $0xd1] sm:$0x1] %vm703_vm1, %v3693_v30  ;;  %v2584_v47 = vld [vmem:[#allocation3 + $0x30] sm:$0xff]  ;;  %v2488_v55 = vld [vmem:[#allocation3 + $0x22] sm:$0xff] }
 0x2df   : > { %2059 = vst.msk [vmem:[#allocation3 + $0xd8] sm:$0x1] %vm703_vm1, %v3693_v30  ;;  %2069 = vst.msk [vmem:[#allocation3 + $0xe9] sm:$0x1] %vm703_vm1, %v3693_v30  ;;  %v2071_v30 = vld [vmem:[#allocation3 + $0x8] sm:$0xff]  ;;  %v2896_v56 = vld [vmem:[%s4965_s7 + $0x40] sm:$0xff] }
 0x2e0   : > { %2089 = vst.msk [vmem:[#allocation4 + $0x18] sm:$0xff] %vm642_vm0, %v2296_v40  ;;  %2091 = vst.msk [vmem:[#allocation4 + $0x28] sm:$0xff] %vm642_vm0, %v4507_v42  ;;  %v4522_v48 = vld [vmem:[#allocation3 + $0x48] sm:$0xff]  ;;  %2232 = vrot.lane.b32.xlu1 %v2199_v45, %s3694_s1  ;;  %v4528_v14 = vld [vmem:[#allocation3 + $0x60] sm:$0xff]  ;;  %3555 = vmatprep.subr.mxu1 %v2896_v56 }
 0x2e1   : > { %2093 = vst.msk [vmem:[#allocation4 + $0x38] sm:$0xff] %vm642_vm0, %v4511_v43  ;;  %2095 = vst.msk [vmem:[#allocation4 + $0x48] sm:$0xff] %vm642_vm0, %v4515_v44  ;;  %2327 = vrot.lane.b32.xlu0 %v2295_v46, %s3695_s12  ;;  %v2070_v50 = vld [vmem:[#allocation3] sm:$0xff]  ;;  %3556 = vmatpush3.msra.mxu1 %v2896_v56  ;;  %v2893_v61 = vld [vmem:[%s4965_s7 + $0x28] sm:$0xff] }
 0x2e2   : > { %2087 = vst.msk [vmem:[#allocation4 + $0x8] sm:$0xff] %vm642_vm0, %v2071_v30  ;;  %2088 = vst.msk [vmem:[#allocation4 + $0x10] sm:$0xff] %vm642_vm0, %v2295_v46  ;;  %v4532_v51 = vld [vmem:[#allocation3 + $0x78] sm:$0xff]  ;;  %3557 = vmatprep.subr.mxu1 %v2895_v57  ;;  %v2892_v1 = vld [vmem:[%s4965_s7 + $0x20] sm:$0xff] }
 0x2e3   : > { %2090 = vst.msk [vmem:[#allocation4 + $0x20] sm:$0xff] %vm642_vm0, %v2584_v47  ;;  %2092 = vst.msk [vmem:[#allocation4 + $0x30] sm:$0xff] %vm642_vm0, %v4522_v48  ;;  %v4549_v20 = vld [vmem:[#allocation3 + $0x90] sm:$0xff]  ;;  %3558 = vmatpush3.msra.mxu1 %v2895_v57  ;;  %v4569_v63 = vld [vmem:[#allocation3 + $0x98] sm:$0xff] }
 0x2e4   : > { %2094 = vst.msk [vmem:[#allocation4 + $0x40] sm:$0xff] %vm642_vm0, %v4528_v14  ;;  %2086 = vst.msk [vmem:[#allocation4] sm:$0xff] %vm642_vm0, %v2070_v50  ;;  %2138 = vrot.lane.b32.xlu1 %v2104_v49, %s3692_s0  ;;  %3559 = vmatprep.subr.mxu1 %v2894_v58  ;;  %v2891_v2 = vld [vmem:[%s4965_s7 + $0x18] sm:$0xff]  ;;  %v2890_v62 = vld [vmem:[%s4965_s7 + $0x10] sm:$0xff] }
 0x2e5   : > { %2096 = vst.msk [vmem:[#allocation4 + $0x50] sm:$0xff] %vm642_vm0, %v4532_v51  ;;  %2097 = vst.msk [vmem:[#allocation4 + $0x58] sm:$0xff] %vm642_vm0, %v4534_v52  ;;  %2423 = vrot.lane.b32.xlu0 %v2104_v49, %s3696_s14  ;;  %3560 = vmatpush3.msra.mxu1 %v2894_v58  ;;  %v2776_v3 = vld [vmem:[#allocation3 + $0x32] sm:$0xff]  ;;  %v2889_v7 = vld [vmem:[%s4965_s7 + $0x8] sm:$0xff] }
 0x2e6   : > { %2098 = vst.msk [vmem:[#allocation4 + $0x60] sm:$0xff] %vm642_vm0, %v4549_v20  ;;  %2099 = vst.msk [vmem:[#allocation4 + $0x68] sm:$0xff] %vm642_vm0, %v4569_v63  ;;  %3561 = vmatprep.subr.mxu1 %v2893_v61  ;;  %v2681_v5 = vld [vmem:[#allocation3 + $0x39] sm:$0xff]  ;;  %v4602_v10 = vld [vmem:[#allocation3 + $0xa8] sm:$0xff] }
 0x2e7   : > { %3562 = vmatpush3.msra.mxu1 %v2893_v61  ;;  %v2888_v8 = vld [vmem:[%s4965_s7] sm:$0xff]  ;;  %2100 = vst.msk [vmem:[#allocation4 + $0x70] sm:$0xff] %vm642_vm0, %v4602_v10  ;;  %v2682_v11 = vld [vmem:[#allocation3 + $0x49] sm:$0xff]  ;;  %v2683_v13 = vld [vmem:[#allocation3 + $0x51] sm:$0xff] }
 0x2e8   : > { %2519 = vrot.lane.b32.xlu1 %v2487_v53, %s3697_s15  ;;  %3563 = vmatprep.subr.mxu1 %v2892_v1  ;;  %v2777_v9 = vld [vmem:[#allocation3 + $0x3a] sm:$0xff]  ;;  %v4612_v12 = vld [vmem:[#allocation3 + $0xb0] sm:$0xff]  ;;  %v2780_v17 = vld [vmem:[#allocation3 + $0x62] sm:$0xff] }
 0x2e9   : > { %2425 = vrot.lane.b32.xlu0 %v2392_v54, %s3696_s14  ;;  %3564 = vmatpush3.msra.mxu1 %v2892_v1  ;;  %2101 = vst.msk [vmem:[#allocation4 + $0x78] sm:$0xff] %vm642_vm0, %v4612_v12  ;;  %v2778_v0 = vld [vmem:[#allocation3 + $0x4a] sm:$0xff]  ;;  %v2779_v15 = vld [vmem:[#allocation3 + $0x52] sm:$0xff]  ;;  %v2684_v16 = vld [vmem:[#allocation3 + $0x61] sm:$0xff] }
 0x2ea   : > { %3565 = vmatprep.subr.mxu1 %v2891_v2  ;;  %v2685_v18 = vld [vmem:[#allocation3 + $0x69] sm:$0xff]  ;;  %v2686_v27 = vld [vmem:[#allocation3 + $0x79] sm:$0xff]  ;;  %v2687_v33 = vld [vmem:[#allocation3 + $0x81] sm:$0xff] }
 0x2eb   : > { %3566 = vmatpush3.msra.mxu1 %v2891_v2  ;;  %v2781_v19 = vld [vmem:[#allocation3 + $0x6a] sm:$0xff]  ;;  %v2782_v32 = vld [vmem:[#allocation3 + $0x7a] sm:$0xff]  ;;  %v2783_v37 = vld [vmem:[#allocation3 + $0x82] sm:$0xff] }
 0x2ec   : > { %2234 = vrot.lane.b32.xlu1 %v2487_v53, %s3694_s1  ;;  %3567 = vmatprep.subr.mxu1 %v2890_v62  ;;  %v2688_v30 = vld [vmem:[#allocation3 + $0x91] sm:$0xff]  ;;  %v2689_v50 = vld [vmem:[#allocation3 + $0x99] sm:$0xff] }
 0x2ed   : > { %2140 = vrot.lane.b32.xlu0 %v2392_v54, %s3692_s0  ;;  %3568 = vmatpush3.msra.mxu1 %v2890_v62 }
 0x2ee   : > { %3569 = vmatprep.subr.mxu1 %v2889_v7 }
 0x2ef   : > { %3570 = vmatpush3.msra.mxu1 %v2889_v7 }
 0x2f0   : > { %2616 = vrot.lane.b32.xlu1 %v2584_v47, %s3698_s19  ;;  %3571 = vmatprep.subr.mxu1 %v2888_v8 }
 0x2f1   : > { %2521 = vrot.lane.b32.xlu0 %v2488_v55, %s3697_s15  ;;  %3572 = vmatpush3.msra.mxu1 %v2888_v8 }
 0x2f4   : > { %2331 = vrot.lane.b32.xlu1 %v2584_v47, %s3695_s12 }
 0x2f5   : > { %2236 = vrot.lane.b32.xlu0 %v2488_v55, %s3694_s1 }
 0x2f8   : > { %2712 = vrot.lane.b32.xlu1 %v2680_v60, %s3699_s23 }
 0x2f9   : > { %2618 = vrot.lane.b32.xlu0 %v4507_v42, %s3698_s19 }
 0x2fc   : > { %2427 = vrot.lane.b32.xlu1 %v2680_v60, %s3696_s14 }
 0x2fd   : > { %2333 = vrot.lane.b32.xlu0 %v4507_v42, %s3695_s12 }
 0x300   : > { %2808 = vrot.lane.b32.xlu1 %v2776_v3, %s3700_s18 }
 0x301   : > { %2714 = vrot.lane.b32.xlu0 %v2681_v5, %s3699_s23 }
 0x304   : > { %2429 = vrot.lane.b32.xlu1 %v2681_v5, %s3696_s14 }
 0x305   : > { %2142 = vrot.lane.b32.xlu0 %v2680_v60, %s3692_s0 }
 0x308   : > { %2810 = vrot.lane.b32.xlu1 %v2777_v9, %s3700_s18 }
 0x309   : > { %2523 = vrot.lane.b32.xlu0 %v2776_v3, %s3697_s15 }
 0x30c   : > { %2238 = vrot.lane.b32.xlu1 %v2776_v3, %s3694_s1  ;;  %v2690_v3 = vld [vmem:[#allocation3 + $0xa9] sm:$0xff] }
 0x30d   : > { %2144 = vrot.lane.b32.xlu0 %v2681_v5, %s3692_s0 }
 0x310   : > { %2620 = vrot.lane.b32.xlu1 %v4522_v48, %s3698_s19 }
 0x311   : > { %2525 = vrot.lane.b32.xlu0 %v2777_v9, %s3697_s15 }
 0x314   : > { %2335 = vrot.lane.b32.xlu1 %v4522_v48, %s3695_s12 }
 0x315   : > { %2240 = vrot.lane.b32.xlu0 %v2777_v9, %s3694_s1 }
 0x318   : > { %2716 = vrot.lane.b32.xlu1 %v2682_v11, %s3699_s23 }
 0x319   : > { %2622 = vrot.lane.b32.xlu0 %v4511_v43, %s3698_s19 }
 0x31c   : > { %2431 = vrot.lane.b32.xlu1 %v2682_v11, %s3696_s14 }
 0x31d   : > { %2337 = vrot.lane.b32.xlu0 %v4511_v43, %s3695_s12 }
 0x320   : > { %2812 = vrot.lane.b32.xlu1 %v2778_v0, %s3700_s18 }
 0x321   : > { %2718 = vrot.lane.b32.xlu0 %v2683_v13, %s3699_s23 }
 0x324   : > { %2433 = vrot.lane.b32.xlu1 %v2683_v13, %s3696_s14 }
 0x325   : > { %2146 = vrot.lane.b32.xlu0 %v2682_v11, %s3692_s0  ;;  %v2691_v11 = vld [vmem:[#allocation3 + $0xb1] sm:$0xff] }
 0x328   : > { %2814 = vrot.lane.b32.xlu1 %v2779_v15, %s3700_s18 }
 0x329   : > { %2527 = vrot.lane.b32.xlu0 %v2778_v0, %s3697_s15 }
 0x32c   : > { %2242 = vrot.lane.b32.xlu1 %v2778_v0, %s3694_s1 }
 0x32d   : > { %2148 = vrot.lane.b32.xlu0 %v2683_v13, %s3692_s0 }
 0x330   : > { %2624 = vrot.lane.b32.xlu1 %v4528_v14, %s3698_s19 }
 0x331   : > { %2529 = vrot.lane.b32.xlu0 %v2779_v15, %s3697_s15 }
 0x334   : > { %2339 = vrot.lane.b32.xlu1 %v4528_v14, %s3695_s12  ;;  %v2784_v14 = vld [vmem:[#allocation3 + $0x92] sm:$0xff] }
 0x335   : > { %2244 = vrot.lane.b32.xlu0 %v2779_v15, %s3694_s1 }
 0x338   : > { %2720 = vrot.lane.b32.xlu1 %v2684_v16, %s3699_s23 }
 0x339   : > { %2626 = vrot.lane.b32.xlu0 %v4515_v44, %s3698_s19 }
 0x33c   : > { %2435 = vrot.lane.b32.xlu1 %v2684_v16, %s3696_s14 }
 0x33d   : > { %2341 = vrot.lane.b32.xlu0 %v4515_v44, %s3695_s12 }
 0x340   : > { %2816 = vrot.lane.b32.xlu1 %v2780_v17, %s3700_s18 }
 0x341   : > { %2722 = vrot.lane.b32.xlu0 %v2685_v18, %s3699_s23 }
 0x344   : > { %2437 = vrot.lane.b32.xlu1 %v2685_v18, %s3696_s14 }
 0x345   : > { %2150 = vrot.lane.b32.xlu0 %v2684_v16, %s3692_s0 }
 0x348   : > { %2818 = vrot.lane.b32.xlu1 %v2781_v19, %s3700_s18 }
 0x349   : > { %2531 = vrot.lane.b32.xlu0 %v2780_v17, %s3697_s15 }
 0x34a   : > { %v2231_v21 = vpop.permute.xlu1 %2230 }
 0x34b   : > { %v2135_v22 = vpop.permute.xlu0 %2134 }
 0x34c   : > { %2182 = vst.msk [vmem:[#allocation4] sm:$0xff] %vm868_vm2, %v2135_v22  ;;  %2246 = vrot.lane.b32.xlu1 %v2780_v17, %s3694_s1 }
 0x34d   : > { %2278 = vst.msk [vmem:[#allocation4] sm:$0xff] %vm989_vm3, %v2231_v21  ;;  %2152 = vrot.lane.b32.xlu0 %v2685_v18, %s3692_s0 }
 0x34e   : > { %v2330_v23 = vpop.permute.xlu1 %2329 }
 0x34f   : > { %v2137_v24 = vpop.permute.xlu0 %2136 }
 0x350   : > { %2183 = vst.msk [vmem:[#allocation4 + $0x8] sm:$0xff] %vm868_vm2, %v2137_v24  ;;  %2628 = vrot.lane.b32.xlu1 %v4532_v51, %s3698_s19 }
 0x351   : > { %2533 = vrot.lane.b32.xlu0 %v2781_v19, %s3697_s15 }
 0x352   : > { %v2233_v25 = vpop.permute.xlu1 %2232 }
 0x353   : > { %v2328_v26 = vpop.permute.xlu0 %2327  ;;  %2279 = vst.msk [vmem:[#allocation4 + $0x8] sm:$0xff] %vm989_vm3, %v2233_v25 }
 0x354   : > { %2375 = vst.msk [vmem:[#allocation4] sm:$0xff] %vm1111_vm4, %v2328_v26  ;;  %2376 = vst.msk [vmem:[#allocation4 + $0x8] sm:$0xff] %vm1111_vm4, %v2330_v23  ;;  %2343 = vrot.lane.b32.xlu1 %v4532_v51, %s3695_s12  ;;  %v2596_v23 = vld [vmem:[#allocation3 + $0xc0] sm:$0xff] }
 0x355   : > { %2248 = vrot.lane.b32.xlu0 %v2781_v19, %s3694_s1 }
 0x356   : > { %v2139_v28 = vpop.permute.xlu1 %2138 }
 0x357   : > { %v2424_v4 = vpop.permute.xlu0 %2423  ;;  %2184 = vst.msk [vmem:[#allocation4 + $0x10] sm:$0xff] %vm868_vm2, %v2139_v28  ;;  %v2597_v28 = vld [vmem:[#allocation3 + $0xc8] sm:$0xff] }
 0x358   : > { %2471 = vst.msk [vmem:[#allocation4] sm:$0xff] %vm1232_vm5, %v2424_v4  ;;  %2724 = vrot.lane.b32.xlu1 %v2686_v27, %s3699_s23  ;;  %v2692_v4 = vld [vmem:[#allocation3 + $0xc1] sm:$0xff] }
 0x359   : > { %2630 = vrot.lane.b32.xlu0 %v4534_v52, %s3698_s19 }
 0x35a   : > { %v2520_v29 = vpop.permute.xlu1 %2519 }
 0x35b   : > { %v2426_v31 = vpop.permute.xlu0 %2425  ;;  %2567 = vst.msk [vmem:[#allocation4] sm:$0xff] %vm1353_vm6, %v2520_v29 }
 0x35c   : > { %2472 = vst.msk [vmem:[#allocation4 + $0x8] sm:$0xff] %vm1232_vm5, %v2426_v31  ;;  %2439 = vrot.lane.b32.xlu1 %v2686_v27, %s3696_s14 }
 0x35d   : > { %2345 = vrot.lane.b32.xlu0 %v4534_v52, %s3695_s12 }
 0x35e   : > { %v2235_v34 = vpop.permute.xlu1 %2234 }
 0x35f   : > { %v2141_v35 = vpop.permute.xlu0 %2140  ;;  %2280 = vst.msk [vmem:[#allocation4 + $0x10] sm:$0xff] %vm989_vm3, %v2235_v34 }
 0x360   : > { %2185 = vst.msk [vmem:[#allocation4 + $0x18] sm:$0xff] %vm868_vm2, %v2141_v35  ;;  %2820 = vrot.lane.b32.xlu1 %v2782_v32, %s3700_s18  ;;  %v2693_v35 = vld [vmem:[#allocation3 + $0xc9] sm:$0xff] }
 0x361   : > { %2726 = vrot.lane.b32.xlu0 %v2687_v33, %s3699_s23 }
 0x362   : > { %v2617_v6 = vpop.permute.xlu1 %2616 }
 0x363   : > { %v2522_v36 = vpop.permute.xlu0 %2521  ;;  %2664 = vst.msk [vmem:[#allocation4] sm:$0xff] %vm1474_vm7, %v2617_v6  ;;  %v2788_v6 = vld [vmem:[#allocation3 + $0xc2] sm:$0xff] }
 0x364   : > { %2568 = vst.msk [vmem:[#allocation4 + $0x8] sm:$0xff] %vm1353_vm6, %v2522_v36  ;;  %2441 = vrot.lane.b32.xlu1 %v2687_v33, %s3696_s14 }
 0x365   : > { %2154 = vrot.lane.b32.xlu0 %v2686_v27, %s3692_s0 }
 0x366   : > { %v2332_v38 = vpop.permute.xlu1 %2331 }
 0x367   : > { %v2237_v59 = vpop.permute.xlu0 %2236  ;;  %2377 = vst.msk [vmem:[#allocation4 + $0x10] sm:$0xff] %vm1111_vm4, %v2332_v38 }
 0x368   : > { %2281 = vst.msk [vmem:[#allocation4 + $0x18] sm:$0xff] %vm989_vm3, %v2237_v59  ;;  %2822 = vrot.lane.b32.xlu1 %v2783_v37, %s3700_s18 }
 0x369   : > { %2535 = vrot.lane.b32.xlu0 %v2782_v32, %s3697_s15 }
 0x36a   : > { %v2713_v39 = vpop.permute.xlu1 %2712 }
 0x36b   : > { %v2619_v40 = vpop.permute.xlu0 %2618  ;;  %2760 = vst.msk [vmem:[#allocation4] sm:$0xff] %vm1595_vm8, %v2713_v39 }
 0x36c   : > { %2665 = vst.msk [vmem:[#allocation4 + $0x8] sm:$0xff] %vm1474_vm7, %v2619_v40  ;;  %2250 = vrot.lane.b32.xlu1 %v2782_v32, %s3694_s1  ;;  %v2789_v40 = vld [vmem:[#allocation3 + $0xca] sm:$0xff] }
 0x36d   : > { %2156 = vrot.lane.b32.xlu0 %v2687_v33, %s3692_s0 }
 0x36e   : > { %v2428_v41 = vpop.permute.xlu1 %2427 }
 0x36f   : > { %v2334_v42 = vpop.permute.xlu0 %2333  ;;  %2473 = vst.msk [vmem:[#allocation4 + $0x10] sm:$0xff] %vm1232_vm5, %v2428_v41 }
 0x370   : > { %2378 = vst.msk [vmem:[#allocation4 + $0x18] sm:$0xff] %vm1111_vm4, %v2334_v42  ;;  %2632 = vrot.lane.b32.xlu1 %v4549_v20, %s3698_s19 }
 0x371   : > { %2537 = vrot.lane.b32.xlu0 %v2783_v37, %s3697_s15 }
 0x372   : > { %v2809_v43 = vpop.permute.xlu1 %2808 }
 0x373   : > { %v2715_v44 = vpop.permute.xlu0 %2714  ;;  %2856 = vst.msk [vmem:[#allocation4] sm:$0xff] %vm1716_vm9, %v2809_v43  ;;  %v2598_v43 = vld [vmem:[#allocation3 + $0xd8] sm:$0xff] }
 0x374   : > { %2761 = vst.msk [vmem:[#allocation4 + $0x8] sm:$0xff] %vm1595_vm8, %v2715_v44  ;;  %2347 = vrot.lane.b32.xlu1 %v4549_v20, %s3695_s12  ;;  %v2785_v20 = vld [vmem:[#allocation3 + $0x9a] sm:$0xff] }
 0x375   : > { %2252 = vrot.lane.b32.xlu0 %v2783_v37, %s3694_s1  ;;  %v2599_v44 = vld [vmem:[#allocation3 + $0xe0] sm:$0xff] }
 0x376   : > { %v2430_v45 = vpop.permute.xlu1 %2429 }
 0x377   : > { %v2143_v46 = vpop.permute.xlu0 %2142  ;;  %2474 = vst.msk [vmem:[#allocation4 + $0x18] sm:$0xff] %vm1232_vm5, %v2430_v45 }
 0x378   : > { %2186 = vst.msk [vmem:[#allocation4 + $0x20] sm:$0xff] %vm868_vm2, %v2143_v46  ;;  %2728 = vrot.lane.b32.xlu1 %v2688_v30, %s3699_s23  ;;  %v2694_v46 = vld [vmem:[#allocation3 + $0xd9] sm:$0xff] }
 0x379   : > { %2634 = vrot.lane.b32.xlu0 %v4569_v63, %s3698_s19 }
 0x37a   : > { %v2811_v47 = vpop.permute.xlu1 %2810  ;;  %v2872_v49 = vld [vmem:[#allocation4] sm:$0xff] }
 0x37b   : > { %v2524_v48 = vpop.permute.xlu0 %2523  ;;  %2857 = vst.msk [vmem:[#allocation4 + $0x8] sm:$0xff] %vm1716_vm9, %v2811_v47  ;;  %3573 = vmatprep.mubr.msk.f32.mxu1 %vm1773_vm10, %v2872_v49  ;;  %v2695_v47 = vld [vmem:[#allocation3 + $0xe1] sm:$0xff] }
 0x37c   : > { %2569 = vst.msk [vmem:[#allocation4 + $0x10] sm:$0xff] %vm1353_vm6, %v2524_v48  ;;  %2443 = vrot.lane.b32.xlu1 %v2688_v30, %s3696_s14 }
 0x37d   : > { %2349 = vrot.lane.b32.xlu0 %v4569_v63, %s3695_s12 }
 0x37e   : > { %v2239_v51 = vpop.permute.xlu1 %2238 }
 0x37f   : > { %v2145_v52 = vpop.permute.xlu0 %2144  ;;  %2282 = vst.msk [vmem:[#allocation4 + $0x20] sm:$0xff] %vm989_vm3, %v2239_v51 }
 0x380   : > { %2187 = vst.msk [vmem:[#allocation4 + $0x28] sm:$0xff] %vm868_vm2, %v2145_v52  ;;  %2824 = vrot.lane.b32.xlu1 %v2784_v14, %s3700_s18 }
 0x381   : > { %2730 = vrot.lane.b32.xlu0 %v2689_v50, %s3699_s23 }
 0x382   : > { %v2621_v53 = vpop.permute.xlu1 %2620  ;;  %v2873_v55 = vld [vmem:[#allocation4 + $0x8] sm:$0xff] }
 0x383   : > { %v2526_v54 = vpop.permute.xlu0 %2525  ;;  %2666 = vst.msk [vmem:[#allocation4 + $0x10] sm:$0xff] %vm1474_vm7, %v2621_v53  ;;  %3574 = vmatmul.mubr.msk.f32.vlgmr.msra.gmra.mxu1 %vm1773_vm10, %v2873_v55 }
 0x384   : > { %2570 = vst.msk [vmem:[#allocation4 + $0x18] sm:$0xff] %vm1353_vm6, %v2526_v54  ;;  %2445 = vrot.lane.b32.xlu1 %v2689_v50, %s3696_s14 }
 0x385   : > { %2158 = vrot.lane.b32.xlu0 %v2688_v30, %s3692_s0 }
 0x386   : > { %v2336_v56 = vpop.permute.xlu1 %2335 }
 0x387   : > { %v2241_v57 = vpop.permute.xlu0 %2240  ;;  %2379 = vst.msk [vmem:[#allocation4 + $0x20] sm:$0xff] %vm1111_vm4, %v2336_v56 }
 0x388   : > { %2283 = vst.msk [vmem:[#allocation4 + $0x28] sm:$0xff] %vm989_vm3, %v2241_v57  ;;  %2826 = vrot.lane.b32.xlu1 %v2785_v20, %s3700_s18 }
 0x389   : > { %2539 = vrot.lane.b32.xlu0 %v2784_v14, %s3697_s15 }
 0x38a   : > { %v2717_v58 = vpop.permute.xlu1 %2716 }
 0x38b   : > { %v2623_v60 = vpop.permute.xlu0 %2622  ;;  %2762 = vst.msk [vmem:[#allocation4 + $0x10] sm:$0xff] %vm1595_vm8, %v2717_v58 }
 0x38c   : > { %2667 = vst.msk [vmem:[#allocation4 + $0x18] sm:$0xff] %vm1474_vm7, %v2623_v60  ;;  %2254 = vrot.lane.b32.xlu1 %v2784_v14, %s3694_s1  ;;  %v2790_v14 = vld [vmem:[#allocation3 + $0xda] sm:$0xff] }
 0x38d   : > { %2160 = vrot.lane.b32.xlu0 %v2689_v50, %s3692_s0  ;;  %v2791_v50 = vld [vmem:[#allocation3 + $0xe2] sm:$0xff] }
 0x38e   : > { %v2432_v61 = vpop.permute.xlu1 %2431 }
 0x38f   : > { %v2338_v63 = vpop.permute.xlu0 %2337  ;;  %2475 = vst.msk [vmem:[#allocation4 + $0x20] sm:$0xff] %vm1232_vm5, %v2432_v61 }
 0x390   : > { %2380 = vst.msk [vmem:[#allocation4 + $0x28] sm:$0xff] %vm1111_vm4, %v2338_v63  ;;  %2636 = vrot.lane.b32.xlu1 %v4602_v10, %s3698_s19 }
 0x391   : > { %2541 = vrot.lane.b32.xlu0 %v2785_v20, %s3697_s15 }
 0x392   : > { %v2813_v1 = vpop.permute.xlu1 %2812 }
 0x393   : > { %v2719_v2 = vpop.permute.xlu0 %2718  ;;  %2858 = vst.msk [vmem:[#allocation4 + $0x10] sm:$0xff] %vm1716_vm9, %v2813_v1 }
 0x394   : > { %2763 = vst.msk [vmem:[#allocation4 + $0x18] sm:$0xff] %vm1595_vm8, %v2719_v2  ;;  %2351 = vrot.lane.b32.xlu1 %v4602_v10, %s3695_s12  ;;  %v2786_v10 = vld [vmem:[#allocation3 + $0xaa] sm:$0xff] }
 0x395   : > { %2256 = vrot.lane.b32.xlu0 %v2785_v20, %s3694_s1 }
 0x396   : > { %v2434_v5 = vpop.permute.xlu1 %2433 }
 0x397   : > { %v2147_v62 = vpop.permute.xlu0 %2146  ;;  %2476 = vst.msk [vmem:[#allocation4 + $0x28] sm:$0xff] %vm1232_vm5, %v2434_v5 }
 0x398   : > { %2188 = vst.msk [vmem:[#allocation4 + $0x30] sm:$0xff] %vm868_vm2, %v2147_v62  ;;  %2732 = vrot.lane.b32.xlu1 %v2690_v3, %s3699_s23 }
 0x399   : > { %2638 = vrot.lane.b32.xlu0 %v4612_v12, %s3698_s19 }
 0x39a   : > { %v2815_v7 = vpop.permute.xlu1 %2814  ;;  %v2874_v9 = vld [vmem:[#allocation4 + $0x10] sm:$0xff] }
 0x39b   : > { %v2528_v8 = vpop.permute.xlu0 %2527  ;;  %2859 = vst.msk [vmem:[#allocation4 + $0x18] sm:$0xff] %vm1716_vm9, %v2815_v7  ;;  %3576 = vmatprep.mubr.msk.f32.mxu1 %vm1773_vm10, %v2874_v9 }
 0x39c   : > { %2571 = vst.msk [vmem:[#allocation4 + $0x20] sm:$0xff] %vm1353_vm6, %v2528_v8  ;;  %2447 = vrot.lane.b32.xlu1 %v2690_v3, %s3696_s14 }
 0x39d   : > { %2353 = vrot.lane.b32.xlu0 %v4612_v12, %s3695_s12  ;;  %v2787_v12 = vld [vmem:[#allocation3 + $0xb2] sm:$0xff] }
 0x39e   : > { %v2243_v0 = vpop.permute.xlu1 %2242 }
 0x39f   : > { %v2149_v13 = vpop.permute.xlu0 %2148  ;;  %2284 = vst.msk [vmem:[#allocation4 + $0x30] sm:$0xff] %vm989_vm3, %v2243_v0 }
 0x3a0   : > { %2189 = vst.msk [vmem:[#allocation4 + $0x38] sm:$0xff] %vm868_vm2, %v2149_v13  ;;  %2828 = vrot.lane.b32.xlu1 %v2786_v10, %s3700_s18 }
 0x3a1   : > { %2734 = vrot.lane.b32.xlu0 %v2691_v11, %s3699_s23 }
 0x3a2   : > { %v2625_v15 = vpop.permute.xlu1 %2624  ;;  %v2875_v17 = vld [vmem:[#allocation4 + $0x18] sm:$0xff] }
 0x3a3   : > { %v2530_v16 = vpop.permute.xlu0 %2529  ;;  %2668 = vst.msk [vmem:[#allocation4 + $0x20] sm:$0xff] %vm1474_vm7, %v2625_v15  ;;  %3577 = vmatmul.mubr.msk.f32.gmra.mxu1 %vm1773_vm10, %v2875_v17 }
 0x3a4   : > { %2572 = vst.msk [vmem:[#allocation4 + $0x28] sm:$0xff] %vm1353_vm6, %v2530_v16  ;;  %2449 = vrot.lane.b32.xlu1 %v2691_v11, %s3696_s14 }
 0x3a5   : > { %2162 = vrot.lane.b32.xlu0 %v2690_v3, %s3692_s0 }
 0x3a6   : > { %v2340_v18 = vpop.permute.xlu1 %2339 }
 0x3a7   : > { %v2245_v19 = vpop.permute.xlu0 %2244  ;;  %2381 = vst.msk [vmem:[#allocation4 + $0x30] sm:$0xff] %vm1111_vm4, %v2340_v18 }
 0x3a8   : > { %2285 = vst.msk [vmem:[#allocation4 + $0x38] sm:$0xff] %vm989_vm3, %v2245_v19  ;;  %2830 = vrot.lane.b32.xlu1 %v2787_v12, %s3700_s18 }
 0x3a9   : > { %2543 = vrot.lane.b32.xlu0 %v2786_v10, %s3697_s15 }
 0x3aa   : > { %v2721_v21 = vpop.permute.xlu1 %2720 }
 0x3ab   : > { %v2627_v22 = vpop.permute.xlu0 %2626  ;;  %2764 = vst.msk [vmem:[#allocation4 + $0x20] sm:$0xff] %vm1595_vm8, %v2721_v21 }
 0x3ac   : > { %2669 = vst.msk [vmem:[#allocation4 + $0x28] sm:$0xff] %vm1474_vm7, %v2627_v22  ;;  %2258 = vrot.lane.b32.xlu1 %v2786_v10, %s3694_s1 }
 0x3ad   : > { %2164 = vrot.lane.b32.xlu0 %v2691_v11, %s3692_s0 }
 0x3ae   : > { %v2436_v24 = vpop.permute.xlu1 %2435 }
 0x3af   : > { %v2342_v25 = vpop.permute.xlu0 %2341  ;;  %2477 = vst.msk [vmem:[#allocation4 + $0x30] sm:$0xff] %vm1232_vm5, %v2436_v24 }
 0x3b0   : > { %2382 = vst.msk [vmem:[#allocation4 + $0x38] sm:$0xff] %vm1111_vm4, %v2342_v25  ;;  %2640 = vrot.lane.b32.xlu1 %v2596_v23, %s3698_s19 }
 0x3b1   : > { %2545 = vrot.lane.b32.xlu0 %v2787_v12, %s3697_s15 }
 0x3b2   : > { %v2817_v26 = vpop.permute.xlu1 %2816 }
 0x3b3   : > { %v2723_v27 = vpop.permute.xlu0 %2722  ;;  %2860 = vst.msk [vmem:[#allocation4 + $0x20] sm:$0xff] %vm1716_vm9, %v2817_v26 }
 0x3b4   : > { %2765 = vst.msk [vmem:[#allocation4 + $0x28] sm:$0xff] %vm1595_vm8, %v2723_v27  ;;  %2355 = vrot.lane.b32.xlu1 %v2596_v23, %s3695_s12 }
 0x3b5   : > { %2260 = vrot.lane.b32.xlu0 %v2787_v12, %s3694_s1 }
 0x3b6   : > { %v2438_v29 = vpop.permute.xlu1 %2437 }
 0x3b7   : > { %v2151_v31 = vpop.permute.xlu0 %2150  ;;  %2478 = vst.msk [vmem:[#allocation4 + $0x38] sm:$0xff] %vm1232_vm5, %v2438_v29 }
 0x3b8   : > { %2190 = vst.msk [vmem:[#allocation4 + $0x40] sm:$0xff] %vm868_vm2, %v2151_v31  ;;  %2736 = vrot.lane.b32.xlu1 %v2692_v4, %s3699_s23 }
 0x3b9   : > { %2642 = vrot.lane.b32.xlu0 %v2597_v28, %s3698_s19 }
 0x3ba   : > { %v2819_v32 = vpop.permute.xlu1 %2818  ;;  %v2876_v34 = vld [vmem:[#allocation4 + $0x20] sm:$0xff] }
 0x3bb   : > { %v2532_v33 = vpop.permute.xlu0 %2531  ;;  %2861 = vst.msk [vmem:[#allocation4 + $0x28] sm:$0xff] %vm1716_vm9, %v2819_v32  ;;  %3579 = vmatprep.mubr.msk.f32.mxu1 %vm1773_vm10, %v2876_v34 }
 0x3bc   : > { %2573 = vst.msk [vmem:[#allocation4 + $0x30] sm:$0xff] %vm1353_vm6, %v2532_v33  ;;  %2451 = vrot.lane.b32.xlu1 %v2692_v4, %s3696_s14 }
 0x3bd   : > { %2357 = vrot.lane.b32.xlu0 %v2597_v28, %s3695_s12 }
 0x3be   : > { %v2247_v36 = vpop.permute.xlu1 %2246 }
 0x3bf   : > { %v2153_v37 = vpop.permute.xlu0 %2152  ;;  %2286 = vst.msk [vmem:[#allocation4 + $0x40] sm:$0xff] %vm989_vm3, %v2247_v36 }
 0x3c0   : > { %2191 = vst.msk [vmem:[#allocation4 + $0x48] sm:$0xff] %vm868_vm2, %v2153_v37  ;;  %2832 = vrot.lane.b32.xlu1 %v2788_v6, %s3700_s18 }
 0x3c1   : > { %2738 = vrot.lane.b32.xlu0 %v2693_v35, %s3699_s23 }
 0x3c2   : > { %v2629_v38 = vpop.permute.xlu1 %2628  ;;  %v2877_v39 = vld [vmem:[#allocation4 + $0x28] sm:$0xff] }
 0x3c3   : > { %v2534_v59 = vpop.permute.xlu0 %2533  ;;  %2670 = vst.msk [vmem:[#allocation4 + $0x30] sm:$0xff] %vm1474_vm7, %v2629_v38  ;;  %3580 = vmatmul.mubr.msk.f32.gmra.mxu1 %vm1773_vm10, %v2877_v39 }
 0x3c4   : > { %2574 = vst.msk [vmem:[#allocation4 + $0x38] sm:$0xff] %vm1353_vm6, %v2534_v59  ;;  %2547 = vrot.lane.b32.xlu1 %v2788_v6, %s3697_s15 }
 0x3c5   : > { %2453 = vrot.lane.b32.xlu0 %v2693_v35, %s3696_s14 }
 0x3c6   : > { %v2344_v41 = vpop.permute.xlu1 %2343 }
 0x3c7   : > { %v2249_v42 = vpop.permute.xlu0 %2248  ;;  %2383 = vst.msk [vmem:[#allocation4 + $0x40] sm:$0xff] %vm1111_vm4, %v2344_v41 }
 0x3c8   : > { %2287 = vst.msk [vmem:[#allocation4 + $0x48] sm:$0xff] %vm989_vm3, %v2249_v42  ;;  %2549 = vrot.lane.b32.xlu1 %v2789_v40, %s3697_s15 }
 0x3c9   : > { %2834 = vrot.lane.b32.xlu0 %v2789_v40, %s3700_s18 }
 0x3ca   : > { %v2725_v30 = vpop.permute.xlu1 %2724 }
 0x3cb   : > { %v2631_v45 = vpop.permute.xlu0 %2630  ;;  %2766 = vst.msk [vmem:[#allocation4 + $0x30] sm:$0xff] %vm1595_vm8, %v2725_v30 }
 0x3cc   : > { %2671 = vst.msk [vmem:[#allocation4 + $0x38] sm:$0xff] %vm1474_vm7, %v2631_v45  ;;  %2646 = vrot.lane.b32.xlu1 %v2599_v44, %s3698_s19 }
 0x3cd   : > { %2644 = vrot.lane.b32.xlu0 %v2598_v43, %s3698_s19 }
 0x3ce   : > { %v2440_v48 = vpop.permute.xlu1 %2439 }
 0x3cf   : > { %v2346_v49 = vpop.permute.xlu0 %2345  ;;  %2479 = vst.msk [vmem:[#allocation4 + $0x40] sm:$0xff] %vm1232_vm5, %v2440_v48 }
 0x3d0   : > { %2384 = vst.msk [vmem:[#allocation4 + $0x48] sm:$0xff] %vm1111_vm4, %v2346_v49  ;;  %2742 = vrot.lane.b32.xlu1 %v2695_v47, %s3699_s23 }
 0x3d1   : > { %2740 = vrot.lane.b32.xlu0 %v2694_v46, %s3699_s23 }
 0x3d2   : > { %v2821_v51 = vpop.permute.xlu1 %2820 }
 0x3d3   : > { %v2727_v52 = vpop.permute.xlu0 %2726  ;;  %2862 = vst.msk [vmem:[#allocation4 + $0x30] sm:$0xff] %vm1716_vm9, %v2821_v51 }
 0x3d4   : > { %2767 = vst.msk [vmem:[#allocation4 + $0x38] sm:$0xff] %vm1595_vm8, %v2727_v52  ;;  %2838 = vrot.lane.b32.xlu1 %v2791_v50, %s3700_s18  ;;  %v4870_v50 = vld [vmem:[%s4966_s8] ss:$0 sm:$0xff] }
 0x3d5   : > { %2836 = vrot.lane.b32.xlu0 %v2790_v14, %s3700_s18 }
 0x3d6   : > { %v2442_v53 = vpop.permute.xlu1 %2441 }
 0x3d7   : > { %v2155_v54 = vpop.permute.xlu0 %2154  ;;  %2480 = vst.msk [vmem:[#allocation4 + $0x48] sm:$0xff] %vm1232_vm5, %v2442_v53 }
 0x3d8   : > { %2192 = vst.msk [vmem:[#allocation4 + $0x50] sm:$0xff] %vm868_vm2, %v2155_v54 }
 0x3da   : > { %v2823_v55 = vpop.permute.xlu1 %2822  ;;  %v2878_v56 = vld [vmem:[#allocation4 + $0x30] sm:$0xff] }
 0x3db   : > { %v2536_v20 = vpop.permute.xlu0 %2535  ;;  %2863 = vst.msk [vmem:[#allocation4 + $0x38] sm:$0xff] %vm1716_vm9, %v2823_v55  ;;  %3582 = vmatprep.mubr.msk.f32.mxu1 %vm1773_vm10, %v2878_v56  ;;  %v3098_v55 = vld [vmem:[%s3803_s26 + $0x8] sm:$0xff] }
 0x3dc   : > { %2575 = vst.msk [vmem:[#allocation4 + $0x40] sm:$0xff] %vm1353_vm6, %v2536_v20 }
 0x3de   : > { %v2251_v57 = vpop.permute.xlu1 %2250 }
 0x3df   : > { %v2157_v58 = vpop.permute.xlu0 %2156  ;;  %2288 = vst.msk [vmem:[#allocation4 + $0x50] sm:$0xff] %vm989_vm3, %v2251_v57  ;;  %v3097_v57 = vld [vmem:[%s3803_s26] sm:$0xff] }
 0x3e0   : > { %2193 = vst.msk [vmem:[#allocation4 + $0x58] sm:$0xff] %vm868_vm2, %v2157_v58 }
 0x3e2   : > { %v2633_v60 = vpop.permute.xlu1 %2632  ;;  %v2879_v63 = vld [vmem:[#allocation4 + $0x38] sm:$0xff] }
 0x3e3   : > { %v2538_v61 = vpop.permute.xlu0 %2537  ;;  %2672 = vst.msk [vmem:[#allocation4 + $0x40] sm:$0xff] %vm1474_vm7, %v2633_v60  ;;  %3583 = vmatmul.mubr.msk.f32.gmra.mxu1 %vm1773_vm10, %v2879_v63 }
 0x3e4   : > { %2576 = vst.msk [vmem:[#allocation4 + $0x48] sm:$0xff] %vm1353_vm6, %v2538_v61 }
 0x3e6   : > { %v2348_v1 = vpop.permute.xlu1 %2347 }
 0x3e7   : > { %v2253_v2 = vpop.permute.xlu0 %2252  ;;  %2385 = vst.msk [vmem:[#allocation4 + $0x50] sm:$0xff] %vm1111_vm4, %v2348_v1 }
 0x3e8   : > { %2289 = vst.msk [vmem:[#allocation4 + $0x58] sm:$0xff] %vm989_vm3, %v2253_v2 }
 0x3ea   : > { %v2729_v3 = vpop.permute.xlu1 %2728 }
 0x3eb   : > { %v2635_v5 = vpop.permute.xlu0 %2634  ;;  %2768 = vst.msk [vmem:[#allocation4 + $0x40] sm:$0xff] %vm1595_vm8, %v2729_v3 }
 0x3ec   : > { %2673 = vst.msk [vmem:[#allocation4 + $0x48] sm:$0xff] %vm1474_vm7, %v2635_v5 }
 0x3ee   : > { %v2444_v62 = vpop.permute.xlu1 %2443 }
 0x3ef   : > { %v2350_v7 = vpop.permute.xlu0 %2349  ;;  %2481 = vst.msk [vmem:[#allocation4 + $0x50] sm:$0xff] %vm1232_vm5, %v2444_v62 }
 0x3f0   : > { %2386 = vst.msk [vmem:[#allocation4 + $0x58] sm:$0xff] %vm1111_vm4, %v2350_v7 }
 0x3f2   : > { %v2825_v8 = vpop.permute.xlu1 %2824 }
 0x3f3   : > { %v2731_v9 = vpop.permute.xlu0 %2730  ;;  %2864 = vst.msk [vmem:[#allocation4 + $0x40] sm:$0xff] %vm1716_vm9, %v2825_v8  ;;  %v3100_v8 = vld [vmem:[%s3803_s26 + $0x18] sm:$0xff] }
 0x3f4   : > { %2769 = vst.msk [vmem:[#allocation4 + $0x48] sm:$0xff] %vm1595_vm8, %v2731_v9 }
 0x3f6   : > { %v2446_v10 = vpop.permute.xlu1 %2445 }
 0x3f7   : > { %v2159_v11 = vpop.permute.xlu0 %2158  ;;  %2482 = vst.msk [vmem:[#allocation4 + $0x58] sm:$0xff] %vm1232_vm5, %v2446_v10 }
 0x3f8   : > { %2194 = vst.msk [vmem:[#allocation4 + $0x60] sm:$0xff] %vm868_vm2, %v2159_v11  ;;  %v3099_v11 = vld [vmem:[%s3803_s26 + $0x10] sm:$0xff] }
 0x3fa   : > { %v2827_v0 = vpop.permute.xlu1 %2826  ;;  %v2880_v15 = vld [vmem:[#allocation4 + $0x40] sm:$0xff] }
 0x3fb   : > { %v2540_v13 = vpop.permute.xlu0 %2539  ;;  %2865 = vst.msk [vmem:[#allocation4 + $0x48] sm:$0xff] %vm1716_vm9, %v2827_v0  ;;  %3585 = vmatprep.mubr.msk.f32.mxu1 %vm1773_vm10, %v2880_v15 }
 0x3fc   : > { %2577 = vst.msk [vmem:[#allocation4 + $0x50] sm:$0xff] %vm1353_vm6, %v2540_v13 }
 0x3fe   : > { %v2255_v16 = vpop.permute.xlu1 %2254 }
 0x3ff   : > { %v2161_v17 = vpop.permute.xlu0 %2160  ;;  %2290 = vst.msk [vmem:[#allocation4 + $0x60] sm:$0xff] %vm989_vm3, %v2255_v16 }
 0x400   : > { %2195 = vst.msk [vmem:[#allocation4 + $0x68] sm:$0xff] %vm868_vm2, %v2161_v17 }
 0x402   : > { %v2637_v12 = vpop.permute.xlu1 %2636  ;;  %v2881_v19 = vld [vmem:[#allocation4 + $0x48] sm:$0xff] }
 0x403   : > { %v2542_v18 = vpop.permute.xlu0 %2541  ;;  %2674 = vst.msk [vmem:[#allocation4 + $0x50] sm:$0xff] %vm1474_vm7, %v2637_v12  ;;  %3586 = vmatmul.mubr.msk.f32.gmra.mxu1 %vm1773_vm10, %v2881_v19 }
 0x404   : > { %2578 = vst.msk [vmem:[#allocation4 + $0x58] sm:$0xff] %vm1353_vm6, %v2542_v18  ;;  %v3102_v18 = vld [vmem:[%s3803_s26 + $0x28] sm:$0xff] }
 0x406   : > { %v2352_v21 = vpop.permute.xlu1 %2351 }
 0x407   : > { %v2257_v22 = vpop.permute.xlu0 %2256  ;;  %2387 = vst.msk [vmem:[#allocation4 + $0x60] sm:$0xff] %vm1111_vm4, %v2352_v21 }
 0x408   : > { %2291 = vst.msk [vmem:[#allocation4 + $0x68] sm:$0xff] %vm989_vm3, %v2257_v22  ;;  %v3101_v22 = vld [vmem:[%s3803_s26 + $0x20] sm:$0xff] }
 0x40a   : > { %v2733_v23 = vpop.permute.xlu1 %2732 }
 0x40b   : > { %v2639_v24 = vpop.permute.xlu0 %2638  ;;  %2770 = vst.msk [vmem:[#allocation4 + $0x50] sm:$0xff] %vm1595_vm8, %v2733_v23 }
 0x40c   : > { %2675 = vst.msk [vmem:[#allocation4 + $0x58] sm:$0xff] %vm1474_vm7, %v2639_v24 }
 0x40e   : > { %v2448_v25 = vpop.permute.xlu1 %2447 }
 0x40f   : > { %v2354_v26 = vpop.permute.xlu0 %2353  ;;  %2483 = vst.msk [vmem:[#allocation4 + $0x60] sm:$0xff] %vm1232_vm5, %v2448_v25 }
 0x410   : > { %2388 = vst.msk [vmem:[#allocation4 + $0x68] sm:$0xff] %vm1111_vm4, %v2354_v26 }
 0x412   : > { %v2829_v27 = vpop.permute.xlu1 %2828 }
 0x413   : > { %v2735_v28 = vpop.permute.xlu0 %2734  ;;  %2866 = vst.msk [vmem:[#allocation4 + $0x50] sm:$0xff] %vm1716_vm9, %v2829_v27 }
 0x414   : > { %2771 = vst.msk [vmem:[#allocation4 + $0x58] sm:$0xff] %vm1595_vm8, %v2735_v28 }
 0x416   : > { %v2450_v4 = vpop.permute.xlu1 %2449 }
 0x417   : > { %v2163_v29 = vpop.permute.xlu0 %2162  ;;  %2484 = vst.msk [vmem:[#allocation4 + $0x68] sm:$0xff] %vm1232_vm5, %v2450_v4  ;;  %v3104_v4 = vld [vmem:[%s3803_s26 + $0x38] sm:$0xff] }
 0x418   : > { %2196 = vst.msk [vmem:[#allocation4 + $0x70] sm:$0xff] %vm868_vm2, %v2163_v29 }
 0x41a   : > { %v2831_v31 = vpop.permute.xlu1 %2830  ;;  %v2882_v33 = vld [vmem:[#allocation4 + $0x50] sm:$0xff] }
 0x41b   : > { %v2544_v32 = vpop.permute.xlu0 %2543  ;;  %2867 = vst.msk [vmem:[#allocation4 + $0x58] sm:$0xff] %vm1716_vm9, %v2831_v31  ;;  %3588 = vmatprep.mubr.msk.f32.mxu1 %vm1773_vm10, %v2882_v33 }
 0x41c   : > { %2579 = vst.msk [vmem:[#allocation4 + $0x60] sm:$0xff] %vm1353_vm6, %v2544_v32  ;;  %v3103_v32 = vld [vmem:[%s3803_s26 + $0x30] sm:$0xff] }
 0x41e   : > { %v2259_v35 = vpop.permute.xlu1 %2258 }
 0x41f   : > { %v2165_v34 = vpop.permute.xlu0 %2164  ;;  %2292 = vst.msk [vmem:[#allocation4 + $0x70] sm:$0xff] %vm989_vm3, %v2259_v35 }
 0x420   : > { %2197 = vst.msk [vmem:[#allocation4 + $0x78] sm:$0xff] %vm868_vm2, %v2165_v34 }
 0x422   : > { %v2641_v36 = vpop.permute.xlu1 %2640  ;;  %v2883_v37 = vld [vmem:[#allocation4 + $0x58] sm:$0xff] }
 0x423   : > { %v2546_v6 = vpop.permute.xlu0 %2545  ;;  %2676 = vst.msk [vmem:[#allocation4 + $0x60] sm:$0xff] %vm1474_vm7, %v2641_v36  ;;  %3589 = vmatmul.mubr.msk.f32.gmra.mxu1 %vm1773_vm10, %v2883_v37 }
 0x424   : > { %2580 = vst.msk [vmem:[#allocation4 + $0x68] sm:$0xff] %vm1353_vm6, %v2546_v6 }
 0x426   : > { %v2356_v59 = vpop.permute.xlu1 %2355 }
 0x427   : > { %v2261_v38 = vpop.permute.xlu0 %2260  ;;  %2389 = vst.msk [vmem:[#allocation4 + $0x70] sm:$0xff] %vm1111_vm4, %v2356_v59 }
 0x428   : > { %2293 = vst.msk [vmem:[#allocation4 + $0x78] sm:$0xff] %vm989_vm3, %v2261_v38  ;;  %v3106_v38 = vld [vmem:[%s3803_s26 + $0x48] sm:$0xff] }
 0x42a   : > { %v2737_v40 = vpop.permute.xlu1 %2736 }
 0x42b   : > { %v2643_v39 = vpop.permute.xlu0 %2642  ;;  %2772 = vst.msk [vmem:[#allocation4 + $0x60] sm:$0xff] %vm1595_vm8, %v2737_v40  ;;  %v3105_v40 = vld [vmem:[%s3803_s26 + $0x40] sm:$0xff] }
 0x42c   : > { %2677 = vst.msk [vmem:[#allocation4 + $0x68] sm:$0xff] %vm1474_vm7, %v2643_v39 }
 0x42e   : > { %v2452_v42 = vpop.permute.xlu1 %2451 }
 0x42f   : > { %v2358_v41 = vpop.permute.xlu0 %2357  ;;  %2485 = vst.msk [vmem:[#allocation4 + $0x70] sm:$0xff] %vm1232_vm5, %v2452_v42 }
 0x430   : > { %2390 = vst.msk [vmem:[#allocation4 + $0x78] sm:$0xff] %vm1111_vm4, %v2358_v41 }
 0x432   : > { %v2833_v44 = vpop.permute.xlu1 %2832 }
 0x433   : > { %v2739_v43 = vpop.permute.xlu0 %2738  ;;  %2868 = vst.msk [vmem:[#allocation4 + $0x60] sm:$0xff] %vm1716_vm9, %v2833_v44 }
 0x434   : > { %2773 = vst.msk [vmem:[#allocation4 + $0x68] sm:$0xff] %vm1595_vm8, %v2739_v43 }
 0x436   : > { %v2548_v45 = vpop.permute.xlu1 %2547 }
 0x437   : > { %v2454_v30 = vpop.permute.xlu0 %2453  ;;  %2581 = vst.msk [vmem:[#allocation4 + $0x70] sm:$0xff] %vm1353_vm6, %v2548_v45 }
 0x438   : > { %2486 = vst.msk [vmem:[#allocation4 + $0x78] sm:$0xff] %vm1232_vm5, %v2454_v30 }
 0x43a   : > { %v2550_v47 = vpop.permute.xlu1 %2549  ;;  %v2884_v48 = vld [vmem:[#allocation4 + $0x60] sm:$0xff] }
 0x43b   : > { %v2835_v46 = vpop.permute.xlu0 %2834  ;;  %2582 = vst.msk [vmem:[#allocation4 + $0x78] sm:$0xff] %vm1353_vm6, %v2550_v47  ;;  %3591 = vmatprep.mubr.msk.f32.mxu1 %vm1773_vm10, %v2884_v48 }
 0x43c   : > { %2869 = vst.msk [vmem:[#allocation4 + $0x68] sm:$0xff] %vm1716_vm9, %v2835_v46  ;;  %v3108_v46 = vld [vmem:[%s3803_s26 + $0x58] sm:$0xff] }
 0x43e   : > { %v2647_v14 = vpop.permute.xlu1 %2646 }
 0x43f   : > { %v2645_v49 = vpop.permute.xlu0 %2644  ;;  %2679 = vst.msk [vmem:[#allocation4 + $0x78] sm:$0xff] %vm1474_vm7, %v2647_v14 }
 0x440   : > { %2678 = vst.msk [vmem:[#allocation4 + $0x70] sm:$0xff] %vm1474_vm7, %v2645_v49  ;;  %v3107_v49 = vld [vmem:[%s3803_s26 + $0x50] sm:$0xff] }
 0x442   : > { %v2743_v52 = vpop.permute.xlu1 %2742 }
 0x443   : > { %v2741_v51 = vpop.permute.xlu0 %2740  ;;  %v2885_v53 = vld [vmem:[#allocation4 + $0x68] sm:$0xff]  ;;  %2775 = vst.msk [vmem:[#allocation4 + $0x78] sm:$0xff] %vm1595_vm8, %v2743_v52  ;;  %v3575_v54 = vpop.f32.mrf.mxu1 }
 0x444   : > { %2774 = vst.msk [vmem:[#allocation4 + $0x70] sm:$0xff] %vm1595_vm8, %v2741_v51  ;;  %3592 = vmatmul.mubr.msk.f32.gmra.mxu1 %vm1773_vm10, %v2885_v53  ;;  %v3024_v20 = vadd.f32 %v3575_v54, %v4870_v50 }
 0x445   : > { %v3018_v56 = vpop.f32.mrf.mxu1 }
 0x446   : > { %v3114_v58 = vadd.f32 %v3098_v55, %v3024_v20  ;;  %v3019_v60 = vadd.f32 %v4870_v50, %v3018_v56  ;;  %v2839_v63 = vpop.permute.xlu1 %2838  ;;  %v3110_v20 = vld [vmem:[%s3803_s26 + $0x68] sm:$0xff] }
 0x447   : > { %v2837_v61 = vpop.permute.xlu0 %2836  ;;  %2871 = vst.msk [vmem:[#allocation4 + $0x78] sm:$0xff] %vm1716_vm9, %v2839_v63 }
 0x448   : > { %2870 = vst.msk [vmem:[#allocation4 + $0x70] sm:$0xff] %vm1716_vm9, %v2837_v61  ;;  %v3130_v1 = vmax.f32 %v3114_v58, 0.0  ;;  %v3113_v2 = vadd.f32 %v3097_v57, %v3019_v60  ;;  %v3109_v58 = vld [vmem:[%s3803_s26 + $0x60] sm:$0xff] }
 0x44a   : > { %3146 = vst.msk [vmem:[%s3854_s17 + $0x8] sm:$0xff] %vm642_vm0, %v3130_v1  ;;  %v3129_v3 = vmax.f32 %v3113_v2, 0.0 }
 0x44c   : > { %3145 = vst.msk [vmem:[%s3854_s17] sm:$0xff] %vm642_vm0, %v3129_v3 }
 0x44e   : > { %v2887_v62 = vld [vmem:[#allocation4 + $0x78] sm:$0xff] }
 0x44f   : > { %v2886_v5 = vld [vmem:[#allocation4 + $0x70] sm:$0xff] }
 0x450   : > { %3594 = vmatprep.mubr.msk.f32.mxu1 %vm1773_vm10, %v2886_v5  ;;  %v3112_v5 = vld [vmem:[%s3803_s26 + $0x78] sm:$0xff] }
 0x451   : > { %3595 = vmatmul.mubr.msk.f32.gmra.mxu1 %vm1773_vm10, %v2887_v62 }
 0x463   : > { %v3578_v7 = vpop.f32.mrf.mxu1 }
 0x464   : > { %v3034_v9 = vadd.f32 %v3578_v7, %v4870_v50 }
 0x465   : > { %v3028_v10 = vpop.f32.mrf.mxu1 }
 0x466   : > { %v3116_v0 = vadd.f32 %v3100_v8, %v3034_v9  ;;  %v3029_v13 = vadd.f32 %v4870_v50, %v3028_v10  ;;  %v3111_v8 = vld [vmem:[%s3803_s26 + $0x70] sm:$0xff] }
 0x468   : > { %v3132_v15 = vmax.f32 %v3116_v0, 0.0  ;;  %v3115_v16 = vadd.f32 %v3099_v11, %v3029_v13 }
 0x46a   : > { %3148 = vst.msk [vmem:[%s3854_s17 + $0x18] sm:$0xff] %vm642_vm0, %v3132_v15  ;;  %v3131_v17 = vmax.f32 %v3115_v16, 0.0 }
 0x46c   : > { %3147 = vst.msk [vmem:[%s3854_s17 + $0x10] sm:$0xff] %vm642_vm0, %v3131_v17 }
 0x483   : > { %v3581_v12 = vpop.f32.mrf.mxu1 }
 0x484   : > { %v3044_v19 = vadd.f32 %v3581_v12, %v4870_v50 }
 0x485   : > { %v3038_v21 = vpop.f32.mrf.mxu1 }
 0x486   : > { %v3118_v23 = vadd.f32 %v3102_v18, %v3044_v19  ;;  %v3039_v24 = vadd.f32 %v4870_v50, %v3038_v21 }
 0x488   : > { %v3134_v25 = vmax.f32 %v3118_v23, 0.0  ;;  %v3117_v26 = vadd.f32 %v3101_v22, %v3039_v24 }
 0x48a   : > { %3150 = vst.msk [vmem:[%s3854_s17 + $0x28] sm:$0xff] %vm642_vm0, %v3134_v25  ;;  %v3133_v27 = vmax.f32 %v3117_v26, 0.0 }
 0x48c   : > { %3149 = vst.msk [vmem:[%s3854_s17 + $0x20] sm:$0xff] %vm642_vm0, %v3133_v27 }
 0x4a3   : > { %v3584_v28 = vpop.f32.mrf.mxu1 }
 0x4a4   : > { %v3054_v29 = vadd.f32 %v3584_v28, %v4870_v50 }
 0x4a5   : > { %v3048_v31 = vpop.f32.mrf.mxu1 }
 0x4a6   : > { %v3120_v33 = vadd.f32 %v3104_v4, %v3054_v29  ;;  %v3049_v34 = vadd.f32 %v4870_v50, %v3048_v31 }
 0x4a8   : > { %v3136_v35 = vmax.f32 %v3120_v33, 0.0  ;;  %v3119_v6 = vadd.f32 %v3103_v32, %v3049_v34 }
 0x4aa   : > { %3152 = vst.msk [vmem:[%s3854_s17 + $0x38] sm:$0xff] %vm642_vm0, %v3136_v35  ;;  %v3135_v36 = vmax.f32 %v3119_v6, 0.0 }
 0x4ac   : > { %3151 = vst.msk [vmem:[%s3854_s17 + $0x30] sm:$0xff] %vm642_vm0, %v3135_v36 }
 0x4c3   : > { %v3587_v37 = vpop.f32.mrf.mxu1 }
 0x4c4   : > { %v3064_v59 = vadd.f32 %v3587_v37, %v4870_v50 }
 0x4c5   : > { %v3058_v39 = vpop.f32.mrf.mxu1 }
 0x4c6   : > { %v3122_v41 = vadd.f32 %v3106_v38, %v3064_v59  ;;  %v3059_v42 = vadd.f32 %v4870_v50, %v3058_v39 }
 0x4c8   : > { %v3138_v43 = vmax.f32 %v3122_v41, 0.0  ;;  %v3121_v44 = vadd.f32 %v3105_v40, %v3059_v42 }
 0x4ca   : > { %3154 = vst.msk [vmem:[%s3854_s17 + $0x48] sm:$0xff] %vm642_vm0, %v3138_v43  ;;  %v3137_v30 = vmax.f32 %v3121_v44, 0.0 }
 0x4cc   : > { %3153 = vst.msk [vmem:[%s3854_s17 + $0x40] sm:$0xff] %vm642_vm0, %v3137_v30 }
 0x4e3   : > { %v3590_v45 = vpop.f32.mrf.mxu1 }
 0x4e4   : > { %v3074_v47 = vadd.f32 %v3590_v45, %v4870_v50 }
 0x4e5   : > { %v3068_v48 = vpop.f32.mrf.mxu1 }
 0x4e6   : > { %v3124_v14 = vadd.f32 %v3108_v46, %v3074_v47  ;;  %v3069_v51 = vadd.f32 %v4870_v50, %v3068_v48 }
 0x4e8   : > { %v3140_v52 = vmax.f32 %v3124_v14, 0.0  ;;  %v3123_v53 = vadd.f32 %v3107_v49, %v3069_v51 }
 0x4ea   : > { %3156 = vst.msk [vmem:[%s3854_s17 + $0x58] sm:$0xff] %vm642_vm0, %v3140_v52  ;;  %v3139_v54 = vmax.f32 %v3123_v53, 0.0 }
 0x4ec   : > { %3155 = vst.msk [vmem:[%s3854_s17 + $0x50] sm:$0xff] %vm642_vm0, %v3139_v54 }
 0x504   : > { %v3593_v55 = vpop.f32.mrf.mxu1 }
 0x505   : > { %v3084_v56 = vadd.f32 %v3593_v55, %v4870_v50 }
 0x506   : > { %v3078_v57 = vpop.f32.mrf.mxu1 }
 0x507   : > { %v3126_v60 = vadd.f32 %v3110_v20, %v3084_v56  ;;  %v3079_v61 = vadd.f32 %v4870_v50, %v3078_v57 }
 0x509   : > { %v3142_v63 = vmax.f32 %v3126_v60, 0.0  ;;  %v3125_v1 = vadd.f32 %v3109_v58, %v3079_v61 }
 0x50b   : > { %3158 = vst.msk [vmem:[%s3854_s17 + $0x68] sm:$0xff] %vm642_vm0, %v3142_v63  ;;  %v3141_v2 = vmax.f32 %v3125_v1, 0.0 }
 0x50d   : > { %3157 = vst.msk [vmem:[%s3854_s17 + $0x60] sm:$0xff] %vm642_vm0, %v3141_v2 }
 0x511   : > { %v3596_v3 = vpop.f32.mrf.mxu1 }
 0x512   : > { %v3094_v62 = vadd.f32 %v3596_v3, %v4870_v50 }
 0x513   : > { %v3088_v7 = vpop.f32.mrf.mxu1 }
 0x514   : > { %v3128_v9 = vadd.f32 %v3112_v5, %v3094_v62  ;;  %v3089_v10 = vadd.f32 %v4870_v50, %v3088_v7 }
 0x516   : > { %v3144_v11 = vmax.f32 %v3128_v9, 0.0  ;;  %v3127_v0 = vadd.f32 %v3111_v8, %v3089_v10 }
 0x518   : > { %3160 = vst.msk [vmem:[%s3854_s17 + $0x78] sm:$0xff] %vm642_vm0, %v3144_v11  ;;  %v3143_v13 = vmax.f32 %v3127_v0, 0.0 }
 0x51a   : > { %3159 = vst.msk [vmem:[%s3854_s17 + $0x70] sm:$0xff] %vm642_vm0, %v3143_v13 }
 0x51b PF: > { %s19_s13 = sadd.s32 1, %s3688_s13   ;;  %s4980_s30 = sld [smem:[#allocation5_spill]] }
 0x51c   : > { %p16_p3 = scmp.ge.s32.totalorder %s19_s13, 6   ;;  %s4981_s10 = sld [smem:[#allocation6_spill]] }
 0x51d   : > { %s4982_s11 = sld [smem:[#allocation7_spill]] }
 0x51e   : > { %s4983_s12 = sld [smem:[#allocation8_spill]]  ;;  %18 = sbr.rel (!%p16_p3) target bundleno = 4 (0x4), region = 131 }

</bundles_post_ra>
